<compile_context>
chip_gen: v7x
topology: tpu7x:2x2x1
jax: 0.10.0
libtpu: 0.0.40
codegen_flags: <defaults>
</compile_context>

<pallas_src>
import numpy as np
import jax
import jax.numpy as jnp
from jax.experimental import pallas as pl
from jax.experimental.pallas import tpu as pltpu

N_ACTIONS = 5
HO, WO = 11, 15          # conv2 output spatial size for a 47x63 input
S = HO * WO              # 165 spatial positions (16 * 165 = 2640 flat features)
KP = 7 * 7               # 49-tap composed (7x7, stride-4) receptive field
C1E = 9 * 8              # 72 = 9 conv1 taps x 8 conv1 output channels
C2 = 16                  # conv2 output channels
HID = 500                # fc1 hidden size


# ----------------------------- fused Pallas kernel ---------------------------

def _fused_net_kernel(p_ref, ct_ref, w1_ref, b1_ref, w2_ref, b2_ref,
                      wm_ref, wct_ref, bf1_ref, wf2_ref, bf2_ref, o_ref):
    # One grid step == one batch element. Spatial (165) lives on the lane axis.
    patches = p_ref[0]                                            # (49, 165)

    # conv1 + ReLU (expanded over the composed 7x7/stride-4 receptive field)
    y1 = jnp.dot(w1_ref[...], patches, preferred_element_type=jnp.float32)
    y1 = jnp.maximum(y1 + b1_ref[...], 0.0)                       # (72, 165)

    # conv2 + ReLU
    y2 = jnp.dot(w2_ref[...], y1, preferred_element_type=jnp.float32)
    y2 = jnp.maximum(y2 + b2_ref[...], 0.0)                       # (16, 165)

    # fc1: PyTorch's C-major flatten is folded into wm's (16, 165, 500) layout,
    # so fc1 is 16 channel-block GEMVs; the 4 [c, t] features are broadcast MACs.
    ct = ct_ref[0]                                                # (1, 4)
    h = bf1_ref[...]                                              # (1, 500)
    for k in range(4):
        h = h + ct[:, k:k + 1] * wct_ref[k:k + 1, :]
    for ch in range(C2):
        h = h + jnp.dot(y2[ch:ch + 1, :], wm_ref[ch],
                        preferred_element_type=jnp.float32)       # (1,165)@(165,500)

    # softmax over the 500 hidden units (PyTorch nn.Softmax default dim=1 on 2-D)
    m = jnp.max(h, axis=-1, keepdims=True)
    e = jnp.exp(h - m)
    sm = e * pl.reciprocal(jnp.sum(e, axis=-1, keepdims=True), approx=True)

    # fc2
    out = jnp.dot(sm, wf2_ref[...], preferred_element_type=jnp.float32)
    o_ref[0] = out + bf2_ref[...]                                 # (1, 5)


def fused_forward(prep, p7t, ct):
    B = p7t.shape[0]
    out = pl.pallas_call(
        _fused_net_kernel,
        out_shape=jax.ShapeDtypeStruct((B, 1, N_ACTIONS), jnp.float32),
        grid=(B,),
        in_specs=[
            pl.BlockSpec((1, KP, S), lambda b: (b, 0, 0)),        # patches
            pl.BlockSpec((1, 1, 4), lambda b: (b, 0, 0)),         # [c, t]
            pl.BlockSpec((C1E, KP), lambda b: (0, 0)),            # conv1 expanded
            pl.BlockSpec((C1E, 1), lambda b: (0, 0)),             # conv1 bias
            pl.BlockSpec((C2, C1E), lambda b: (0, 0)),            # conv2 (transposed)
            pl.BlockSpec((C2, 1), lambda b: (0, 0)),              # conv2 bias
            pl.BlockSpec((C2, S, HID), lambda b: (0, 0, 0)),      # fc1 main (permuted)
            pl.BlockSpec((4, HID), lambda b: (0, 0)),             # fc1 [c,t] columns
            pl.BlockSpec((1, HID), lambda b: (0, 0)),             # fc1 bias
            pl.BlockSpec((HID, N_ACTIONS), lambda b: (0, 0)),     # fc2 (transposed)
            pl.BlockSpec((1, N_ACTIONS), lambda b: (0, 0)),       # fc2 bias
        ],
        out_specs=pl.BlockSpec((1, 1, N_ACTIONS), lambda b: (b, 0, 0)),
        compiler_params=pltpu.CompilerParams(
            dimension_semantics=("parallel",)),
    )(p7t, ct, prep["w1e_t"], prep["b1e"], prep["w2g_t"], prep["b2"],
      prep["wm"], prep["wct"], prep["b_fc1"], prep["w_fc2"], prep["b_fc2"])
    return out[:, 0, :]                                           # (B, 5)


# ------------------------------ JAX wrapper ----------------------------------

@jax.jit
def net_forward(prep, x_nchw, c, t):
    """x_nchw: (B, 1, 47, 63) like PyTorch; c, t: (B, 2)."""
    B = x_nchw.shape[0]
    img = x_nchw[:, 0, :, :]                                      # (B, 47, 63)
    # 7x7 / stride-4 patch extraction (composed receptive field of both convs).
    taps = []
    for ph in range(7):
        for pw in range(7):
            taps.append(img[:, ph:ph + 4 * HO:4, pw:pw + 4 * WO:4])  # (B,11,15)
    p7t = jnp.stack(taps, axis=1).reshape(B, KP, S)               # (B, 49, 165)
    ct = jnp.concatenate([c, t], axis=-1)[:, None, :]             # (B, 1, 4)
    return fused_forward(prep, p7t, ct)


# ------------------------- parameter init & packing --------------------------

def init_params(key):
    """Parameters in the original PyTorch layout / initialization."""
    k1, k2, k3, k4 = jax.random.split(key, 4)
    # conv1: (8, 1, 3, 3); weights_init: uniform(-b, b), b = sqrt(6/(fan_in+fan_out))
    fan_in, fan_out = 1 * 3 * 3, 3 * 3 * 8
    wb1 = float(np.sqrt(6.0 / (fan_in + fan_out)))
    conv1_w = jax.random.uniform(k1, (8, 1, 3, 3), jnp.float32, -wb1, wb1)
    conv1_b = jnp.zeros((8,), jnp.float32)
    # conv2: (16, 8, 3, 3)
    fan_in, fan_out = 8 * 3 * 3, 3 * 3 * 16
    wb2 = float(np.sqrt(6.0 / (fan_in + fan_out)))
    conv2_w = jax.random.uniform(k2, (16, 8, 3, 3), jnp.float32, -wb2, wb2)
    conv2_b = jnp.zeros((16,), jnp.float32)
    # fc1: (500, 2644) normal(0, 0.1), bias 0 ; fc2: (5, 500) normal(0, 0.1), bias 0
    fc1_w = 0.1 * jax.random.normal(k3, (HID, 2644), jnp.float32)
    fc1_b = jnp.zeros((HID,), jnp.float32)
    fc2_w = 0.1 * jax.random.normal(k4, (N_ACTIONS, HID), jnp.float32)
    fc2_b = jnp.zeros((N_ACTIONS,), jnp.float32)
    return dict(conv1_w=conv1_w, conv1_b=conv1_b,
                conv2_w=conv2_w, conv2_b=conv2_b,
                fc1_w=fc1_w, fc1_b=fc1_b, fc2_w=fc2_w, fc2_b=fc2_b)


def prepare_params(p):
    """One-time repacking into kernel-friendly layouts (done outside the jitted
    forward, so no per-call transposes / 5.3 MB fc1 weight transpose)."""
    conv1_w = np.asarray(p["conv1_w"], np.float32)                # (8,1,3,3)
    conv1_b = np.asarray(p["conv1_b"], np.float32).reshape(8)
    conv2_w = np.asarray(p["conv2_w"], np.float32)                # (16,8,3,3)
    conv2_b = np.asarray(p["conv2_b"], np.float32).reshape(16)
    fc1_w = np.asarray(p["fc1_w"], np.float32)                    # (500,2644)
    fc1_b = np.asarray(p["fc1_b"], np.float32).reshape(HID)
    fc2_w = np.asarray(p["fc2_w"], np.float32)                    # (5,500)
    fc2_b = np.asarray(p["fc2_b"], np.float32).reshape(N_ACTIONS)

    # conv1 expanded over the 7x7/stride-4 composed receptive field:
    # row q = (dh*3+dw)*8 + c_out  (conv1 output at offset (dh,dw), channel c_out)
    # col p = ph*7 + pw            (input tap inside the 7x7 patch)
    w1e_t = np.zeros((C1E, KP), np.float32)
    b1e = np.zeros((C1E, 1), np.float32)
    for dh in range(3):
        for dw in range(3):
            for co in range(8):
                q = (dh * 3 + dw) * 8 + co
                b1e[q, 0] = conv1_b[co]
                for kh in range(3):
                    for kw in range(3):
                        w1e_t[q, (2 * dh + kh) * 7 + (2 * dw + kw)] = \
                            conv1_w[co, 0, kh, kw]

    # conv2 transposed GEMM layout: (c2, (dh*3+dw)*8 + c1)
    w2g_t = np.transpose(conv2_w, (0, 2, 3, 1)).reshape(C2, C1E).copy()
    b2 = conv2_b.reshape(C2, 1).copy()

    # fc1: PyTorch flat feature f = c*165 + s  ->  wm[c, s, :] = fc1_w[:, f]
    wm = np.ascontiguousarray(fc1_w[:, :C2 * S].T).reshape(C2, S, HID)
    wct = np.ascontiguousarray(fc1_w[:, C2 * S:].T)               # (4, 500)
    b_fc1 = fc1_b.reshape(1, HID).copy()
    w_fc2 = np.ascontiguousarray(fc2_w.T)                         # (500, 5)
    b_fc2 = fc2_b.reshape(1, N_ACTIONS).copy()

    packed = dict(w1e_t=w1e_t, b1e=b1e, w2g_t=w2g_t, b2=b2, wm=wm, wct=wct,
                  b_fc1=b_fc1, w_fc2=w_fc2, b_fc2=b_fc2)
    return {k: jnp.asarray(v) for k, v in packed.items()}


# ----------------------------------- main ------------------------------------

if __name__ == "__main__":
    key = jax.random.PRNGKey(0)
    kp, kx, kc, kt = jax.random.split(key, 4)

    params = init_params(kp)
    prep = prepare_params(params)

    B, H, W = 2, 47, 63          # 47x63 -> conv stack -> 16*11*15 = 2640 feats
    x = jax.random.normal(kx, (B, 1, H, W), jnp.float32)   # NCHW like PyTorch
    c = jax.random.normal(kc, (B, 2), jnp.float32)
    t = jax.random.normal(kt, (B, 2), jnp.float32)

    out = net_forward(prep, x, c, t)
    jax.block_until_ready(out)
    assert out.shape == (B, N_ACTIONS), out.shape
    print("KERNEL_OK")
</pallas_src>

<mosaic_0001>
module attributes {stable_mosaic.version = 11 : i64} {
  func.func @_fused_net_kernel(%arg0: i32, %arg1: memref<1x49x165xf32, #tpu.memory_space<vmem>>, %arg2: memref<1x1x4xf32, #tpu.memory_space<vmem>>, %arg3: memref<72x49xf32, #tpu.memory_space<vmem>>, %arg4: memref<72x1xf32, #tpu.memory_space<vmem>>, %arg5: memref<16x72xf32, #tpu.memory_space<vmem>>, %arg6: memref<16x1xf32, #tpu.memory_space<vmem>>, %arg7: memref<16x165x500xf32, #tpu.memory_space<vmem>>, %arg8: memref<4x500xf32, #tpu.memory_space<vmem>>, %arg9: memref<1x500xf32, #tpu.memory_space<vmem>>, %arg10: memref<500x5xf32, #tpu.memory_space<vmem>>, %arg11: memref<1x5xf32, #tpu.memory_space<vmem>>, %arg12: memref<1x1x5xf32, #tpu.memory_space<vmem>>) attributes {dimension_semantics = [#tpu.dimension_semantics<parallel>], iteration_bounds = array<i64: 2>, scalar_prefetch = 0 : i64, scratch_operands = 0 : i64, tpu.core_type = #tpu.core_type<tc>, window_params = [{transform_indices = @transform_0, window_bounds = array<i64: 1, 49, 165>}, {transform_indices = @transform_1, window_bounds = array<i64: 1, 1, 4>}, {pipeline_mode = #tpu.pipeline_mode<synchronous>, transform_indices = @transform_2, window_bounds = array<i64: 72, 49>}, {pipeline_mode = #tpu.pipeline_mode<synchronous>, transform_indices = @transform_3, window_bounds = array<i64: 72, 1>}, {pipeline_mode = #tpu.pipeline_mode<synchronous>, transform_indices = @transform_4, window_bounds = array<i64: 16, 72>}, {pipeline_mode = #tpu.pipeline_mode<synchronous>, transform_indices = @transform_5, window_bounds = array<i64: 16, 1>}, {pipeline_mode = #tpu.pipeline_mode<synchronous>, transform_indices = @transform_6, window_bounds = array<i64: 16, 165, 500>}, {pipeline_mode = #tpu.pipeline_mode<synchronous>, transform_indices = @transform_7, window_bounds = array<i64: 4, 500>}, {pipeline_mode = #tpu.pipeline_mode<synchronous>, transform_indices = @transform_8, window_bounds = array<i64: 1, 500>}, {pipeline_mode = #tpu.pipeline_mode<synchronous>, transform_indices = @transform_9, window_bounds = array<i64: 500, 5>}, {pipeline_mode = #tpu.pipeline_mode<synchronous>, transform_indices = @transform_10, window_bounds = array<i64: 1, 5>}, {transform_indices = @transform_11, window_bounds = array<i64: 1, 1, 5>}]} {
    %c0 = arith.constant 0 : index
    %c0_0 = arith.constant 0 : index
    %c0_1 = arith.constant 0 : index
    %0 = vector.load %arg1[%c0, %c0_0, %c0_1] : memref<1x49x165xf32, #tpu.memory_space<vmem>>, vector<1x49x165xf32>
    %1 = vector.shape_cast %0 : vector<1x49x165xf32> to vector<49x165xf32>
    %c0_2 = arith.constant 0 : index
    %c0_3 = arith.constant 0 : index
    %2 = vector.load %arg3[%c0_2, %c0_3] : memref<72x49xf32, #tpu.memory_space<vmem>>, vector<72x49xf32>
    %cst = arith.constant dense<0.000000e+00> : vector<72x165xf32>
    %3 = tpu.matmul %2, %1, %cst {dimension_numbers = #tpu.dot_dimension_numbers<[1], [0], [0], [1], [0, 0, 1, 1], [], []>} : vector<72x49xf32>, vector<49x165xf32>, vector<72x165xf32> -> vector<72x165xf32>
    %c0_4 = arith.constant 0 : index
    %c0_5 = arith.constant 0 : index
    %4 = vector.load %arg4[%c0_4, %c0_5] : memref<72x1xf32, #tpu.memory_space<vmem>>, vector<72x1xf32>
    %5 = vector.broadcast %4 : vector<72x1xf32> to vector<72x165xf32>
    %6 = arith.addf %3, %5 : vector<72x165xf32>
    %cst_6 = arith.constant 0.000000e+00 : f32
    %7 = vector.broadcast %cst_6 : f32 to vector<72x165xf32>
    %8 = arith.maximumf %6, %7 : vector<72x165xf32>
    %c0_7 = arith.constant 0 : index
    %c0_8 = arith.constant 0 : index
    %9 = vector.load %arg5[%c0_7, %c0_8] : memref<16x72xf32, #tpu.memory_space<vmem>>, vector<16x72xf32>
    %cst_9 = arith.constant dense<0.000000e+00> : vector<16x165xf32>
    %10 = tpu.matmul %9, %8, %cst_9 {dimension_numbers = #tpu.dot_dimension_numbers<[1], [0], [0], [1], [0, 0, 1, 1], [], []>} : vector<16x72xf32>, vector<72x165xf32>, vector<16x165xf32> -> vector<16x165xf32>
    %c0_10 = arith.constant 0 : index
    %c0_11 = arith.constant 0 : index
    %11 = vector.load %arg6[%c0_10, %c0_11] : memref<16x1xf32, #tpu.memory_space<vmem>>, vector<16x1xf32>
    %12 = vector.broadcast %11 : vector<16x1xf32> to vector<16x165xf32>
    %13 = arith.addf %10, %12 : vector<16x165xf32>
    %cst_12 = arith.constant 0.000000e+00 : f32
    %14 = vector.broadcast %cst_12 : f32 to vector<16x165xf32>
    %15 = arith.maximumf %13, %14 : vector<16x165xf32>
    %c0_13 = arith.constant 0 : index
    %c0_14 = arith.constant 0 : index
    %c0_15 = arith.constant 0 : index
    %16 = vector.load %arg2[%c0_13, %c0_14, %c0_15] : memref<1x1x4xf32, #tpu.memory_space<vmem>>, vector<1x1x4xf32>
    %17 = vector.shape_cast %16 : vector<1x1x4xf32> to vector<1x4xf32>
    %c0_16 = arith.constant 0 : index
    %c0_17 = arith.constant 0 : index
    %18 = vector.load %arg9[%c0_16, %c0_17] : memref<1x500xf32, #tpu.memory_space<vmem>>, vector<1x500xf32>
    %19 = vector.extract_strided_slice %17 {offsets = [0, 0], sizes = [1, 1], strides = [1, 1]} : vector<1x4xf32> to vector<1x1xf32>
    %c0_18 = arith.constant 0 : index
    %c0_19 = arith.constant 0 : index
    %20 = vector.load %arg8[%c0_18, %c0_19] : memref<4x500xf32, #tpu.memory_space<vmem>>, vector<1x500xf32>
    %21 = vector.broadcast %19 : vector<1x1xf32> to vector<1x500xf32>
    %22 = arith.mulf %21, %20 : vector<1x500xf32>
    %23 = arith.addf %18, %22 : vector<1x500xf32>
    %24 = vector.extract_strided_slice %17 {offsets = [0, 1], sizes = [1, 1], strides = [1, 1]} : vector<1x4xf32> to vector<1x1xf32>
    %c1 = arith.constant 1 : index
    %c0_20 = arith.constant 0 : index
    %25 = vector.load %arg8[%c1, %c0_20] : memref<4x500xf32, #tpu.memory_space<vmem>>, vector<1x500xf32>
    %26 = vector.broadcast %24 : vector<1x1xf32> to vector<1x500xf32>
    %27 = arith.mulf %26, %25 : vector<1x500xf32>
    %28 = arith.addf %23, %27 : vector<1x500xf32>
    %29 = vector.extract_strided_slice %17 {offsets = [0, 2], sizes = [1, 1], strides = [1, 1]} : vector<1x4xf32> to vector<1x1xf32>
    %c2 = arith.constant 2 : index
    %c0_21 = arith.constant 0 : index
    %30 = vector.load %arg8[%c2, %c0_21] : memref<4x500xf32, #tpu.memory_space<vmem>>, vector<1x500xf32>
    %31 = vector.broadcast %29 : vector<1x1xf32> to vector<1x500xf32>
    %32 = arith.mulf %31, %30 : vector<1x500xf32>
    %33 = arith.addf %28, %32 : vector<1x500xf32>
    %34 = vector.extract_strided_slice %17 {offsets = [0, 3], sizes = [1, 1], strides = [1, 1]} : vector<1x4xf32> to vector<1x1xf32>
    %c3 = arith.constant 3 : index
    %c0_22 = arith.constant 0 : index
    %35 = vector.load %arg8[%c3, %c0_22] : memref<4x500xf32, #tpu.memory_space<vmem>>, vector<1x500xf32>
    %36 = vector.broadcast %34 : vector<1x1xf32> to vector<1x500xf32>
    %37 = arith.mulf %36, %35 : vector<1x500xf32>
    %38 = arith.addf %33, %37 : vector<1x500xf32>
    %39 = vector.extract_strided_slice %15 {offsets = [0, 0], sizes = [1, 165], strides = [1, 1]} : vector<16x165xf32> to vector<1x165xf32>
    %c0_23 = arith.constant 0 : index
    %c0_24 = arith.constant 0 : index
    %c0_25 = arith.constant 0 : index
    %40 = vector.load %arg7[%c0_23, %c0_24, %c0_25] : memref<16x165x500xf32, #tpu.memory_space<vmem>>, vector<1x165x500xf32>
    %41 = vector.shape_cast %40 : vector<1x165x500xf32> to vector<165x500xf32>
    %cst_26 = arith.constant dense<0.000000e+00> : vector<1x500xf32>
    %42 = tpu.matmul %39, %41, %cst_26 {dimension_numbers = #tpu.dot_dimension_numbers<[1], [0], [0], [1], [0, 0, 1, 1], [], []>} : vector<1x165xf32>, vector<165x500xf32>, vector<1x500xf32> -> vector<1x500xf32>
    %43 = arith.addf %38, %42 : vector<1x500xf32>
    %44 = vector.extract_strided_slice %15 {offsets = [1, 0], sizes = [1, 165], strides = [1, 1]} : vector<16x165xf32> to vector<1x165xf32>
    %c1_27 = arith.constant 1 : index
    %c0_28 = arith.constant 0 : index
    %c0_29 = arith.constant 0 : index
    %45 = vector.load %arg7[%c1_27, %c0_28, %c0_29] : memref<16x165x500xf32, #tpu.memory_space<vmem>>, vector<1x165x500xf32>
    %46 = vector.shape_cast %45 : vector<1x165x500xf32> to vector<165x500xf32>
    %cst_30 = arith.constant dense<0.000000e+00> : vector<1x500xf32>
    %47 = tpu.matmul %44, %46, %cst_30 {dimension_numbers = #tpu.dot_dimension_numbers<[1], [0], [0], [1], [0, 0, 1, 1], [], []>} : vector<1x165xf32>, vector<165x500xf32>, vector<1x500xf32> -> vector<1x500xf32>
    %48 = arith.addf %43, %47 : vector<1x500xf32>
    %49 = vector.extract_strided_slice %15 {offsets = [2, 0], sizes = [1, 165], strides = [1, 1]} : vector<16x165xf32> to vector<1x165xf32>
    %c2_31 = arith.constant 2 : index
    %c0_32 = arith.constant 0 : index
    %c0_33 = arith.constant 0 : index
    %50 = vector.load %arg7[%c2_31, %c0_32, %c0_33] : memref<16x165x500xf32, #tpu.memory_space<vmem>>, vector<1x165x500xf32>
    %51 = vector.shape_cast %50 : vector<1x165x500xf32> to vector<165x500xf32>
    %cst_34 = arith.constant dense<0.000000e+00> : vector<1x500xf32>
    %52 = tpu.matmul %49, %51, %cst_34 {dimension_numbers = #tpu.dot_dimension_numbers<[1], [0], [0], [1], [0, 0, 1, 1], [], []>} : vector<1x165xf32>, vector<165x500xf32>, vector<1x500xf32> -> vector<1x500xf32>
    %53 = arith.addf %48, %52 : vector<1x500xf32>
    %54 = vector.extract_strided_slice %15 {offsets = [3, 0], sizes = [1, 165], strides = [1, 1]} : vector<16x165xf32> to vector<1x165xf32>
    %c3_35 = arith.constant 3 : index
    %c0_36 = arith.constant 0 : index
    %c0_37 = arith.constant 0 : index
    %55 = vector.load %arg7[%c3_35, %c0_36, %c0_37] : memref<16x165x500xf32, #tpu.memory_space<vmem>>, vector<1x165x500xf32>
    %56 = vector.shape_cast %55 : vector<1x165x500xf32> to vector<165x500xf32>
    %cst_38 = arith.constant dense<0.000000e+00> : vector<1x500xf32>
    %57 = tpu.matmul %54, %56, %cst_38 {dimension_numbers = #tpu.dot_dimension_numbers<[1], [0], [0], [1], [0, 0, 1, 1], [], []>} : vector<1x165xf32>, vector<165x500xf32>, vector<1x500xf32> -> vector<1x500xf32>
    %58 = arith.addf %53, %57 : vector<1x500xf32>
    %59 = vector.extract_strided_slice %15 {offsets = [4, 0], sizes = [1, 165], strides = [1, 1]} : vector<16x165xf32> to vector<1x165xf32>
    %c4 = arith.constant 4 : index
    %c0_39 = arith.constant 0 : index
    %c0_40 = arith.constant 0 : index
    %60 = vector.load %arg7[%c4, %c0_39, %c0_40] : memref<16x165x500xf32, #tpu.memory_space<vmem>>, vector<1x165x500xf32>
    %61 = vector.shape_cast %60 : vector<1x165x500xf32> to vector<165x500xf32>
    %cst_41 = arith.constant dense<0.000000e+00> : vector<1x500xf32>
    %62 = tpu.matmul %59, %61, %cst_41 {dimension_numbers = #tpu.dot_dimension_numbers<[1], [0], [0], [1], [0, 0, 1, 1], [], []>} : vector<1x165xf32>, vector<165x500xf32>, vector<1x500xf32> -> vector<1x500xf32>
    %63 = arith.addf %58, %62 : vector<1x500xf32>
    %64 = vector.extract_strided_slice %15 {offsets = [5, 0], sizes = [1, 165], strides = [1, 1]} : vector<16x165xf32> to vector<1x165xf32>
    %c5 = arith.constant 5 : index
    %c0_42 = arith.constant 0 : index
    %c0_43 = arith.constant 0 : index
    %65 = vector.load %arg7[%c5, %c0_42, %c0_43] : memref<16x165x500xf32, #tpu.memory_space<vmem>>, vector<1x165x500xf32>
    %66 = vector.shape_cast %65 : vector<1x165x500xf32> to vector<165x500xf32>
    %cst_44 = arith.constant dense<0.000000e+00> : vector<1x500xf32>
    %67 = tpu.matmul %64, %66, %cst_44 {dimension_numbers = #tpu.dot_dimension_numbers<[1], [0], [0], [1], [0, 0, 1, 1], [], []>} : vector<1x165xf32>, vector<165x500xf32>, vector<1x500xf32> -> vector<1x500xf32>
    %68 = arith.addf %63, %67 : vector<1x500xf32>
    %69 = vector.extract_strided_slice %15 {offsets = [6, 0], sizes = [1, 165], strides = [1, 1]} : vector<16x165xf32> to vector<1x165xf32>
    %c6 = arith.constant 6 : index
    %c0_45 = arith.constant 0 : index
    %c0_46 = arith.constant 0 : index
    %70 = vector.load %arg7[%c6, %c0_45, %c0_46] : memref<16x165x500xf32, #tpu.memory_space<vmem>>, vector<1x165x500xf32>
    %71 = vector.shape_cast %70 : vector<1x165x500xf32> to vector<165x500xf32>
    %cst_47 = arith.constant dense<0.000000e+00> : vector<1x500xf32>
    %72 = tpu.matmul %69, %71, %cst_47 {dimension_numbers = #tpu.dot_dimension_numbers<[1], [0], [0], [1], [0, 0, 1, 1], [], []>} : vector<1x165xf32>, vector<165x500xf32>, vector<1x500xf32> -> vector<1x500xf32>
    %73 = arith.addf %68, %72 : vector<1x500xf32>
    %74 = vector.extract_strided_slice %15 {offsets = [7, 0], sizes = [1, 165], strides = [1, 1]} : vector<16x165xf32> to vector<1x165xf32>
    %c7 = arith.constant 7 : index
    %c0_48 = arith.constant 0 : index
    %c0_49 = arith.constant 0 : index
    %75 = vector.load %arg7[%c7, %c0_48, %c0_49] : memref<16x165x500xf32, #tpu.memory_space<vmem>>, vector<1x165x500xf32>
    %76 = vector.shape_cast %75 : vector<1x165x500xf32> to vector<165x500xf32>
    %cst_50 = arith.constant dense<0.000000e+00> : vector<1x500xf32>
    %77 = tpu.matmul %74, %76, %cst_50 {dimension_numbers = #tpu.dot_dimension_numbers<[1], [0], [0], [1], [0, 0, 1, 1], [], []>} : vector<1x165xf32>, vector<165x500xf32>, vector<1x500xf32> -> vector<1x500xf32>
    %78 = arith.addf %73, %77 : vector<1x500xf32>
    %79 = vector.extract_strided_slice %15 {offsets = [8, 0], sizes = [1, 165], strides = [1, 1]} : vector<16x165xf32> to vector<1x165xf32>
    %c8 = arith.constant 8 : index
    %c0_51 = arith.constant 0 : index
    %c0_52 = arith.constant 0 : index
    %80 = vector.load %arg7[%c8, %c0_51, %c0_52] : memref<16x165x500xf32, #tpu.memory_space<vmem>>, vector<1x165x500xf32>
    %81 = vector.shape_cast %80 : vector<1x165x500xf32> to vector<165x500xf32>
    %cst_53 = arith.constant dense<0.000000e+00> : vector<1x500xf32>
    %82 = tpu.matmul %79, %81, %cst_53 {dimension_numbers = #tpu.dot_dimension_numbers<[1], [0], [0], [1], [0, 0, 1, 1], [], []>} : vector<1x165xf32>, vector<165x500xf32>, vector<1x500xf32> -> vector<1x500xf32>
    %83 = arith.addf %78, %82 : vector<1x500xf32>
    %84 = vector.extract_strided_slice %15 {offsets = [9, 0], sizes = [1, 165], strides = [1, 1]} : vector<16x165xf32> to vector<1x165xf32>
    %c9 = arith.constant 9 : index
    %c0_54 = arith.constant 0 : index
    %c0_55 = arith.constant 0 : index
    %85 = vector.load %arg7[%c9, %c0_54, %c0_55] : memref<16x165x500xf32, #tpu.memory_space<vmem>>, vector<1x165x500xf32>
    %86 = vector.shape_cast %85 : vector<1x165x500xf32> to vector<165x500xf32>
    %cst_56 = arith.constant dense<0.000000e+00> : vector<1x500xf32>
    %87 = tpu.matmul %84, %86, %cst_56 {dimension_numbers = #tpu.dot_dimension_numbers<[1], [0], [0], [1], [0, 0, 1, 1], [], []>} : vector<1x165xf32>, vector<165x500xf32>, vector<1x500xf32> -> vector<1x500xf32>
    %88 = arith.addf %83, %87 : vector<1x500xf32>
    %89 = vector.extract_strided_slice %15 {offsets = [10, 0], sizes = [1, 165], strides = [1, 1]} : vector<16x165xf32> to vector<1x165xf32>
    %c10 = arith.constant 10 : index
    %c0_57 = arith.constant 0 : index
    %c0_58 = arith.constant 0 : index
    %90 = vector.load %arg7[%c10, %c0_57, %c0_58] : memref<16x165x500xf32, #tpu.memory_space<vmem>>, vector<1x165x500xf32>
    %91 = vector.shape_cast %90 : vector<1x165x500xf32> to vector<165x500xf32>
    %cst_59 = arith.constant dense<0.000000e+00> : vector<1x500xf32>
    %92 = tpu.matmul %89, %91, %cst_59 {dimension_numbers = #tpu.dot_dimension_numbers<[1], [0], [0], [1], [0, 0, 1, 1], [], []>} : vector<1x165xf32>, vector<165x500xf32>, vector<1x500xf32> -> vector<1x500xf32>
    %93 = arith.addf %88, %92 : vector<1x500xf32>
    %94 = vector.extract_strided_slice %15 {offsets = [11, 0], sizes = [1, 165], strides = [1, 1]} : vector<16x165xf32> to vector<1x165xf32>
    %c11 = arith.constant 11 : index
    %c0_60 = arith.constant 0 : index
    %c0_61 = arith.constant 0 : index
    %95 = vector.load %arg7[%c11, %c0_60, %c0_61] : memref<16x165x500xf32, #tpu.memory_space<vmem>>, vector<1x165x500xf32>
    %96 = vector.shape_cast %95 : vector<1x165x500xf32> to vector<165x500xf32>
    %cst_62 = arith.constant dense<0.000000e+00> : vector<1x500xf32>
    %97 = tpu.matmul %94, %96, %cst_62 {dimension_numbers = #tpu.dot_dimension_numbers<[1], [0], [0], [1], [0, 0, 1, 1], [], []>} : vector<1x165xf32>, vector<165x500xf32>, vector<1x500xf32> -> vector<1x500xf32>
    %98 = arith.addf %93, %97 : vector<1x500xf32>
    %99 = vector.extract_strided_slice %15 {offsets = [12, 0], sizes = [1, 165], strides = [1, 1]} : vector<16x165xf32> to vector<1x165xf32>
    %c12 = arith.constant 12 : index
    %c0_63 = arith.constant 0 : index
    %c0_64 = arith.constant 0 : index
    %100 = vector.load %arg7[%c12, %c0_63, %c0_64] : memref<16x165x500xf32, #tpu.memory_space<vmem>>, vector<1x165x500xf32>
    %101 = vector.shape_cast %100 : vector<1x165x500xf32> to vector<165x500xf32>
    %cst_65 = arith.constant dense<0.000000e+00> : vector<1x500xf32>
    %102 = tpu.matmul %99, %101, %cst_65 {dimension_numbers = #tpu.dot_dimension_numbers<[1], [0], [0], [1], [0, 0, 1, 1], [], []>} : vector<1x165xf32>, vector<165x500xf32>, vector<1x500xf32> -> vector<1x500xf32>
    %103 = arith.addf %98, %102 : vector<1x500xf32>
    %104 = vector.extract_strided_slice %15 {offsets = [13, 0], sizes = [1, 165], strides = [1, 1]} : vector<16x165xf32> to vector<1x165xf32>
    %c13 = arith.constant 13 : index
    %c0_66 = arith.constant 0 : index
    %c0_67 = arith.constant 0 : index
    %105 = vector.load %arg7[%c13, %c0_66, %c0_67] : memref<16x165x500xf32, #tpu.memory_space<vmem>>, vector<1x165x500xf32>
    %106 = vector.shape_cast %105 : vector<1x165x500xf32> to vector<165x500xf32>
    %cst_68 = arith.constant dense<0.000000e+00> : vector<1x500xf32>
    %107 = tpu.matmul %104, %106, %cst_68 {dimension_numbers = #tpu.dot_dimension_numbers<[1], [0], [0], [1], [0, 0, 1, 1], [], []>} : vector<1x165xf32>, vector<165x500xf32>, vector<1x500xf32> -> vector<1x500xf32>
    %108 = arith.addf %103, %107 : vector<1x500xf32>
    %109 = vector.extract_strided_slice %15 {offsets = [14, 0], sizes = [1, 165], strides = [1, 1]} : vector<16x165xf32> to vector<1x165xf32>
    %c14 = arith.constant 14 : index
    %c0_69 = arith.constant 0 : index
    %c0_70 = arith.constant 0 : index
    %110 = vector.load %arg7[%c14, %c0_69, %c0_70] : memref<16x165x500xf32, #tpu.memory_space<vmem>>, vector<1x165x500xf32>
    %111 = vector.shape_cast %110 : vector<1x165x500xf32> to vector<165x500xf32>
    %cst_71 = arith.constant dense<0.000000e+00> : vector<1x500xf32>
    %112 = tpu.matmul %109, %111, %cst_71 {dimension_numbers = #tpu.dot_dimension_numbers<[1], [0], [0], [1], [0, 0, 1, 1], [], []>} : vector<1x165xf32>, vector<165x500xf32>, vector<1x500xf32> -> vector<1x500xf32>
    %113 = arith.addf %108, %112 : vector<1x500xf32>
    %114 = vector.extract_strided_slice %15 {offsets = [15, 0], sizes = [1, 165], strides = [1, 1]} : vector<16x165xf32> to vector<1x165xf32>
    %c15 = arith.constant 15 : index
    %c0_72 = arith.constant 0 : index
    %c0_73 = arith.constant 0 : index
    %115 = vector.load %arg7[%c15, %c0_72, %c0_73] : memref<16x165x500xf32, #tpu.memory_space<vmem>>, vector<1x165x500xf32>
    %116 = vector.shape_cast %115 : vector<1x165x500xf32> to vector<165x500xf32>
    %cst_74 = arith.constant dense<0.000000e+00> : vector<1x500xf32>
    %117 = tpu.matmul %114, %116, %cst_74 {dimension_numbers = #tpu.dot_dimension_numbers<[1], [0], [0], [1], [0, 0, 1, 1], [], []>} : vector<1x165xf32>, vector<165x500xf32>, vector<1x500xf32> -> vector<1x500xf32>
    %118 = arith.addf %113, %117 : vector<1x500xf32>
    %cst_75 = arith.constant dense<0xFF800000> : vector<1xf32>
    %119 = vector.multi_reduction <maximumf>, %118, %cst_75 [1] : vector<1x500xf32> to vector<1xf32>
    %120 = vector.shape_cast %119 : vector<1xf32> to vector<1x1xf32>
    %121 = vector.broadcast %120 : vector<1x1xf32> to vector<1x500xf32>
    %122 = arith.subf %118, %121 : vector<1x500xf32>
    %123 = math.exp %122 : vector<1x500xf32>
    %cst_76 = arith.constant dense<0.000000e+00> : vector<1xf32>
    %124 = vector.multi_reduction <add>, %123, %cst_76 [1] : vector<1x500xf32> to vector<1xf32>
    %125 = vector.shape_cast %124 : vector<1xf32> to vector<1x1xf32>
    %126 = tpu.reciprocal %125 {approx = true} : vector<1x1xf32> -> vector<1x1xf32>
    %127 = vector.broadcast %126 : vector<1x1xf32> to vector<1x500xf32>
    %128 = arith.mulf %123, %127 : vector<1x500xf32>
    %c0_77 = arith.constant 0 : index
    %c0_78 = arith.constant 0 : index
    %129 = vector.load %arg10[%c0_77, %c0_78] : memref<500x5xf32, #tpu.memory_space<vmem>>, vector<500x5xf32>
    %cst_79 = arith.constant dense<0.000000e+00> : vector<1x5xf32>
    %130 = tpu.matmul %128, %129, %cst_79 {dimension_numbers = #tpu.dot_dimension_numbers<[1], [0], [0], [1], [0, 0, 1, 1], [], []>} : vector<1x500xf32>, vector<500x5xf32>, vector<1x5xf32> -> vector<1x5xf32>
    %c0_80 = arith.constant 0 : index
    %c0_81 = arith.constant 0 : index
    %131 = vector.load %arg11[%c0_80, %c0_81] : memref<1x5xf32, #tpu.memory_space<vmem>>, vector<1x5xf32>
    %132 = arith.addf %130, %131 : vector<1x5xf32>
    %c0_82 = arith.constant 0 : index
    %c0_83 = arith.constant 0 : index
    %c0_84 = arith.constant 0 : index
    %133 = vector.load %arg12[%c0_82, %c0_83, %c0_84] : memref<1x1x5xf32, #tpu.memory_space<vmem>>, vector<1x1x5xf32>
    %134 = vector.shape_cast %133 : vector<1x1x5xf32> to vector<1x5xf32>
    %135 = vector.shape_cast %132 : vector<1x5xf32> to vector<1x1x5xf32>
    tpu.vector_store %arg12[%c0_82, %c0_83, %c0_84], %135 {strides = array<i32>} : memref<1x1x5xf32, #tpu.memory_space<vmem>>, vector<1x1x5xf32>,
    return
  }
  func.func @transform_0(%arg0: i32) -> (i32, i32, i32) {
    %c0_i32 = arith.constant 0 : i32
    %c0_i32_0 = arith.constant 0 : i32
    %c0_i32_1 = arith.constant 0 : i32
    return %arg0, %c0_i32, %c0_i32_0 : i32, i32, i32
  }
  func.func @transform_1(%arg0: i32) -> (i32, i32, i32) {
    %c0_i32 = arith.constant 0 : i32
    %c0_i32_0 = arith.constant 0 : i32
    %c0_i32_1 = arith.constant 0 : i32
    return %arg0, %c0_i32, %c0_i32_0 : i32, i32, i32
  }
  func.func @transform_2(%arg0: i32) -> (i32, i32) {
    %c0_i32 = arith.constant 0 : i32
    %c0_i32_0 = arith.constant 0 : i32
    %c0_i32_1 = arith.constant 0 : i32
    return %c0_i32, %c0_i32_0 : i32, i32
  }
  func.func @transform_3(%arg0: i32) -> (i32, i32) {
    %c0_i32 = arith.constant 0 : i32
    %c0_i32_0 = arith.constant 0 : i32
    %c0_i32_1 = arith.constant 0 : i32
    return %c0_i32, %c0_i32_0 : i32, i32
  }
  func.func @transform_4(%arg0: i32) -> (i32, i32) {
    %c0_i32 = arith.constant 0 : i32
    %c0_i32_0 = arith.constant 0 : i32
    %c0_i32_1 = arith.constant 0 : i32
    return %c0_i32, %c0_i32_0 : i32, i32
  }
  func.func @transform_5(%arg0: i32) -> (i32, i32) {
    %c0_i32 = arith.constant 0 : i32
    %c0_i32_0 = arith.constant 0 : i32
    %c0_i32_1 = arith.constant 0 : i32
    return %c0_i32, %c0_i32_0 : i32, i32
  }
  func.func @transform_6(%arg0: i32) -> (i32, i32, i32) {
    %c0_i32 = arith.constant 0 : i32
    %c0_i32_0 = arith.constant 0 : i32
    %c0_i32_1 = arith.constant 0 : i32
    %c0_i32_2 = arith.constant 0 : i32
    return %c0_i32, %c0_i32_0, %c0_i32_1 : i32, i32, i32
  }
  func.func @transform_7(%arg0: i32) -> (i32, i32) {
    %c0_i32 = arith.constant 0 : i32
    %c0_i32_0 = arith.constant 0 : i32
    %c0_i32_1 = arith.constant 0 : i32
    return %c0_i32, %c0_i32_0 : i32, i32
  }
  func.func @transform_8(%arg0: i32) -> (i32, i32) {
    %c0_i32 = arith.constant 0 : i32
    %c0_i32_0 = arith.constant 0 : i32
    %c0_i32_1 = arith.constant 0 : i32
    return %c0_i32, %c0_i32_0 : i32, i32
  }
  func.func @transform_9(%arg0: i32) -> (i32, i32) {
    %c0_i32 = arith.constant 0 : i32
    %c0_i32_0 = arith.constant 0 : i32
    %c0_i32_1 = arith.constant 0 : i32
    return %c0_i32, %c0_i32_0 : i32, i32
  }
  func.func @transform_10(%arg0: i32) -> (i32, i32) {
    %c0_i32 = arith.constant 0 : i32
    %c0_i32_0 = arith.constant 0 : i32
    %c0_i32_1 = arith.constant 0 : i32
    return %c0_i32, %c0_i32_0 : i32, i32
  }
  func.func @transform_11(%arg0: i32) -> (i32, i32, i32) {
    %c0_i32 = arith.constant 0 : i32
    %c0_i32_0 = arith.constant 0 : i32
    %c0_i32_1 = arith.constant 0 : i32
    return %arg0, %c0_i32, %c0_i32_0 : i32, i32, i32
  }
}

</mosaic_0001>

<bundles_post_ra>
// kernel: net_forward.1
= control target key start
LH: loop header
LB: loop body
LE: loop exit
PB: predicated region body
PF: predicated region fallthrough
CT: control target
= control target key end

     0   :  { %16 = vsyncpa [#allocation3], 0  ;;  %s13320_s0 = inlined_call_operand.vmem [shape: f32[2,49,165], index: 0, kind: input, shape index: {}]   ;;  %s13321_s1 = inlined_call_operand.vmem [shape: f32[2,1,4], index: 1, kind: input, shape index: {}]   ;;  %s13322_s2 = inlined_call_operand.vmem [shape: f32[72,49], index: 2, kind: input, shape index: {}]   ;;  %s13323_s3 = inlined_call_operand.vmem [shape: f32[72,1], index: 3, kind: input, shape index: {}]   ;;  %s13324_s4 = inlined_call_operand.vmem [shape: f32[16,72], index: 4, kind: input, shape index: {}]   ;;  %s13325_s5 = inlined_call_operand.vmem [shape: f32[16,1], index: 5, kind: input, shape index: {}]   ;;  %s13326_s6 = inlined_call_operand.vmem [shape: f32[16,165,500], index: 6, kind: input, shape index: {}]   ;;  %s13327_s7 = inlined_call_operand.vmem [shape: f32[4,500], index: 7, kind: input, shape index: {}]   ;;  %s13328_s8 = inlined_call_operand.vmem [shape: f32[1,500], index: 8, kind: input, shape index: {}]   ;;  %s13329_s9 = inlined_call_operand.vmem [shape: f32[500,5], index: 9, kind: input, shape index: {}]   ;;  %s13330_s10 = inlined_call_operand.vmem [shape: f32[1,5], index: 10, kind: input, shape index: {}]   ;;  %s13331_s11 = inlined_call_operand.hbm [shape: f32[2,1,5], index: 11, kind: output, shape index: {}]  }
   0x1   :  { %18 = vsyncpa [#allocation3 + $0x1], 0  ;;  %s8561_s17 = smov 0   ;;  %s8563_s18 = smov 0  }
   0x2   :  { %s8565_s19 = smov 0   ;;  %s8567_s20 = smov 0  }
   0x3 LB: > { %13333 = sst [smem:[#allocation5_spill]] %s8487_s19  ;;  %s8582_s21 = sadd.s32 4294967295, %s8491_s20   ;;  %s8491_s20 = sphi %s8567_s20, %s13341_s20   ;;  %s8487_s19 = sphi %s8565_s19, %s13338_s19   ;;  %s8483_s18 = sphi %s8563_s18, %s13340_s18   ;;  %s8479_s17 = sphi %s8561_s17, %s13339_s17  }
   0x4   : > { %s5570_s22 = sadd.s32 4294967294, %s8491_s20   ;;  %s8586_s23 = sadd.s32 1, %s8491_s20  }
   0x5   : > { %s272_s24 = sadd.s32 1, %s8487_s19  ;;  %s269_s25 = ssub.s32 %s8491_s20, %s8586_s23 }
   0x6   : > { %p282_p0 = scmp.ne.s32.totalorder %s8487_s19, %s8483_s18  ;;  %p270_p1 = scmp.eq.s32.totalorder %s269_s25, 0 }
   0x7   : > { %p283_p2 = scmp.eq.s32.totalorder %s8582_s21, 1  ;;  %p288_p3 = scmp.ne.s32.totalorder %s8483_s18, %s8479_s17 }
   0x8   : > { %p289_p4 = scmp.eq.s32.totalorder %s5570_s22, 1  ;;  %p5573_p7 = scmp.ge.s32.totalorder %s8491_s20, 1 }
   0x9   : > { %s8597_s26 = scalar_select %p270_p1, %s8487_s19, %s272_s24  }
   0xa   : > { %p8599_p5 = por %p283_p2, %p282_p0  ;;  %p8603_p6 = por %p289_p4, %p288_p3 }
   0xb   : > { %13334 = sst [smem:[#allocation6_spill]] %s8597_s26  ;;  %p348_p8 = scmp.lt.s32.totalorder %s8491_s20, 3 }
   0xd   : > { %p349_p9 = pnand %p5573_p7, %p348_p8 }
   0xe   : > { %p390_p10 = scmp.lt.s32.totalorder (!%p349_p9), %s8582_s21, 1  ;;  %v8493_v0 = vmov (!%p349_p9), 0.0   ;;  %v8494_v1 = vmov (!%p349_p9), 0   ;;  %v423_v2 = vld [vmem:[%s13323_s3 + $0x10] sm:$0xff] (!%p349_p9)  ;;  %v421_v3 = vld [vmem:[%s13323_s3] sm:$0xff] (!%p349_p9)  ;;  %v424_v4 = vld [vmem:[%s13323_s3 + $0x18] sm:$0xff] (!%p349_p9) }
   0xf   : > { %352 = sbr.rel (%p349_p9) target bundleno = 1951 (0x79f), region = 64  ;;  %574 = vmatprep.mubr.f32.mxu0 (!%p349_p9), %v8493_v0  ;;  %732 = vmatprep.mubr.f32.mxu1 (!%p349_p9), %v8493_v0  ;;  %v422_v5 = vld [vmem:[%s13323_s3 + $0x8] sm:$0xff] (!%p349_p9)  ;;  %v425_v20 = vld [vmem:[%s13323_s3 + $0x20] sm:$0xff] (!%p349_p9)  ;;  %v428_v25 = vld [vmem:[%s13323_s3 + $0x38] sm:$0xff] (!%p349_p9)  ;;  %vm503_vm0 = vcmask (!%p349_p9), 1040384   ;;  %vm475_vm1 = vcmask (!%p349_p9), 400384  }
  0x10   : > { %8420 = vset.pattern.permute.xlu1 (!%p349_p9), %v8494_v1  ;;  %8419 = vset.pattern.permute.xlu0 (!%p349_p9), %v8494_v1  ;;  %v426_v9 = vld [vmem:[%s13323_s3 + $0x28] sm:$0xff] (!%p349_p9)  ;;  %v427_v26 = vld [vmem:[%s13323_s3 + $0x30] sm:$0xff] (!%p349_p9)  ;;  %v649_v29 = vld [vmem:[%s13325_s5] sm:$0xff] (!%p349_p9)  ;;  %v8495_v36 = vmov (!%p349_p9), 2   ;;  %v8496_v38 = vmov (!%p349_p9), 1   ;;  %v8497_v40 = vmov (!%p349_p9), 3  }
  0x11   : > { %442 = vperm.xlu1 (!%p349_p9), %8420, %v423_v2   ;;  %432 = vperm.xlu0 (!%p349_p9), %8419, %v421_v3   ;;  %v429_v30 = vld [vmem:[%s13323_s3 + $0x40] sm:$0xff] (!%p349_p9)  ;;  %v650_v34 = vld [vmem:[%s13325_s5 + $0x8] sm:$0xff] (!%p349_p9)  ;;  %v414_v37 = vld [vmem:[%s13322_s2 + $0x10] sm:$0xff] (!%p349_p9)  ;;  %vm661_vm2 = vcmask (!%p349_p9), 588800   ;;  %vm887_vm3 = vcmask (!%p349_p9), 1044480   ;;  %vm883_vm4 = vcmask (!%p349_p9), 302080  }
  0x12   : > { %v412_v32 = vld [vmem:[%s13322_s2] sm:$0xff] (!%p349_p9)  ;;  %v413_v35 = vld [vmem:[%s13322_s2 + $0x8] sm:$0xff] (!%p349_p9)  ;;  %v415_v39 = vld [vmem:[%s13322_s2 + $0x18] sm:$0xff] (!%p349_p9)  ;;  %vm5206_vm5 = vcmask (!%p349_p9), 942080   ;;  %vm5347_vm6 = vcmask (!%p349_p9), 1043456   ;;  %vm5344_vm7 = vcmask (!%p349_p9), 949248  }
  0x13   : > { %v416_v41 = vld [vmem:[%s13322_s2 + $0x20] sm:$0xff] (!%p349_p9)  ;;  %v417_v42 = vld [vmem:[%s13322_s2 + $0x28] sm:$0xff] (!%p349_p9)  ;;  %v418_v43 = vld [vmem:[%s13322_s2 + $0x30] sm:$0xff] (!%p349_p9)  ;;  %s6949_s12 = sshll.u32 (!%p349_p9), %s8582_s21, 4  ;;  %vm5491_vm8 = vcmask (!%p349_p9), 32768  }
  0x14   : > { %v419_v44 = vld [vmem:[%s13322_s2 + $0x38] sm:$0xff] (!%p349_p9)  ;;  %v420_v45 = vld [vmem:[%s13322_s2 + $0x40] sm:$0xff] (!%p349_p9)  ;;  %v800_v46 = vld [vmem:[%s13326_s6 + $0x8] sm:$0xff] (!%p349_p9) }
  0x15   : > { %447 = vperm.xlu1 (!%p349_p9), %8420, %v424_v4   ;;  %437 = vperm.xlu0 (!%p349_p9), %8419, %v422_v5   ;;  %v804_v47 = vld [vmem:[%s13326_s6 + $0x28] sm:$0xff] (!%p349_p9)  ;;  %v799_v48 = vld [vmem:[%s13326_s6] sm:$0xff] (!%p349_p9) }
  0x16   : > { %s8613_s29 = scalar_select %p390_p10, %s8582_s21, 1  ;;  %v7015_v49 = vpack.c.bf16 %v804_v47, %v800_v46  ;;  %v803_v50 = vld [vmem:[%s13326_s6 + $0x20] sm:$0xff]  ;;  %v808_v52 = vld [vmem:[%s13326_s6 + $0x48] sm:$0xff] }
  0x17   : > { %v7017_v51 = vpack.c.bf16 %v803_v50, %v799_v48  ;;  %v812_v53 = vld [vmem:[%s13326_s6 + $0x68] sm:$0xff]  ;;  %v807_v54 = vld [vmem:[%s13326_s6 + $0x40] sm:$0xff]  ;;  %s8500_s21 = smov [#allocation2]  }
  0x18   : > { %s8372_s15 = smul.u32 112, %s8613_s29  ;;  %s397_s14 = scalar_lea.vmem %s13321_s1, %s8613_s29  ;;  %v811_v55 = vld [vmem:[%s13326_s6 + $0x60] sm:$0xff]  ;;  %v7019_v56 = vpack.c.bf16 %v812_v53, %v808_v52  ;;  %v816_v58 = vld [vmem:[%s13326_s6 + $0x88] sm:$0xff] }
  0x19   : > { %457 = vperm.xlu1 %8420, %v426_v9   ;;  %452 = vperm.xlu0 %8419, %v425_v20   ;;  %v749_v33 = vld [vmem:[%s397_s14] sm:$0x1]  ;;  %v7021_v57 = vpack.c.bf16 %v811_v55, %v807_v54  ;;  %v820_v59 = vld [vmem:[%s13326_s6 + $0xa8] sm:$0xff]  ;;  %s388_s29 = sand.u32 1, %s8483_s18   ;;  %s8433_s24 = sshll.u32 %s8500_s21, 4  ;;  %s8434_s24 = int_to_ptr.vmem [resolvable:$false] %s8433_s24 }
  0x1a   : > { %s8631_s30 = scalar_lea.vmem %s13320_s0, %s8372_s15  ;;  %v7023_v60 = vpack.c.bf16 %v820_v59, %v816_v58  ;;  %v815_v61 = vld [vmem:[%s13326_s6 + $0x80] sm:$0xff]  ;;  %v824_v1 = vld [vmem:[%s13326_s6 + $0xc8] sm:$0xff]  ;;  %s389_s13 = scalar_lea.vmem [#allocation2], %s388_s29 }
  0x1b   : > { %v399_v6 = vld [vmem:[%s8631_s30 + $0x8] sm:$0xff]  ;;  %v401_v7 = vld [vmem:[%s8631_s30 + $0x18] sm:$0xff]  ;;  %v398_v8 = vld [vmem:[%s8631_s30] sm:$0xff]  ;;  %s5506_s19 = sshll.u32 %s389_s13, 4  ;;  %s13278_s15 = scalar_lea.hbm %s13331_s11, %s6949_s12  ;;  %s13280_s19 = int_to_ptr.vmem [resolvable:$true] %s5506_s19 }
  0x1c   : > { %v6987_v10 = vpack.c.bf16 %v401_v7, %v399_v6  ;;  %v400_v11 = vld [vmem:[%s8631_s30 + $0x10] sm:$0xff]  ;;  %v403_v12 = vld [vmem:[%s8631_s30 + $0x28] sm:$0xff]  ;;  %v405_v13 = vld [vmem:[%s8631_s30 + $0x38] sm:$0xff]  ;;  %s5494_s16 = scalar_lea.sflag [#allocation3], %s388_s29  ;;  %s8429_s22 = scalar_lea.vmem %s13280_s19, 16 }
  0x1d   : > { %v6989_v14 = vpack.c.bf16 %v400_v11, %v398_v8  ;;  %v6991_v15 = vpack.c.bf16 %v405_v13, %v403_v12  ;;  %v402_v16 = vld [vmem:[%s8631_s30 + $0x20] sm:$0xff]  ;;  %v404_v17 = vld [vmem:[%s8631_s30 + $0x30] sm:$0xff]  ;;  %v407_v18 = vld [vmem:[%s8631_s30 + $0x48] sm:$0xff]  ;;  %467 = vperm.xlu1 %8420, %v428_v25   ;;  %462 = vperm.xlu0 %8419, %v427_v26   ;;  %p8430_p11 = scmp.ne.s32.totalorder %s13280_s19, %s8429_s22  ;;  %p8436_p0 = scmp.lt.s32.totalorder %s13280_s19, %s8434_s24 }
  0x1e   : > { %6988 = vmatprep.subr.bf16.mxu0 %v6987_v10  ;;  %v409_v19 = vld [vmem:[%s8631_s30 + $0x58] sm:$0xff]  ;;  %v6993_v21 = vpack.c.bf16 %v404_v17, %v402_v16  ;;  %v406_v23 = vld [vmem:[%s8631_s30 + $0x40] sm:$0xff]  ;;  %v408_v24 = vld [vmem:[%s8631_s30 + $0x50] sm:$0xff] }
  0x1f   : > { %6990 = vmatpush1.bf16.msra.mxu0 %v6989_v14  ;;  %v6995_v22 = vpack.c.bf16 %v409_v19, %v407_v18  ;;  %v6997_v27 = vpack.c.bf16 %v408_v24, %v406_v23  ;;  %v411_v28 = vld [vmem:[%s8631_s30 + $0x68] sm:$0x1]  ;;  %v410_v31 = vld [vmem:[%s8631_s30 + $0x60] sm:$0x1]  ;;  %p8431_p12 = pnand %p8430_p11, %p8599_p5  ;;  %s8435_s30 = scalar_lea.vmem %s8434_s24, 32 }
  0x20   : > { %6992 = vmatprep.subr.bf16.mxu0 %v6991_v15  ;;  %v819_v62 = vld [vmem:[%s13326_s6 + $0xa0] sm:$0xff]  ;;  %v828_v2 = vld [vmem:[%s13326_s6 + $0xe8] sm:$0xff]  ;;  %p8437_p1 = scmp.lt.s32.totalorder %s8435_s30, %s8429_s22 }
  0x21   : > { %653 = vperm.xlu1 %8420, %v649_v29   ;;  %472 = vperm.xlu0 %8419, %v429_v30   ;;  %v7025_v63 = vpack.c.bf16 %v819_v62, %v815_v61  ;;  %v7027_v3 = vpack.c.bf16 %v828_v2, %v824_v1  ;;  %v823_v4 = vld [vmem:[%s13326_s6 + $0xc0] sm:$0xff]  ;;  %v832_v6 = vld [vmem:[%s13326_s6 + $0x108] sm:$0xff]  ;;  %p8432_p13 = pneg %p8431_p12 }
  0x22   : > { %v827_v5 = vld [vmem:[%s13326_s6 + $0xe0] sm:$0xff]  ;;  %v836_v7 = vld [vmem:[%s13326_s6 + $0x128] sm:$0xff]  ;;  %p8438_p2 = por %p8437_p1, %p8436_p0 }
  0x23   : > { %6994 = vmatpush1.bf16.msra.mxu0 %v6993_v21  ;;  %v7029_v8 = vpack.c.bf16 %v827_v5, %v823_v4  ;;  %v7031_v9 = vpack.c.bf16 %v836_v7, %v832_v6  ;;  %v831_v10 = vld [vmem:[%s13326_s6 + $0x100] sm:$0xff]  ;;  %v840_v12 = vld [vmem:[%s13326_s6 + $0x148] sm:$0xff] }
  0x24   : > { %6996 = vmatprep.subr.bf16.mxu0 %v6995_v22  ;;  %v835_v11 = vld [vmem:[%s13326_s6 + $0x120] sm:$0xff]  ;;  %v844_v13 = vld [vmem:[%s13326_s6 + $0x168] sm:$0xff]  ;;  %p8439_p3 = pnand %p8438_p2, %p8432_p13 }
  0x25   : > { %754 = vperm.xlu1 %8420, %v749_v33   ;;  %658 = vperm.xlu0 %8419, %v650_v34   ;;  %v7033_v14 = vpack.c.bf16 %v835_v11, %v831_v10  ;;  %v7035_v15 = vpack.c.bf16 %v844_v13, %v840_v12  ;;  %v839_v16 = vld [vmem:[%s13326_s6 + $0x140] sm:$0xff]  ;;  %v848_v18 = vld [vmem:[%s13326_s6 + $0x188] sm:$0xff] }
  0x26   : > { %v843_v17 = vld [vmem:[%s13326_s6 + $0x160] sm:$0xff]  ;;  %v852_v19 = vld [vmem:[%s13326_s6 + $0x1a8] sm:$0xff] }
  0x27   : > { %6998 = vmatpush1.bf16.msra.mxu0 %v6997_v27  ;;  %v7037_v20 = vpack.c.bf16 %v843_v17, %v839_v16  ;;  %v7039_v21 = vpack.c.bf16 %v852_v19, %v848_v18  ;;  %v847_v22 = vld [vmem:[%s13326_s6 + $0x180] sm:$0xff]  ;;  %v856_v24 = vld [vmem:[%s13326_s6 + $0x1c8] sm:$0xff] }
  0x28   : > { %5575 = vmatprep.subr.msk.mxu0 %vm503_vm0, %v411_v28  ;;  %v851_v23 = vld [vmem:[%s13326_s6 + $0x1a0] sm:$0xff]  ;;  %v860_v25 = vld [vmem:[%s13326_s6 + $0x1e8] sm:$0xff] }
  0x29   : > { %8422 = vset.pattern.permute.xlu1 %v8495_v36  ;;  %8421 = vset.pattern.permute.xlu0 %v8496_v38  ;;  %v7041_v26 = vpack.c.bf16 %v851_v23, %v847_v22  ;;  %v7043_v27 = vpack.c.bf16 %v860_v25, %v856_v24  ;;  %v855_v28 = vld [vmem:[%s13326_s6 + $0x1c0] sm:$0xff]  ;;  %v864_v30 = vld [vmem:[%s13326_s6 + $0x208] sm:$0xff] }
  0x2a   : > { %778 = vperm.xlu1 %8422, %v749_v33   ;;  %766 = vperm.xlu0 %8421, %v749_v33   ;;  %v859_v29 = vld [vmem:[%s13326_s6 + $0x1e0] sm:$0xff]  ;;  %v872_v36 = vld [vmem:[%s13326_s6 + $0x248] sm:$0xff] }
  0x2b   : > { %5576 = vmatpush1.msk.msra.mxu0 %vm503_vm0, %v410_v31  ;;  %v868_v31 = vld [vmem:[%s13326_s6 + $0x228] sm:$0xff]  ;;  %v863_v34 = vld [vmem:[%s13326_s6 + $0x200] sm:$0xff] }
  0x2c   : > { %5577 = vmatmul.mubr.msk.f32.vlgmr.msra.gmra.mrb[0].mxu0 %vm475_vm1, %v412_v32  ;;  %7016 = vmatprep.subr.bf16.mxu0 %v7015_v49  ;;  %v7045_v32 = vpack.c.bf16 %v859_v29, %v855_v28 }
  0x2d   : > { %580 = vmatprep.mubr.f32.mxu0 %v8493_v0  ;;  %7018 = vmatpush1.bf16.msra.mxu0 %v7017_v51 }
  0x2e   : > { %8423 = vset.pattern.permute.xlu1 %v8497_v40  ;;  %8424 = vset.pattern.permute.xlu0 %v8497_v40 }
  0x2f   : > { %790 = vperm.xlu1 %8423, %v749_v33   ;;  %7020 = vmatprep.subr.bf16.mxu0 %v7019_v56  ;;  %v7047_v33 = vpack.c.bf16 %v868_v31, %v864_v30 }
  0x30   : > { %5578 = vmatmul.mubr.msk.f32.gmra.mrb[2].mxu0 %vm475_vm1, %v413_v35  ;;  %v867_v35 = vld [vmem:[%s13326_s6 + $0x220] sm:$0xff] }
  0x31   : > { %586 = vmatprep.mubr.f32.mxu0 %v8493_v0  ;;  %7022 = vmatpush1.bf16.msra.mxu0 %v7021_v57  ;;  %v7049_v38 = vpack.c.bf16 %v867_v35, %v863_v34 }
  0x32   : > { %7024 = vmatprep.subr.bf16.mxu0 %v7023_v60 }
  0x34   : > { %5579 = vmatmul.mubr.msk.f32.gmra.mrb[4].mxu0 %vm475_vm1, %v414_v37  ;;  %v876_v37 = vld [vmem:[%s13326_s6 + $0x268] sm:$0xff] }
  0x35   : > { %592 = vmatprep.mubr.f32.mxu0 %v8493_v0  ;;  %7026 = vmatpush1.bf16.msra.mxu0 %v7025_v63 }
  0x36   : > { %7028 = vmatprep.subr.bf16.mxu0 %v7027_v3 }
  0x38   : > { %5580 = vmatmul.mubr.msk.f32.gmra.mrb[6].mxu0 %vm475_vm1, %v415_v39  ;;  %v7051_v39 = vpack.c.bf16 %v876_v37, %v872_v36 }
  0x39   : > { %598 = vmatprep.mubr.f32.mxu0 %v8493_v0  ;;  %7030 = vmatpush1.bf16.msra.mxu0 %v7029_v8 }
  0x3a   : > { %7032 = vmatprep.subr.bf16.mxu0 %v7031_v9 }
  0x3c   : > { %5581 = vmatmul.mubr.msk.f32.gmra.mrb[8].mxu0 %vm475_vm1, %v416_v41 }
  0x3d   : > { %604 = vmatprep.mubr.f32.mxu0 %v8493_v0  ;;  %7034 = vmatpush1.bf16.msra.mxu0 %v7033_v14 }
  0x3e   : > { %7036 = vmatprep.subr.bf16.mxu0 %v7035_v15 }
  0x40   : > { %5582 = vmatmul.mubr.msk.f32.gmra.mrb[10].mxu0 %vm475_vm1, %v417_v42 }
  0x41   : > { %610 = vmatprep.mubr.f32.mxu0 %v8493_v0  ;;  %7038 = vmatpush1.bf16.msra.mxu0 %v7037_v20 }
  0x42   : > { %7040 = vmatprep.subr.bf16.mxu0 %v7039_v21 }
  0x44   : > { %5583 = vmatmul.mubr.msk.f32.gmra.mrb[12].mxu0 %vm475_vm1, %v418_v43 }
  0x45   : > { %616 = vmatprep.mubr.f32.mxu0 %v8493_v0  ;;  %7042 = vmatpush1.bf16.msra.mxu0 %v7041_v26 }
  0x46   : > { %7044 = vmatprep.subr.bf16.mxu0 %v7043_v27 }
  0x48   : > { %5584 = vmatmul.mubr.msk.f32.gmra.mrb[14].mxu0 %vm475_vm1, %v419_v44 }
  0x49   : > { %622 = vmatprep.mubr.f32.mxu0 %v8493_v0  ;;  %7046 = vmatpush1.bf16.msra.mxu0 %v7045_v32 }
  0x4a   : > { %7048 = vmatprep.subr.bf16.mxu0 %v7047_v33 }
  0x4c   : > { %5585 = vmatmul.mubr.msk.f32.gmra.mrb[16].mxu0 %vm475_vm1, %v420_v45 }
  0x4d   : > { %7050 = vmatpush1.bf16.msra.mxu0 %v7049_v38 }
  0x4e   : > { %7052 = vmatprep.subr.bf16.mxu0 %v7051_v39 }
  0x90   : > { %v433_v40 = vpop.permute.xlu0 %432  ;;  %v443_v49 = vpop.permute.xlu1 %442 }
  0x94   : > { %v438_v44 = vpop.permute.xlu0 %437  ;;  %v448_v60 = vpop.permute.xlu1 %447 }
  0x98   : > { %v453_v10 = vpop.permute.xlu0 %452  ;;  %v458_v13 = vpop.permute.xlu1 %457 }
  0x9c   : > { %v463_v26 = vpop.permute.xlu0 %462  ;;  %v468_v29 = vpop.permute.xlu1 %467 }
  0xff   : > { %v576_v41 = vpop.f32.mrb[0].mxu0 }
 0x100   : > { %v578_v42 = vpop.f32.mrb[1].mxu0  ;;  %v577_v43 = vadd.f32 %v576_v41, %v433_v40 }
 0x101   : > { %v579_v45 = vadd.f32 %v578_v42, %v433_v40  ;;  %v473_v40 = vpop.permute.xlu0 %472 }
 0x102   : > { %v629_v51 = vmax.f32 %v577_v43, 0.0 }
 0x103   : > { %v582_v46 = vpop.f32.mrb[2].mxu0  ;;  %v630_v53 = vmax.f32 %v579_v45, 0.0 }
 0x104   : > { %v583_v47 = vadd.f32 %v582_v46, %v438_v44  ;;  %v584_v48 = vpop.f32.mrb[3].mxu0  ;;  %v802_v46 = vld [vmem:[%s13326_s6 + $0x18] sm:$0xff] }
 0x105   : > { %v585_v50 = vadd.f32 %v584_v48, %v438_v44 }
 0x106   : > { %v631_v52 = vmax.f32 %v583_v47, 0.0  ;;  %v806_v47 = vld [vmem:[%s13326_s6 + $0x38] sm:$0xff] }
 0x107   : > { %v632_v54 = vmax.f32 %v585_v50, 0.0  ;;  %v588_v55 = vpop.f32.mrb[4].mxu0  ;;  %v805_v50 = vld [vmem:[%s13326_s6 + $0x30] sm:$0xff] }
 0x108   : > { %v590_v56 = vpop.f32.mrb[5].mxu0  ;;  %v7001_v57 = vpack.c.bf16 %v631_v52, %v629_v51  ;;  %v589_v59 = vadd.f32 %v588_v55, %v443_v49  ;;  %v810_v51 = vld [vmem:[%s13326_s6 + $0x58] sm:$0xff]  ;;  %v647_v55 = vld [vmem:[%s13324_s4] sm:$0xff] }
 0x109   : > { %v6999_v58 = vpack.c.bf16 %v632_v54, %v630_v53  ;;  %v591_v61 = vadd.f32 %v590_v56, %v443_v49  ;;  %v801_v49 = vld [vmem:[%s13326_s6 + $0x10] sm:$0xff]  ;;  %v814_v52 = vld [vmem:[%s13326_s6 + $0x78] sm:$0xff]  ;;  %v7055_v53 = vpack.c.bf16 %v806_v47, %v802_v46 }
 0x10a   : > { %v633_v3 = vmax.f32 %v589_v59, 0.0  ;;  %v7057_v56 = vpack.c.bf16 %v805_v50, %v801_v49  ;;  %v813_v59 = vld [vmem:[%s13326_s6 + $0x70] sm:$0xff]  ;;  %v880_v50 = vld [vmem:[%s13326_s6 + $0x288] sm:$0x1f] }
 0x10b   : > { %v594_v62 = vpop.f32.mrb[6].mxu0  ;;  %7000 = vmatprep.subr.bf16.mxu1 %v6999_v58  ;;  %v634_v5 = vmax.f32 %v591_v61, 0.0  ;;  %v809_v58 = vld [vmem:[%s13326_s6 + $0x50] sm:$0xff]  ;;  %v822_v61 = vld [vmem:[%s13326_s6 + $0xb8] sm:$0xff] }
 0x10c   : > { %v595_v63 = vadd.f32 %v594_v62, %v448_v60  ;;  %v596_v1 = vpop.f32.mrb[7].mxu0  ;;  %7002 = vmatpush1.bf16.msra.mxu1 %v7001_v57  ;;  %v7059_v57 = vpack.c.bf16 %v814_v52, %v810_v51  ;;  %v648_v62 = vld [vmem:[%s13324_s4 + $0x8] sm:$0xff]  ;;  %v873_v46 = vld [vmem:[%s13326_s6 + $0x250] sm:$0xff]  ;;  %v882_v51 = vld [vmem:[%s13326_s6 + $0x298] sm:$0x1f] }
 0x10d   : > { %v597_v2 = vadd.f32 %v596_v1, %v448_v60  ;;  %v818_v60 = vld [vmem:[%s13326_s6 + $0x98] sm:$0xff]  ;;  %v5598_v52 = vld [vmem:[%s13326_s6 + $0x2a8] sm:$0xff] }
 0x10e   : > { %v635_v4 = vmax.f32 %v595_v63, 0.0  ;;  %v7061_v63 = vpack.c.bf16 %v813_v59, %v809_v58  ;;  %v7063_v1 = vpack.c.bf16 %v822_v61, %v818_v60  ;;  %v5604_v58 = vld [vmem:[%s13326_s6 + $0x2d8] sm:$0xff]  ;;  %v654_v60 = vpop.permute.xlu1 %653 }
 0x10f   : > { %v636_v6 = vmax.f32 %v597_v2, 0.0  ;;  %v600_v7 = vpop.f32.mrb[8].mxu0  ;;  %v817_v2 = vld [vmem:[%s13326_s6 + $0x90] sm:$0xff] }
 0x110   : > { %v7005_v8 = vpack.c.bf16 %v635_v4, %v633_v3  ;;  %v602_v9 = vpop.f32.mrb[9].mxu0  ;;  %v601_v12 = vadd.f32 %v600_v7, %v453_v10  ;;  %v821_v3 = vld [vmem:[%s13326_s6 + $0xb0] sm:$0xff]  ;;  %v826_v4 = vld [vmem:[%s13326_s6 + $0xd8] sm:$0xff] }
 0x111   : > { %v7003_v11 = vpack.c.bf16 %v636_v6, %v634_v5  ;;  %v603_v14 = vadd.f32 %v602_v9, %v453_v10  ;;  %v830_v5 = vld [vmem:[%s13326_s6 + $0xf8] sm:$0xff]  ;;  %v7065_v6 = vpack.c.bf16 %v821_v3, %v817_v2  ;;  %v829_v9 = vld [vmem:[%s13326_s6 + $0xf0] sm:$0xff]  ;;  %v5601_v2 = vld [vmem:[%s13326_s6 + $0x2c0] sm:$0xff] }
 0x112   : > { %v637_v19 = vmax.f32 %v601_v12, 0.0  ;;  %v7067_v7 = vpack.c.bf16 %v830_v5, %v826_v4  ;;  %v834_v10 = vld [vmem:[%s13326_s6 + $0x118] sm:$0xff]  ;;  %v5599_v3 = vld [vmem:[%s13326_s6 + $0x2b0] sm:$0xff] }
 0x113   : > { %v606_v15 = vpop.f32.mrb[10].mxu0  ;;  %7004 = vmatprep.subr.bf16.mxu1 %v7003_v11  ;;  %v638_v21 = vmax.f32 %v603_v14, 0.0  ;;  %v838_v11 = vld [vmem:[%s13326_s6 + $0x138] sm:$0xff]  ;;  %v833_v14 = vld [vmem:[%s13326_s6 + $0x110] sm:$0xff] }
 0x114   : > { %v607_v16 = vadd.f32 %v606_v15, %v458_v13  ;;  %v608_v17 = vpop.f32.mrb[11].mxu0  ;;  %7006 = vmatpush1.bf16.msra.mxu1 %v7005_v8  ;;  %v825_v8 = vld [vmem:[%s13326_s6 + $0xd0] sm:$0xff] }
 0x115   : > { %v609_v18 = vadd.f32 %v608_v17, %v458_v13  ;;  %v7069_v12 = vpack.c.bf16 %v829_v9, %v825_v8  ;;  %v7071_v13 = vpack.c.bf16 %v838_v11, %v834_v10  ;;  %v837_v15 = vld [vmem:[%s13326_s6 + $0x130] sm:$0xff]  ;;  %v846_v17 = vld [vmem:[%s13326_s6 + $0x178] sm:$0xff] }
 0x116   : > { %v639_v20 = vmax.f32 %v607_v16, 0.0  ;;  %v842_v16 = vld [vmem:[%s13326_s6 + $0x158] sm:$0xff]  ;;  %v5603_v4 = vld [vmem:[%s13326_s6 + $0x2d0] sm:$0xff] }
 0x117   : > { %v640_v22 = vmax.f32 %v609_v18, 0.0  ;;  %v612_v23 = vpop.f32.mrb[12].mxu0  ;;  %v7073_v18 = vpack.c.bf16 %v837_v15, %v833_v14  ;;  %v5608_v8 = vld [vmem:[%s13326_s6 + $0x2f8] sm:$0xff]  ;;  %v5605_v14 = vld [vmem:[%s13326_s6 + $0x2e0] sm:$0xff] }
 0x118   : > { %v7009_v24 = vpack.c.bf16 %v639_v20, %v637_v19  ;;  %v614_v25 = vpop.f32.mrb[13].mxu0  ;;  %v613_v28 = vadd.f32 %v612_v23, %v463_v26  ;;  %v7075_v19 = vpack.c.bf16 %v846_v17, %v842_v16  ;;  %v841_v20 = vld [vmem:[%s13326_s6 + $0x150] sm:$0xff]  ;;  %v854_v23 = vld [vmem:[%s13326_s6 + $0x1b8] sm:$0xff]  ;;  %v5609_v15 = vld [vmem:[%s13326_s6 + $0x300] sm:$0xff] }
 0x119   : > { %v7007_v27 = vpack.c.bf16 %v640_v22, %v638_v21  ;;  %v615_v30 = vadd.f32 %v614_v25, %v463_v26  ;;  %v845_v21 = vld [vmem:[%s13326_s6 + $0x170] sm:$0xff]  ;;  %v850_v22 = vld [vmem:[%s13326_s6 + $0x198] sm:$0xff] }
 0x11a   : > { %v641_v35 = vmax.f32 %v613_v28, 0.0  ;;  %v7079_v25 = vpack.c.bf16 %v854_v23, %v850_v22  ;;  %v849_v26 = vld [vmem:[%s13326_s6 + $0x190] sm:$0xff]  ;;  %v858_v28 = vld [vmem:[%s13326_s6 + $0x1d8] sm:$0xff] }
 0x11b   : > { %v618_v31 = vpop.f32.mrb[14].mxu0  ;;  %7008 = vmatprep.subr.bf16.mxu1 %v7007_v27  ;;  %v642_v37 = vmax.f32 %v615_v30, 0.0  ;;  %v853_v27 = vld [vmem:[%s13326_s6 + $0x1b0] sm:$0xff]  ;;  %v5612_v9 = vld [vmem:[%s13326_s6 + $0x318] sm:$0xff] }
 0x11c   : > { %v619_v32 = vadd.f32 %v618_v31, %v468_v29  ;;  %v620_v33 = vpop.f32.mrb[15].mxu0  ;;  %7010 = vmatpush1.bf16.msra.mxu1 %v7009_v24  ;;  %v7077_v24 = vpack.c.bf16 %v845_v21, %v841_v20  ;;  %v7081_v30 = vpack.c.bf16 %v853_v27, %v849_v26  ;;  %v5614_v20 = vld [vmem:[%s13326_s6 + $0x328] sm:$0xff]  ;;  %v7139_v23 = vpack.c.bf16 %v5612_v9, %v5608_v8  ;;  %v5620_v26 = vld [vmem:[%s13326_s6 + $0x358] sm:$0xff] }
 0x11d   : > { %v621_v34 = vadd.f32 %v620_v33, %v468_v29  ;;  %v862_v29 = vld [vmem:[%s13326_s6 + $0x1f8] sm:$0xff]  ;;  %v861_v33 = vld [vmem:[%s13326_s6 + $0x1f0] sm:$0xff]  ;;  %v7101_v27 = vpack.c.bf16 %v5609_v15, %v5605_v14  ;;  %v5646_v8 = vld [vmem:[%s13326_s6 + $0x428] sm:$0xff] }
 0x11e   : > { %v643_v36 = vmax.f32 %v619_v32, 0.0  ;;  %v7083_v31 = vpack.c.bf16 %v862_v29, %v858_v28  ;;  %v857_v32 = vld [vmem:[%s13326_s6 + $0x1d0] sm:$0xff]  ;;  %v5613_v29 = vld [vmem:[%s13326_s6 + $0x320] sm:$0xff]  ;;  %v5650_v9 = vld [vmem:[%s13326_s6 + $0x448] sm:$0xff] }
 0x11f   : > { %v644_v38 = vmax.f32 %v621_v34, 0.0  ;;  %v624_v39 = vpop.f32.mrb[16].mxu0  ;;  %v866_v34 = vld [vmem:[%s13326_s6 + $0x218] sm:$0xff] }
 0x120   : > { %v7013_v41 = vpack.c.bf16 %v643_v36, %v641_v35  ;;  %v626_v42 = vpop.f32.mrb[17].mxu0  ;;  %v625_v45 = vadd.f32 %v624_v39, %v473_v40  ;;  %v870_v35 = vld [vmem:[%s13326_s6 + $0x238] sm:$0xff]  ;;  %v7085_v36 = vpack.c.bf16 %v861_v33, %v857_v32  ;;  %v869_v39 = vld [vmem:[%s13326_s6 + $0x230] sm:$0xff] }
 0x121   : > { %v7011_v43 = vpack.c.bf16 %v644_v38, %v642_v37  ;;  %v627_v44 = vadd.f32 %v626_v42, %v473_v40  ;;  %v7087_v37 = vpack.c.bf16 %v870_v35, %v866_v34  ;;  %v865_v38 = vld [vmem:[%s13326_s6 + $0x210] sm:$0xff]  ;;  %v878_v42 = vld [vmem:[%s13326_s6 + $0x278] sm:$0xff]  ;;  %v5622_v35 = vld [vmem:[%s13326_s6 + $0x368] sm:$0xff] }
 0x122   : > { %v645_v54 = vmax.f32 %v625_v45, 0.0  ;;  %v7089_v40 = vpack.c.bf16 %v869_v39, %v865_v38  ;;  %v5615_v33 = vld [vmem:[%s13326_s6 + $0x330] sm:$0xff]  ;;  %v5628_v38 = vld [vmem:[%s13326_s6 + $0x398] sm:$0xff] }
 0x123   : > { %v646_v48 = vmax.f32 %v627_v44, 0.0  ;;  %7012 = vmatprep.subr.bf16.mxu1 %v7011_v43  ;;  %v871_v43 = vld [vmem:[%s13326_s6 + $0x240] sm:$0xff]  ;;  %v5619_v34 = vld [vmem:[%s13326_s6 + $0x350] sm:$0xff] }
 0x124   : > { %7014 = vmatpush1.bf16.msra.mxu1 %v7013_v41  ;;  %v874_v41 = vld [vmem:[%s13326_s6 + $0x258] sm:$0xff]  ;;  %v875_v44 = vld [vmem:[%s13326_s6 + $0x260] sm:$0xff] }
 0x125   : > { %684 = vmatprep.subr.mxu1 %v646_v48  ;;  %v7091_v45 = vpack.c.bf16 %v878_v42, %v874_v41  ;;  %v7053_v47 = vpack.c.bf16 %v875_v44, %v871_v43  ;;  %v877_v48 = vld [vmem:[%s13326_s6 + $0x270] sm:$0xff]  ;;  %v5621_v41 = vld [vmem:[%s13326_s6 + $0x360] sm:$0xff] }
 0x126   : > { %v7093_v49 = vpack.c.bf16 %v877_v48, %v873_v46  ;;  %v5625_v42 = vld [vmem:[%s13326_s6 + $0x380] sm:$0xff]  ;;  %v5627_v46 = vld [vmem:[%s13326_s6 + $0x390] sm:$0xff]  ;;  %v5634_v48 = vld [vmem:[%s13326_s6 + $0x3c8] sm:$0xff] }
 0x127   : > { %7054 = vmatpush1.bf16.msra.mxu0 %v7053_v47  ;;  %v5630_v47 = vld [vmem:[%s13326_s6 + $0x3a8] sm:$0xff] }
 0x128   : > { %685 = vmatpush1.msra.mxu1 %v645_v54  ;;  %5591 = vmatprep.subr.msk.mxu0 %vm887_vm3, %v880_v50  ;;  %v881_v54 = vld [vmem:[%s13326_s6 + $0x290] sm:$0x1f]  ;;  %v5636_v50 = vld [vmem:[%s13326_s6 + $0x3d8] sm:$0xff] }
 0x129   : > { %5586 = vmatmul.mubr.msk.f32.vlgmr.msra.gmra.mrb[0].mxu1 %vm661_vm2, %v647_v55  ;;  %7056 = vmatprep.subr.bf16.mxu1 %v7055_v53  ;;  %v879_v53 = vld [vmem:[%s13326_s6 + $0x280] sm:$0x1f]  ;;  %v5602_v55 = vld [vmem:[%s13326_s6 + $0x2c8] sm:$0xff] }
 0x12a   : > { %738 = vmatprep.mubr.f32.mxu1 %v8493_v0  ;;  %7058 = vmatpush1.bf16.msra.mxu1 %v7057_v56  ;;  %v7095_v56 = vpack.c.bf16 %v5602_v55, %v5598_v52  ;;  %v7111_v55 = vpack.c.bf16 %v5634_v48, %v5630_v47  ;;  %v5667_v47 = vld [vmem:[%s13326_s6 + $0x4d0] sm:$0xff]  ;;  %v5670_v48 = vld [vmem:[%s13326_s6 + $0x4e8] sm:$0xff] }
 0x12b   : > { %7060 = vmatprep.subr.bf16.mxu1 %v7059_v57  ;;  %5592 = vmatpush1.msk.msra.mxu0 %vm887_vm3, %v879_v53  ;;  %v5600_v57 = vld [vmem:[%s13326_s6 + $0x2b8] sm:$0xff]  ;;  %v5629_v53 = vld [vmem:[%s13326_s6 + $0x3a0] sm:$0xff] }
 0x12c   : > { %v7135_v59 = vpack.c.bf16 %v5604_v58, %v5600_v57  ;;  %7096 = vmatprep.subr.bf16.mxu0 %v7095_v56  ;;  %v5631_v57 = vld [vmem:[%s13326_s6 + $0x3b0] sm:$0xff] }
 0x12d   : > { %5587 = vmatmul.mubr.msk.f32.gmra.mrb[2].mxu1 %vm661_vm2, %v648_v62  ;;  %v5597_v62 = vld [vmem:[%s13326_s6 + $0x2a0] sm:$0xff]  ;;  %v5635_v58 = vld [vmem:[%s13326_s6 + $0x3d0] sm:$0xff] }
 0x12e   : > { %7062 = vmatpush1.bf16.msra.mxu1 %v7061_v63 }
 0x12f   : > { %7064 = vmatprep.subr.bf16.mxu1 %v7063_v1 }
 0x132   : > { %7066 = vmatpush1.bf16.msra.mxu1 %v7065_v6  ;;  %v5606_v6 = vld [vmem:[%s13326_s6 + $0x2e8] sm:$0xff] }
 0x133   : > { %7068 = vmatprep.subr.bf16.mxu1 %v7067_v7  ;;  %v5610_v7 = vld [vmem:[%s13326_s6 + $0x308] sm:$0xff] }
 0x134   : > { %v7099_v22 = vpack.c.bf16 %v5610_v7, %v5606_v6  ;;  %v5639_v6 = vld [vmem:[%s13326_s6 + $0x3f0] sm:$0xff] }
 0x135   : > { %v5643_v7 = vld [vmem:[%s13326_s6 + $0x410] sm:$0xff] }
 0x136   : > { %7070 = vmatpush1.bf16.msra.mxu1 %v7069_v12  ;;  %v7097_v12 = vpack.c.bf16 %v5601_v2, %v5597_v62  ;;  %v5644_v62 = vld [vmem:[%s13326_s6 + $0x418] sm:$0xff]  ;;  %v5637_v2 = vld [vmem:[%s13326_s6 + $0x3e0] sm:$0xff]  ;;  %v7157_v15 = vpack.c.bf16 %v5643_v7, %v5639_v6  ;;  %v5679_v6 = vld [vmem:[%s13326_s6 + $0x530] sm:$0x1f] }
 0x137   : > { %7072 = vmatprep.subr.bf16.mxu1 %v7071_v13  ;;  %v7137_v13 = vpack.c.bf16 %v5603_v4, %v5599_v3  ;;  %v5641_v3 = vld [vmem:[%s13326_s6 + $0x400] sm:$0xff] }
 0x138   : > { %v7117_v14 = vpack.c.bf16 %v5641_v3, %v5637_v2  ;;  %v5677_v2 = vld [vmem:[%s13326_s6 + $0x520] sm:$0x1f]  ;;  %v5692_v3 = vld [vmem:[%s13326_s6 + $0x568] sm:$0xff] }
 0x139   : > { %v5687_v7 = vld [vmem:[%s13326_s6 + $0x540] sm:$0xff] }
 0x13a   : > { %7074 = vmatpush1.bf16.msra.mxu1 %v7073_v18  ;;  %v5607_v18 = vld [vmem:[%s13326_s6 + $0x2f0] sm:$0xff] }
 0x13b   : > { %7076 = vmatprep.subr.bf16.mxu1 %v7075_v19  ;;  %v5611_v19 = vld [vmem:[%s13326_s6 + $0x310] sm:$0xff] }
 0x13c   : > { %v7141_v28 = vpack.c.bf16 %v5611_v19, %v5607_v18  ;;  %v5645_v18 = vld [vmem:[%s13326_s6 + $0x420] sm:$0xff] }
 0x13d   : > { %v5649_v19 = vld [vmem:[%s13326_s6 + $0x440] sm:$0xff] }
 0x13e   : > { %7078 = vmatpush1.bf16.msra.mxu1 %v7077_v24  ;;  %v5618_v24 = vld [vmem:[%s13326_s6 + $0x348] sm:$0xff] }
 0x13f   : > { %7080 = vmatprep.subr.bf16.mxu1 %v7079_v25  ;;  %v5616_v25 = vld [vmem:[%s13326_s6 + $0x338] sm:$0xff] }
 0x140   : > { %v7143_v32 = vpack.c.bf16 %v5620_v26, %v5616_v25  ;;  %v5658_v25 = vld [vmem:[%s13326_s6 + $0x488] sm:$0xff]  ;;  %v5656_v26 = vld [vmem:[%s13326_s6 + $0x478] sm:$0xff] }
 0x142   : > { %7082 = vmatpush1.bf16.msra.mxu1 %v7081_v30  ;;  %v5617_v30 = vld [vmem:[%s13326_s6 + $0x340] sm:$0xff] }
 0x143   : > { %7084 = vmatprep.subr.bf16.mxu1 %v7083_v31  ;;  %v7103_v31 = vpack.c.bf16 %v5618_v24, %v5614_v20  ;;  %v7105_v39 = vpack.c.bf16 %v5617_v30, %v5613_v29  ;;  %v7119_v20 = vpack.c.bf16 %v5650_v9, %v5646_v8  ;;  %v5654_v24 = vld [vmem:[%s13326_s6 + $0x468] sm:$0xff]  ;;  %v5653_v30 = vld [vmem:[%s13326_s6 + $0x460] sm:$0xff]  ;;  %v5689_v9 = vld [vmem:[%s13326_s6 + $0x550] sm:$0xff] }
 0x144   : > { %v5691_v8 = vld [vmem:[%s13326_s6 + $0x560] sm:$0xff] }
 0x146   : > { %7086 = vmatpush1.bf16.msra.mxu1 %v7085_v36  ;;  %v5626_v36 = vld [vmem:[%s13326_s6 + $0x388] sm:$0xff] }
 0x147   : > { %7088 = vmatprep.subr.bf16.mxu1 %v7087_v37  ;;  %v5624_v37 = vld [vmem:[%s13326_s6 + $0x378] sm:$0xff]  ;;  %v7107_v43 = vpack.c.bf16 %v5626_v36, %v5622_v35  ;;  %v5659_v35 = vld [vmem:[%s13326_s6 + $0x490] sm:$0xff]  ;;  %v5662_v36 = vld [vmem:[%s13326_s6 + $0x4a8] sm:$0xff] }
 0x148   : > { %v7147_v44 = vpack.c.bf16 %v5628_v38, %v5624_v37  ;;  %v5666_v37 = vld [vmem:[%s13326_s6 + $0x4c8] sm:$0xff]  ;;  %v5664_v38 = vld [vmem:[%s13326_s6 + $0x4b8] sm:$0xff] }
 0x14a   : > { %7090 = vmatpush1.bf16.msra.mxu1 %v7089_v40  ;;  %v7145_v40 = vpack.c.bf16 %v5619_v34, %v5615_v33  ;;  %v5655_v34 = vld [vmem:[%s13326_s6 + $0x470] sm:$0xff] }
 0x14b   : > { %7092 = vmatprep.subr.bf16.mxu1 %v7091_v45  ;;  %v5623_v45 = vld [vmem:[%s13326_s6 + $0x370] sm:$0xff] }
 0x14c   : > { %v7149_v52 = vpack.c.bf16 %v5627_v46, %v5623_v45  ;;  %v5663_v46 = vld [vmem:[%s13326_s6 + $0x4b0] sm:$0xff] }
 0x14e   : > { %7094 = vmatpush1.bf16.msra.mxu1 %v7093_v49  ;;  %v5632_v49 = vld [vmem:[%s13326_s6 + $0x3b8] sm:$0xff] }
 0x14f   : > { %5594 = vmatprep.subr.msk.mxu1 %vm887_vm3, %v882_v51  ;;  %v7109_v51 = vpack.c.bf16 %v5625_v42, %v5621_v41  ;;  %v7151_v56 = vpack.c.bf16 %v5636_v50, %v5632_v49  ;;  %v7165_v41 = vpack.c.bf16 %v5659_v35, %v5655_v34  ;;  %v5661_v42 = vld [vmem:[%s13326_s6 + $0x4a0] sm:$0xff]  ;;  %v5674_v49 = vld [vmem:[%s13326_s6 + $0x508] sm:$0xff]  ;;  %v5672_v50 = vld [vmem:[%s13326_s6 + $0x4f8] sm:$0xff] }
 0x150   : > { %v5710_v34 = vld [vmem:[%s13326_s6 + $0x5f8] sm:$0xff] }
 0x152   : > { %5595 = vmatpush1.msk.msra.mxu1 %vm887_vm3, %v881_v54  ;;  %v5633_v54 = vld [vmem:[%s13326_s6 + $0x3c0] sm:$0xff] }
 0x153   : > { %7136 = vmatprep.subr.bf16.mxu1 %v7135_v59  ;;  %v5638_v59 = vld [vmem:[%s13326_s6 + $0x3e8] sm:$0xff] }
 0x1fc   : > { %v734_v61 = vpop.f32.mrb[0].mxu1 }
 0x1fd   : > { %v735_v63 = vadd.f32 %v734_v61, %v654_v60  ;;  %v736_v1 = vpop.f32.mrb[1].mxu1  ;;  %v5640_v61 = vld [vmem:[%s13326_s6 + $0x3f8] sm:$0xff] }
 0x1fe   : > { %v737_v5 = vadd.f32 %v736_v1, %v654_v60  ;;  %v5642_v60 = vld [vmem:[%s13326_s6 + $0x408] sm:$0xff]  ;;  %v7153_v1 = vpack.c.bf16 %v5635_v58, %v5631_v57  ;;  %v5673_v57 = vld [vmem:[%s13326_s6 + $0x500] sm:$0xff]  ;;  %v5671_v58 = vld [vmem:[%s13326_s6 + $0x4f0] sm:$0xff] }
 0x1ff   : > { %v9029_v16 = vmax.f32 %v735_v63, 0.0  ;;  %v7113_v63 = vpack.c.bf16 %v5633_v54, %v5629_v53  ;;  %v7115_v4 = vpack.c.bf16 %v5642_v60, %v5638_v59  ;;  %v7169_v53 = vpack.c.bf16 %v5667_v47, %v5663_v46  ;;  %v5669_v54 = vld [vmem:[%s13326_s6 + $0x4e0] sm:$0xff]  ;;  %v5675_v59 = vld [vmem:[%s13326_s6 + $0x510] sm:$0xff]  ;;  %v5718_v46 = vld [vmem:[%s13326_s6 + $0x638] sm:$0xff] }
 0x200   : > { %v9019_v10 = vmax.f32 %v737_v5, 0.0  ;;  %v9021_v11 = vpop.f32.mrb[2].mxu1  ;;  %v7155_v5 = vpack.c.bf16 %v5644_v62, %v5640_v61  ;;  %v7133_v60 = vpack.c.bf16 %v5673_v57, %v5669_v54  ;;  %v7173_v61 = vpack.c.bf16 %v5675_v59, %v5671_v58  ;;  %v5678_v62 = vld [vmem:[%s13326_s6 + $0x528] sm:$0x1f]  ;;  %v5717_v54 = vld [vmem:[%s13326_s6 + $0x630] sm:$0xff]  ;;  %v5722_v57 = vld [vmem:[%s13326_s6 + $0x658] sm:$0xff] }
 0x201   : > { %v9031_v17 = vpop.f32.mrb[3].mxu1  ;;  %v5726_v58 = vld [vmem:[%s13326_s6 + $0x678] sm:$0xff] }
 0x202   : > { %5593 = vmatprep.mubr.msk.f32.mxu0 %vm883_vm4, %v9019_v10  ;;  %5596 = vmatprep.mubr.msk.f32.mxu1 %vm883_vm4, %v9019_v10  ;;  %v1159_v21 = vrot.slane %v9019_v10, 1 }
 0x203   : > { %965 = vmatmul.mubr.f32.vlgmr.msra.gmra.mrb[18].mxu0 %v9029_v16  ;;  %1036 = vmatmul.mubr.f32.vlgmr.msra.gmra.mrb[4].mxu1 %v9029_v16 }
 0x204   : > { %7098 = vmatpush1.bf16.msra.mxu0 %v7097_v12  ;;  %7138 = vmatpush1.bf16.msra.mxu1 %v7137_v13  ;;  %v5648_v12 = vld [vmem:[%s13326_s6 + $0x438] sm:$0xff] }
 0x205   : > { %5683 = vmatprep.mubr.msk.f32.mxu0 %vm883_vm4, %v1159_v21  ;;  %5686 = vmatprep.mubr.msk.f32.mxu1 %vm883_vm4, %v1159_v21  ;;  %v5652_v13 = vld [vmem:[%s13326_s6 + $0x458] sm:$0xff] }
 0x206   : > { %7100 = vmatprep.subr.bf16.mxu0 %v7099_v22  ;;  %7140 = vmatprep.subr.bf16.mxu1 %v7139_v23  ;;  %v7159_v21 = vpack.c.bf16 %v5652_v13, %v5648_v12  ;;  %v5647_v22 = vld [vmem:[%s13326_s6 + $0x430] sm:$0xff]  ;;  %v5696_v13 = vld [vmem:[%s13326_s6 + $0x588] sm:$0xff] }
 0x207   : > { %v5651_v23 = vld [vmem:[%s13326_s6 + $0x450] sm:$0xff] }
 0x208   : > { %7102 = vmatpush1.bf16.msra.mxu0 %v7101_v27  ;;  %7142 = vmatpush1.bf16.msra.mxu1 %v7141_v28  ;;  %v5660_v27 = vld [vmem:[%s13326_s6 + $0x498] sm:$0xff]  ;;  %v7121_v28 = vpack.c.bf16 %v5649_v19, %v5645_v18  ;;  %v7161_v29 = vpack.c.bf16 %v5651_v23, %v5647_v22  ;;  %v5693_v12 = vld [vmem:[%s13326_s6 + $0x570] sm:$0xff]  ;;  %v5700_v18 = vld [vmem:[%s13326_s6 + $0x5a8] sm:$0xff]  ;;  %v7177_v22 = vpack.c.bf16 %v5691_v8, %v5687_v7 }
 0x209   : > { %7104 = vmatprep.subr.bf16.mxu0 %v7103_v31  ;;  %7144 = vmatprep.subr.bf16.mxu1 %v7143_v32  ;;  %v5657_v31 = vld [vmem:[%s13326_s6 + $0x480] sm:$0xff]  ;;  %v7123_v32 = vpack.c.bf16 %v5658_v25, %v5654_v24  ;;  %v7163_v33 = vpack.c.bf16 %v5660_v27, %v5656_v26  ;;  %v5698_v19 = vld [vmem:[%s13326_s6 + $0x598] sm:$0xff]  ;;  %v7217_v23 = vpack.c.bf16 %v5693_v12, %v5689_v9  ;;  %v5697_v26 = vld [vmem:[%s13326_s6 + $0x590] sm:$0xff]  ;;  %v1433_v27 = vrot.slane %v9019_v10, 2 }
 0x20a   : > { %v5695_v24 = vld [vmem:[%s13326_s6 + $0x580] sm:$0xff]  ;;  %v5734_v7 = vld [vmem:[%s13326_s6 + $0x6b8] sm:$0xff] }
 0x20b   : > { %v5699_v25 = vld [vmem:[%s13326_s6 + $0x5a0] sm:$0xff] }
 0x20c   : > { %7106 = vmatpush1.bf16.msra.mxu0 %v7105_v39  ;;  %7146 = vmatpush1.bf16.msra.mxu1 %v7145_v40  ;;  %v5668_v39 = vld [vmem:[%s13326_s6 + $0x4d8] sm:$0xff]  ;;  %v7125_v40 = vpack.c.bf16 %v5657_v31, %v5653_v30  ;;  %v5701_v30 = vld [vmem:[%s13326_s6 + $0x5b0] sm:$0xff]  ;;  %v5704_v31 = vld [vmem:[%s13326_s6 + $0x5c8] sm:$0xff]  ;;  %v7181_v35 = vpack.c.bf16 %v5699_v25, %v5695_v24 }
 0x20d   : > { %7108 = vmatprep.subr.bf16.mxu0 %v7107_v43  ;;  %7148 = vmatprep.subr.bf16.mxu1 %v7147_v44  ;;  %v5665_v43 = vld [vmem:[%s13326_s6 + $0x4c0] sm:$0xff]  ;;  %v7127_v44 = vpack.c.bf16 %v5666_v37, %v5662_v36  ;;  %v7167_v45 = vpack.c.bf16 %v5668_v39, %v5664_v38  ;;  %v7221_v36 = vpack.c.bf16 %v5701_v30, %v5697_v26 }
 0x20e   : > { %v5703_v38 = vld [vmem:[%s13326_s6 + $0x5c0] sm:$0xff] }
 0x20f   : > { %v5707_v39 = vld [vmem:[%s13326_s6 + $0x5e0] sm:$0xff] }
 0x210   : > { %7110 = vmatpush1.bf16.msra.mxu0 %v7109_v51  ;;  %7150 = vmatpush1.bf16.msra.mxu1 %v7149_v52  ;;  %v5676_v51 = vld [vmem:[%s13326_s6 + $0x518] sm:$0xff]  ;;  %v7129_v52 = vpack.c.bf16 %v5665_v43, %v5661_v42  ;;  %v5709_v42 = vld [vmem:[%s13326_s6 + $0x5f0] sm:$0xff]  ;;  %v5712_v43 = vld [vmem:[%s13326_s6 + $0x608] sm:$0xff]  ;;  %v7185_v47 = vpack.c.bf16 %v5707_v39, %v5703_v38 }
 0x211   : > { %7112 = vmatprep.subr.bf16.mxu0 %v7111_v55  ;;  %7152 = vmatprep.subr.bf16.mxu1 %v7151_v56  ;;  %v7131_v55 = vpack.c.bf16 %v5674_v49, %v5670_v48  ;;  %v7171_v56 = vpack.c.bf16 %v5676_v51, %v5672_v50  ;;  %v5711_v50 = vld [vmem:[%s13326_s6 + $0x600] sm:$0xff] }
 0x212   : > { %v5715_v51 = vld [vmem:[%s13326_s6 + $0x620] sm:$0xff] }
 0x213   : > { %v7189_v59 = vpack.c.bf16 %v5715_v51, %v5711_v50  ;;  %v5743_v39 = vld [vmem:[%s13326_s6 + $0x700] sm:$0xff] }
 0x214   : > { %7114 = vmatpush1.bf16.msra.mxu0 %v7113_v63  ;;  %7154 = vmatpush1.bf16.msra.mxu1 %v7153_v1  ;;  %v5680_v63 = vld [vmem:[%s13326_s6 + $0x538] sm:$0x1f]  ;;  %v5688_v1 = vld [vmem:[%s13326_s6 + $0x548] sm:$0xff]  ;;  %v5751_v51 = vld [vmem:[%s13326_s6 + $0x740] sm:$0xff] }
 0x215   : > { %7116 = vmatprep.subr.bf16.mxu0 %v7115_v4  ;;  %7156 = vmatprep.subr.bf16.mxu1 %v7155_v5  ;;  %v5690_v4 = vld [vmem:[%s13326_s6 + $0x558] sm:$0xff] }
 0x216   : > { %v5694_v5 = vld [vmem:[%s13326_s6 + $0x578] sm:$0xff] }
 0x218   : > { %7118 = vmatpush1.bf16.msra.mxu0 %v7117_v14  ;;  %7158 = vmatpush1.bf16.msra.mxu1 %v7157_v15  ;;  %v7175_v14 = vpack.c.bf16 %v5692_v3, %v5688_v1  ;;  %v7215_v15 = vpack.c.bf16 %v5694_v5, %v5690_v4  ;;  %v5721_v1 = vld [vmem:[%s13326_s6 + $0x650] sm:$0xff]  ;;  %v5728_v4 = vld [vmem:[%s13326_s6 + $0x688] sm:$0xff] }
 0x219   : > { %7120 = vmatprep.subr.bf16.mxu0 %v7119_v20  ;;  %7160 = vmatprep.subr.bf16.mxu1 %v7159_v21  ;;  %v5702_v20 = vld [vmem:[%s13326_s6 + $0x5b8] sm:$0xff]  ;;  %v1158_v21 = vrot.slane %v9029_v16, 1  ;;  %v5725_v3 = vld [vmem:[%s13326_s6 + $0x670] sm:$0xff]  ;;  %v5732_v5 = vld [vmem:[%s13326_s6 + $0x6a8] sm:$0xff] }
 0x21a   : > { %v7233_v9 = vpack.c.bf16 %v5725_v3, %v5721_v1  ;;  %v7195_v12 = vpack.c.bf16 %v5732_v5, %v5728_v4  ;;  %v5763_v1 = vld [vmem:[%s13326_s6 + $0x7a0] sm:$0xff]  ;;  %v5761_v3 = vld [vmem:[%s13326_s6 + $0x790] sm:$0xff] }
 0x21b   : > { %v5765_v4 = vld [vmem:[%s13326_s6 + $0x7b0] sm:$0xff] }
 0x21c   : > { %7122 = vmatpush1.bf16.msra.mxu0 %v7121_v28  ;;  %7162 = vmatpush1.bf16.msra.mxu1 %v7161_v29  ;;  %v7179_v28 = vpack.c.bf16 %v5700_v18, %v5696_v13  ;;  %v7219_v29 = vpack.c.bf16 %v5702_v20, %v5698_v19  ;;  %v5727_v13 = vld [vmem:[%s13326_s6 + $0x680] sm:$0xff]  ;;  %v5733_v19 = vld [vmem:[%s13326_s6 + $0x6b0] sm:$0xff]  ;;  %v5736_v20 = vld [vmem:[%s13326_s6 + $0x6c8] sm:$0xff] }
 0x21d   : > { %7124 = vmatprep.subr.bf16.mxu0 %v7123_v32  ;;  %7164 = vmatprep.subr.bf16.mxu1 %v7163_v33  ;;  %v5708_v32 = vld [vmem:[%s13326_s6 + $0x5e8] sm:$0xff]  ;;  %v5706_v33 = vld [vmem:[%s13326_s6 + $0x5d8] sm:$0xff] }
 0x21e   : > { %v7183_v37 = vpack.c.bf16 %v5708_v32, %v5704_v31  ;;  %v5741_v31 = vld [vmem:[%s13326_s6 + $0x6f0] sm:$0xff]  ;;  %v5744_v32 = vld [vmem:[%s13326_s6 + $0x708] sm:$0xff] }
 0x220   : > { %7126 = vmatpush1.bf16.msra.mxu0 %v7125_v40  ;;  %7166 = vmatpush1.bf16.msra.mxu1 %v7165_v41  ;;  %v5705_v40 = vld [vmem:[%s13326_s6 + $0x5d0] sm:$0xff]  ;;  %v7223_v41 = vpack.c.bf16 %v5710_v34, %v5706_v33  ;;  %v5748_v33 = vld [vmem:[%s13326_s6 + $0x728] sm:$0xff]  ;;  %v5746_v34 = vld [vmem:[%s13326_s6 + $0x718] sm:$0xff] }
 0x221   : > { %7128 = vmatprep.subr.bf16.mxu0 %v7127_v44  ;;  %7168 = vmatprep.subr.bf16.mxu1 %v7167_v45  ;;  %v5716_v44 = vld [vmem:[%s13326_s6 + $0x628] sm:$0xff]  ;;  %v5714_v45 = vld [vmem:[%s13326_s6 + $0x618] sm:$0xff]  ;;  %v7225_v48 = vpack.c.bf16 %v5709_v42, %v5705_v40  ;;  %v7203_v38 = vpack.c.bf16 %v5748_v33, %v5744_v32  ;;  %v5747_v40 = vld [vmem:[%s13326_s6 + $0x720] sm:$0xff] }
 0x222   : > { %v7187_v49 = vpack.c.bf16 %v5716_v44, %v5712_v43  ;;  %v5749_v43 = vld [vmem:[%s13326_s6 + $0x730] sm:$0xff]  ;;  %v5752_v44 = vld [vmem:[%s13326_s6 + $0x748] sm:$0xff]  ;;  %v5785_v32 = vld [vmem:[%s13326_s6 + $0x820] sm:$0xff] }
 0x223   : > { %v5789_v33 = vld [vmem:[%s13326_s6 + $0x840] sm:$0xff] }
 0x224   : > { %7130 = vmatpush1.bf16.msra.mxu0 %v7129_v52  ;;  %7170 = vmatpush1.bf16.msra.mxu1 %v7169_v53  ;;  %v5713_v52 = vld [vmem:[%s13326_s6 + $0x610] sm:$0xff]  ;;  %v7227_v53 = vpack.c.bf16 %v5718_v46, %v5714_v45  ;;  %v5756_v45 = vld [vmem:[%s13326_s6 + $0x768] sm:$0xff]  ;;  %v5754_v46 = vld [vmem:[%s13326_s6 + $0x758] sm:$0xff] }
 0x225   : > { %7132 = vmatprep.subr.bf16.mxu0 %v7131_v55  ;;  %7172 = vmatprep.subr.bf16.mxu1 %v7171_v56  ;;  %v5720_v55 = vld [vmem:[%s13326_s6 + $0x648] sm:$0xff]  ;;  %v7207_v50 = vpack.c.bf16 %v5756_v45, %v5752_v44 }
 0x226   : > { %v5724_v56 = vld [vmem:[%s13326_s6 + $0x668] sm:$0xff] }
 0x228   : > { %7134 = vmatpush1.bf16.msra.mxu0 %v7133_v60  ;;  %7174 = vmatpush1.bf16.msra.mxu1 %v7173_v61  ;;  %v7229_v60 = vpack.c.bf16 %v5717_v54, %v5713_v52  ;;  %v7191_v61 = vpack.c.bf16 %v5724_v56, %v5720_v55  ;;  %v5755_v52 = vld [vmem:[%s13326_s6 + $0x760] sm:$0xff]  ;;  %v5757_v55 = vld [vmem:[%s13326_s6 + $0x770] sm:$0xff]  ;;  %v5760_v56 = vld [vmem:[%s13326_s6 + $0x788] sm:$0xff] }
 0x229   : > { %5681 = vmatprep.subr.msk.mxu0 %vm887_vm3, %v5678_v62  ;;  %5684 = vmatprep.subr.msk.mxu1 %vm887_vm3, %v5680_v63  ;;  %v5719_v62 = vld [vmem:[%s13326_s6 + $0x640] sm:$0xff] }
 0x22a   : > { %v5723_v63 = vld [vmem:[%s13326_s6 + $0x660] sm:$0xff] }
 0x22b   : > { %v7193_v8 = vpack.c.bf16 %v5723_v63, %v5719_v62  ;;  %v5759_v63 = vld [vmem:[%s13326_s6 + $0x780] sm:$0xff] }
 0x22c   : > { %5682 = vmatpush1.msk.msra.mxu0 %vm887_vm3, %v5677_v2  ;;  %5685 = vmatpush1.msk.msra.mxu1 %vm887_vm3, %v5679_v6  ;;  %v7231_v2 = vpack.c.bf16 %v5726_v58, %v5722_v57  ;;  %v5730_v6 = vld [vmem:[%s13326_s6 + $0x698] sm:$0xff]  ;;  %v5764_v57 = vld [vmem:[%s13326_s6 + $0x7a8] sm:$0xff]  ;;  %v7213_v5 = vpack.c.bf16 %v5763_v1, %v5759_v63 }
 0x22d   : > { %1240 = vmatmul.mubr.f32.vlgmr.msra.gmra.mrb[20].mxu0 %v1158_v21  ;;  %1311 = vmatmul.mubr.f32.vlgmr.msra.gmra.mrb[6].mxu1 %v1158_v21  ;;  %v7235_v18 = vpack.c.bf16 %v5734_v7, %v5730_v6  ;;  %v5740_v21 = vld [vmem:[%s13326_s6 + $0x6e8] sm:$0xff]  ;;  %v5762_v58 = vld [vmem:[%s13326_s6 + $0x798] sm:$0xff]  ;;  %v7211_v62 = vpack.c.bf16 %v5764_v57, %v5760_v56  ;;  %v7253_v6 = vpack.c.bf16 %v5765_v4, %v5761_v3 }
 0x22e   : > { %7176 = vmatprep.subr.bf16.mxu0 %v7175_v14  ;;  %7216 = vmatprep.subr.bf16.mxu1 %v7215_v15  ;;  %v5731_v14 = vld [vmem:[%s13326_s6 + $0x6a0] sm:$0xff]  ;;  %v5729_v15 = vld [vmem:[%s13326_s6 + $0x690] sm:$0xff]  ;;  %v7199_v26 = vpack.c.bf16 %v5740_v21, %v5736_v20  ;;  %v5768_v7 = vld [vmem:[%s13326_s6 + $0x7c8] sm:$0x1f] }
 0x22f   : > { %7178 = vmatpush1.bf16.msra.mxu0 %v7177_v22  ;;  %5773 = vmatprep.mubr.msk.f32.mxu0 %vm883_vm4, %v1433_v27  ;;  %v5738_v22 = vld [vmem:[%s13326_s6 + $0x6d8] sm:$0xff]  ;;  %v7197_v24 = vpack.c.bf16 %v5731_v14, %v5727_v13  ;;  %v7237_v25 = vpack.c.bf16 %v5733_v19, %v5729_v15  ;;  %v5777_v15 = vld [vmem:[%s13326_s6 + $0x7e0] sm:$0xff]  ;;  %v5779_v20 = vld [vmem:[%s13326_s6 + $0x7f0] sm:$0xff] }
 0x230   : > { %7218 = vmatpush1.bf16.msra.mxu1 %v7217_v23  ;;  %5776 = vmatprep.mubr.msk.f32.mxu1 %vm883_vm4, %v1433_v27  ;;  %v5742_v23 = vld [vmem:[%s13326_s6 + $0x6f8] sm:$0xff]  ;;  %v5735_v27 = vld [vmem:[%s13326_s6 + $0x6c0] sm:$0xff]  ;;  %v5783_v21 = vld [vmem:[%s13326_s6 + $0x810] sm:$0xff] }
 0x231   : > { %7180 = vmatprep.subr.bf16.mxu0 %v7179_v28  ;;  %7220 = vmatprep.subr.bf16.mxu1 %v7219_v29  ;;  %v5739_v28 = vld [vmem:[%s13326_s6 + $0x6e0] sm:$0xff]  ;;  %v5737_v29 = vld [vmem:[%s13326_s6 + $0x6d0] sm:$0xff]  ;;  %v7239_v30 = vpack.c.bf16 %v5742_v23, %v5738_v22  ;;  %v5780_v13 = vld [vmem:[%s13326_s6 + $0x7f8] sm:$0xff] }
 0x232   : > { %v5784_v14 = vld [vmem:[%s13326_s6 + $0x818] sm:$0xff]  ;;  %v5767_v19 = vld [vmem:[%s13326_s6 + $0x7c0] sm:$0x1f]  ;;  %v5769_v22 = vld [vmem:[%s13326_s6 + $0x7d0] sm:$0x1f] }
 0x233   : > { %7182 = vmatpush1.bf16.msra.mxu0 %v7181_v35  ;;  %v5750_v35 = vld [vmem:[%s13326_s6 + $0x738] sm:$0xff]  ;;  %v5810_v63 = vld [vmem:[%s13326_s6 + $0x8e8] sm:$0xff] }
 0x234   : > { %7222 = vmatpush1.bf16.msra.mxu1 %v7221_v36  ;;  %7184 = vmatprep.subr.bf16.mxu0 %v7183_v37  ;;  %v7201_v36 = vpack.c.bf16 %v5739_v28, %v5735_v27  ;;  %v7241_v37 = vpack.c.bf16 %v5741_v31, %v5737_v29  ;;  %v7243_v42 = vpack.c.bf16 %v5750_v35, %v5746_v34  ;;  %v5788_v29 = vld [vmem:[%s13326_s6 + $0x838] sm:$0xff]  ;;  %v5787_v34 = vld [vmem:[%s13326_s6 + $0x830] sm:$0xff]  ;;  %v5814_v1 = vld [vmem:[%s13326_s6 + $0x908] sm:$0xff] }
 0x235   : > { %7224 = vmatprep.subr.bf16.mxu1 %v7223_v41  ;;  %v5745_v41 = vld [vmem:[%s13326_s6 + $0x710] sm:$0xff]  ;;  %v7295_v27 = vpack.c.bf16 %v5784_v14, %v5780_v13  ;;  %v7297_v31 = vpack.c.bf16 %v5783_v21, %v5779_v20  ;;  %v5816_v3 = vld [vmem:[%s13326_s6 + $0x918] sm:$0xff]  ;;  %v5818_v14 = vld [vmem:[%s13326_s6 + $0x928] sm:$0xff] }
 0x236   : > { %v5815_v13 = vld [vmem:[%s13326_s6 + $0x910] sm:$0xff] }
 0x237   : > { %7186 = vmatpush1.bf16.msra.mxu0 %v7185_v47  ;;  %v5758_v47 = vld [vmem:[%s13326_s6 + $0x778] sm:$0xff] }
 0x238   : > { %7226 = vmatpush1.bf16.msra.mxu1 %v7225_v48  ;;  %7188 = vmatprep.subr.bf16.mxu0 %v7187_v49  ;;  %v7205_v48 = vpack.c.bf16 %v5747_v40, %v5743_v39  ;;  %v7245_v49 = vpack.c.bf16 %v5749_v43, %v5745_v41  ;;  %v7247_v54 = vpack.c.bf16 %v5758_v47, %v5754_v46  ;;  %v1707_v39 = vrot.slane %v9019_v10, 3  ;;  %v5796_v41 = vld [vmem:[%s13326_s6 + $0x878] sm:$0xff]  ;;  %v5793_v46 = vld [vmem:[%s13326_s6 + $0x860] sm:$0xff] }
 0x239   : > { %7228 = vmatprep.subr.bf16.mxu1 %v7227_v53  ;;  %v5753_v53 = vld [vmem:[%s13326_s6 + $0x750] sm:$0xff]  ;;  %v7261_v43 = vpack.c.bf16 %v5789_v33, %v5785_v32  ;;  %v5797_v47 = vld [vmem:[%s13326_s6 + $0x880] sm:$0xff] }
 0x23b   : > { %7190 = vmatpush1.bf16.msra.mxu0 %v7189_v59  ;;  %v5766_v59 = vld [vmem:[%s13326_s6 + $0x7b8] sm:$0xff] }
 0x23c   : > { %7230 = vmatpush1.bf16.msra.mxu1 %v7229_v60  ;;  %7192 = vmatprep.subr.bf16.mxu0 %v7191_v61  ;;  %v7209_v60 = vpack.c.bf16 %v5755_v52, %v5751_v51  ;;  %v7249_v61 = vpack.c.bf16 %v5757_v55, %v5753_v53  ;;  %v5802_v51 = vld [vmem:[%s13326_s6 + $0x8a8] sm:$0xff]  ;;  %v5804_v53 = vld [vmem:[%s13326_s6 + $0x8b8] sm:$0xff]  ;;  %v7265_v55 = vpack.c.bf16 %v5797_v47, %v5793_v46  ;;  %v5833_v47 = vld [vmem:[%s13326_s6 + $0x9a0] sm:$0xff] }
 0x23d   : > { %7232 = vmatprep.subr.bf16.mxu1 %v7231_v2  ;;  %v7251_v2 = vpack.c.bf16 %v5766_v59, %v5762_v58  ;;  %v5806_v52 = vld [vmem:[%s13326_s6 + $0x8c8] sm:$0xff]  ;;  %v5801_v58 = vld [vmem:[%s13326_s6 + $0x8a0] sm:$0xff] }
 0x23e   : > { %v7267_v57 = vpack.c.bf16 %v5806_v52, %v5802_v51  ;;  %v5805_v59 = vld [vmem:[%s13326_s6 + $0x8c0] sm:$0xff]  ;;  %v5839_v51 = vld [vmem:[%s13326_s6 + $0x9d0] sm:$0xff]  ;;  %v5842_v52 = vld [vmem:[%s13326_s6 + $0x9e8] sm:$0xff] }
 0x23f   : > { %7194 = vmatpush1.bf16.msra.mxu0 %v7193_v8  ;;  %v5770_v8 = vld [vmem:[%s13326_s6 + $0x7d8] sm:$0x1f]  ;;  %v7269_v4 = vpack.c.bf16 %v5805_v59, %v5801_v58  ;;  %v5841_v59 = vld [vmem:[%s13326_s6 + $0x9e0] sm:$0xff] }
 0x240   : > { %7234 = vmatpush1.bf16.msra.mxu1 %v7233_v9  ;;  %7196 = vmatprep.subr.bf16.mxu0 %v7195_v12  ;;  %v5778_v9 = vld [vmem:[%s13326_s6 + $0x7e8] sm:$0xff] }
 0x241   : > { %7236 = vmatprep.subr.bf16.mxu1 %v7235_v18  ;;  %v5782_v12 = vld [vmem:[%s13326_s6 + $0x808] sm:$0xff]  ;;  %v5781_v18 = vld [vmem:[%s13326_s6 + $0x800] sm:$0xff] }
 0x242   : > { %v7255_v23 = vpack.c.bf16 %v5782_v12, %v5778_v9  ;;  %v7257_v28 = vpack.c.bf16 %v5781_v18, %v5777_v15  ;;  %v5811_v9 = vld [vmem:[%s13326_s6 + $0x8f0] sm:$0xff]  ;;  %v5822_v15 = vld [vmem:[%s13326_s6 + $0x948] sm:$0xff]  ;;  %v5820_v18 = vld [vmem:[%s13326_s6 + $0x938] sm:$0xff] }
 0x243   : > { %7198 = vmatpush1.bf16.msra.mxu0 %v7197_v24  ;;  %v5786_v24 = vld [vmem:[%s13326_s6 + $0x828] sm:$0xff]  ;;  %v7313_v21 = vpack.c.bf16 %v5815_v13, %v5811_v9  ;;  %v5853_v9 = vld [vmem:[%s13326_s6 + $0xa40] sm:$0xff]  ;;  %v5851_v13 = vld [vmem:[%s13326_s6 + $0xa30] sm:$0xff] }
 0x244   : > { %7238 = vmatpush1.bf16.msra.mxu1 %v7237_v25  ;;  %7200 = vmatprep.subr.bf16.mxu0 %v7199_v26  ;;  %v5790_v25 = vld [vmem:[%s13326_s6 + $0x848] sm:$0xff]  ;;  %v1432_v26 = vrot.slane %v9029_v16, 2 }
 0x245   : > { %7240 = vmatprep.subr.bf16.mxu1 %v7239_v30  ;;  %v5792_v30 = vld [vmem:[%s13326_s6 + $0x858] sm:$0xff]  ;;  %v7259_v35 = vpack.c.bf16 %v5790_v25, %v5786_v24  ;;  %v5821_v24 = vld [vmem:[%s13326_s6 + $0x940] sm:$0xff]  ;;  %v5819_v25 = vld [vmem:[%s13326_s6 + $0x930] sm:$0xff] }
 0x246   : > { %v7299_v40 = vpack.c.bf16 %v5792_v30, %v5788_v29  ;;  %v5830_v29 = vld [vmem:[%s13326_s6 + $0x988] sm:$0xff]  ;;  %v5828_v30 = vld [vmem:[%s13326_s6 + $0x978] sm:$0xff] }
 0x247   : > { %7202 = vmatpush1.bf16.msra.mxu0 %v7201_v36  ;;  %v5791_v36 = vld [vmem:[%s13326_s6 + $0x850] sm:$0xff] }
 0x248   : > { %7242 = vmatpush1.bf16.msra.mxu1 %v7241_v37  ;;  %7204 = vmatprep.subr.bf16.mxu0 %v7203_v38  ;;  %v5794_v37 = vld [vmem:[%s13326_s6 + $0x868] sm:$0xff]  ;;  %v7301_v44 = vpack.c.bf16 %v5791_v36, %v5787_v34  ;;  %v5829_v36 = vld [vmem:[%s13326_s6 + $0x980] sm:$0xff] }
 0x249   : > { %7244 = vmatprep.subr.bf16.mxu1 %v7243_v42  ;;  %v5798_v38 = vld [vmem:[%s13326_s6 + $0x888] sm:$0xff]  ;;  %v5800_v42 = vld [vmem:[%s13326_s6 + $0x898] sm:$0xff] }
 0x24a   : > { %v7263_v45 = vpack.c.bf16 %v5798_v38, %v5794_v37  ;;  %v5827_v37 = vld [vmem:[%s13326_s6 + $0x970] sm:$0xff] }
 0x24b   : > { %7206 = vmatpush1.bf16.msra.mxu0 %v7205_v48  ;;  %v5795_v48 = vld [vmem:[%s13326_s6 + $0x870] sm:$0xff] }
 0x24c   : > { %7246 = vmatpush1.bf16.msra.mxu1 %v7245_v49  ;;  %7208 = vmatprep.subr.bf16.mxu0 %v7207_v50  ;;  %v7303_v49 = vpack.c.bf16 %v5800_v42, %v5796_v41  ;;  %v5799_v50 = vld [vmem:[%s13326_s6 + $0x890] sm:$0xff]  ;;  %v5838_v41 = vld [vmem:[%s13326_s6 + $0x9c8] sm:$0xff]  ;;  %v5836_v42 = vld [vmem:[%s13326_s6 + $0x9b8] sm:$0xff] }
 0x24d   : > { %7248 = vmatprep.subr.bf16.mxu1 %v7247_v54  ;;  %v5808_v54 = vld [vmem:[%s13326_s6 + $0x8d8] sm:$0xff]  ;;  %v7305_v56 = vpack.c.bf16 %v5799_v50, %v5795_v48  ;;  %v5837_v48 = vld [vmem:[%s13326_s6 + $0x9c0] sm:$0xff] }
 0x24f   : > { %7210 = vmatpush1.bf16.msra.mxu0 %v7209_v60  ;;  %v5803_v60 = vld [vmem:[%s13326_s6 + $0x8b0] sm:$0xff] }
 0x250   : > { %7250 = vmatpush1.bf16.msra.mxu1 %v7249_v61  ;;  %7212 = vmatprep.subr.bf16.mxu0 %v7211_v62  ;;  %v7307_v61 = vpack.c.bf16 %v5808_v54, %v5804_v53  ;;  %v5807_v62 = vld [vmem:[%s13326_s6 + $0x8d0] sm:$0xff]  ;;  %v5846_v53 = vld [vmem:[%s13326_s6 + $0xa08] sm:$0xff]  ;;  %v5844_v54 = vld [vmem:[%s13326_s6 + $0x9f8] sm:$0xff] }
 0x251   : > { %7252 = vmatprep.subr.bf16.mxu1 %v7251_v2  ;;  %v5812_v2 = vld [vmem:[%s13326_s6 + $0x8f8] sm:$0xff]  ;;  %v7287_v58 = vpack.c.bf16 %v5846_v53, %v5842_v52 }
 0x252   : > { %v7311_v12 = vpack.c.bf16 %v5816_v3, %v5812_v2  ;;  %v5854_v2 = vld [vmem:[%s13326_s6 + $0xa48] sm:$0xff]  ;;  %v5852_v3 = vld [vmem:[%s13326_s6 + $0xa38] sm:$0xff] }
 0x253   : > { %7214 = vmatpush1.bf16.msra.mxu0 %v7213_v5  ;;  %v7309_v5 = vpack.c.bf16 %v5807_v62, %v5803_v60  ;;  %v5845_v60 = vld [vmem:[%s13326_s6 + $0xa00] sm:$0xff] }
 0x254   : > { %7254 = vmatpush1.bf16.msra.mxu1 %v7253_v6  ;;  %5771 = vmatprep.subr.msk.mxu0 %vm887_vm3, %v5768_v7  ;;  %v7271_v6 = vpack.c.bf16 %v5814_v1, %v5810_v63  ;;  %v5809_v7 = vld [vmem:[%s13326_s6 + $0x8e0] sm:$0xff]  ;;  %v5847_v63 = vld [vmem:[%s13326_s6 + $0xa10] sm:$0xff]  ;;  %v5850_v1 = vld [vmem:[%s13326_s6 + $0xa28] sm:$0xff] }
 0x255   : > { %5774 = vmatprep.subr.msk.mxu1 %vm887_vm3, %v5770_v8  ;;  %v5813_v8 = vld [vmem:[%s13326_s6 + $0x900] sm:$0xff] }
 0x256   : > { %v7273_v20 = vpack.c.bf16 %v5813_v8, %v5809_v7  ;;  %v7291_v7 = vpack.c.bf16 %v5854_v2, %v5850_v1  ;;  %v5849_v8 = vld [vmem:[%s13326_s6 + $0xa20] sm:$0xff] }
 0x257   : > { %5772 = vmatpush1.msk.msra.mxu0 %vm887_vm3, %v5767_v19  ;;  %v5824_v19 = vld [vmem:[%s13326_s6 + $0x958] sm:$0xff] }
 0x258   : > { %5775 = vmatpush1.msk.msra.mxu1 %vm887_vm3, %v5769_v22  ;;  %1514 = vmatmul.mubr.f32.vlgmr.msra.gmra.mrb[22].mxu0 %v1432_v26  ;;  %v7275_v22 = vpack.c.bf16 %v5822_v15, %v5818_v14  ;;  %v5855_v14 = vld [vmem:[%s13326_s6 + $0xa50] sm:$0xff]  ;;  %v7293_v15 = vpack.c.bf16 %v5853_v9, %v5849_v8  ;;  %v5900_v8 = vld [vmem:[%s13326_s6 + $0xb88] sm:$0xff] }
 0x259   : > { %1585 = vmatmul.mubr.f32.vlgmr.msra.gmra.mrb[8].mxu1 %v1432_v26  ;;  %7256 = vmatprep.subr.bf16.mxu0 %v7255_v23  ;;  %v5817_v23 = vld [vmem:[%s13326_s6 + $0x920] sm:$0xff]  ;;  %v7315_v26 = vpack.c.bf16 %v5824_v19, %v5820_v18  ;;  %v7333_v18 = vpack.c.bf16 %v5855_v14, %v5851_v13  ;;  %v5858_v19 = vld [vmem:[%s13326_s6 + $0xa68] sm:$0x1f]  ;;  %v5906_v13 = vld [vmem:[%s13326_s6 + $0xbb8] sm:$0xff] }
 0x25a   : > { %7296 = vmatprep.subr.bf16.mxu1 %v7295_v27  ;;  %7258 = vmatpush1.bf16.msra.mxu0 %v7257_v28  ;;  %v5823_v27 = vld [vmem:[%s13326_s6 + $0x950] sm:$0xff]  ;;  %v5826_v28 = vld [vmem:[%s13326_s6 + $0x968] sm:$0xff]  ;;  %v7277_v32 = vpack.c.bf16 %v5821_v24, %v5817_v23  ;;  %v5870_v23 = vld [vmem:[%s13326_s6 + $0xa98] sm:$0xff] }
 0x25b   : > { %5863 = vmatprep.mubr.msk.f32.mxu0 %vm883_vm4, %v1707_v39  ;;  %7298 = vmatpush1.bf16.msra.mxu1 %v7297_v31  ;;  %v5832_v31 = vld [vmem:[%s13326_s6 + $0x998] sm:$0xff]  ;;  %v7317_v33 = vpack.c.bf16 %v5823_v27, %v5819_v25  ;;  %v7279_v34 = vpack.c.bf16 %v5830_v29, %v5826_v28  ;;  %v5867_v25 = vld [vmem:[%s13326_s6 + $0xa80] sm:$0xff]  ;;  %v5869_v28 = vld [vmem:[%s13326_s6 + $0xa90] sm:$0xff] }
 0x25c   : > { %5866 = vmatprep.mubr.msk.f32.mxu1 %vm883_vm4, %v1707_v39  ;;  %7260 = vmatprep.subr.bf16.mxu0 %v7259_v35  ;;  %v5825_v35 = vld [vmem:[%s13326_s6 + $0x960] sm:$0xff]  ;;  %v7319_v38 = vpack.c.bf16 %v5832_v31, %v5828_v30  ;;  %v5831_v39 = vld [vmem:[%s13326_s6 + $0x990] sm:$0xff]  ;;  %v5874_v24 = vld [vmem:[%s13326_s6 + $0xab8] sm:$0xff] }
 0x25d   : > { %7300 = vmatprep.subr.bf16.mxu1 %v7299_v40  ;;  %v5834_v40 = vld [vmem:[%s13326_s6 + $0x9a8] sm:$0xff]  ;;  %v5857_v27 = vld [vmem:[%s13326_s6 + $0xa60] sm:$0x1f]  ;;  %v5873_v29 = vld [vmem:[%s13326_s6 + $0xab0] sm:$0xff] }
 0x25e   : > { %7262 = vmatpush1.bf16.msra.mxu0 %v7261_v43  ;;  %v5840_v43 = vld [vmem:[%s13326_s6 + $0x9d8] sm:$0xff]  ;;  %v7283_v46 = vpack.c.bf16 %v5838_v41, %v5834_v40  ;;  %v5859_v30 = vld [vmem:[%s13326_s6 + $0xa70] sm:$0x1f]  ;;  %v5875_v40 = vld [vmem:[%s13326_s6 + $0xac0] sm:$0xff] }
 0x25f   : > { %7302 = vmatpush1.bf16.msra.mxu1 %v7301_v44  ;;  %7264 = vmatprep.subr.bf16.mxu0 %v7263_v45  ;;  %v7281_v44 = vpack.c.bf16 %v5829_v36, %v5825_v35  ;;  %v7321_v45 = vpack.c.bf16 %v5831_v39, %v5827_v37  ;;  %v7323_v50 = vpack.c.bf16 %v5840_v43, %v5836_v42  ;;  %v5878_v37 = vld [vmem:[%s13326_s6 + $0xad8] sm:$0xff]  ;;  %v5879_v41 = vld [vmem:[%s13326_s6 + $0xae0] sm:$0xff]  ;;  %v5877_v42 = vld [vmem:[%s13326_s6 + $0xad0] sm:$0xff] }
 0x260   : > { %7304 = vmatprep.subr.bf16.mxu1 %v7303_v49  ;;  %v5835_v49 = vld [vmem:[%s13326_s6 + $0x9b0] sm:$0xff]  ;;  %v7375_v35 = vpack.c.bf16 %v5874_v24, %v5870_v23  ;;  %v7377_v39 = vpack.c.bf16 %v5873_v29, %v5869_v28  ;;  %v5904_v9 = vld [vmem:[%s13326_s6 + $0xba8] sm:$0xff] }
 0x261   : > { %v5905_v23 = vld [vmem:[%s13326_s6 + $0xbb0] sm:$0xff]  ;;  %v5908_v24 = vld [vmem:[%s13326_s6 + $0xbc8] sm:$0xff] }
 0x262   : > { %7266 = vmatpush1.bf16.msra.mxu0 %v7265_v55  ;;  %v5848_v55 = vld [vmem:[%s13326_s6 + $0xa18] sm:$0xff] }
 0x263   : > { %7306 = vmatpush1.bf16.msra.mxu1 %v7305_v56  ;;  %7268 = vmatprep.subr.bf16.mxu0 %v7267_v57  ;;  %v7285_v56 = vpack.c.bf16 %v5837_v48, %v5833_v47  ;;  %v7325_v57 = vpack.c.bf16 %v5839_v51, %v5835_v49  ;;  %v7327_v62 = vpack.c.bf16 %v5848_v55, %v5844_v54  ;;  %v1981_v47 = vrot.slane %v9019_v10, 4  ;;  %v5886_v49 = vld [vmem:[%s13326_s6 + $0xb18] sm:$0xff]  ;;  %v5883_v54 = vld [vmem:[%s13326_s6 + $0xb00] sm:$0xff] }
 0x264   : > { %7308 = vmatprep.subr.bf16.mxu1 %v7307_v61  ;;  %v5843_v61 = vld [vmem:[%s13326_s6 + $0x9f0] sm:$0xff]  ;;  %v7341_v51 = vpack.c.bf16 %v5879_v41, %v5875_v40  ;;  %v5887_v55 = vld [vmem:[%s13326_s6 + $0xb20] sm:$0xff] }
 0x266   : > { %7270 = vmatpush1.bf16.msra.mxu0 %v7269_v4  ;;  %v5856_v4 = vld [vmem:[%s13326_s6 + $0xa58] sm:$0xff] }
 0x267   : > { %7310 = vmatpush1.bf16.msra.mxu1 %v7309_v5  ;;  %7272 = vmatprep.subr.bf16.mxu0 %v7271_v6  ;;  %v7289_v5 = vpack.c.bf16 %v5845_v60, %v5841_v59  ;;  %v7329_v6 = vpack.c.bf16 %v5847_v63, %v5843_v61  ;;  %v5892_v59 = vld [vmem:[%s13326_s6 + $0xb48] sm:$0xff]  ;;  %v5894_v61 = vld [vmem:[%s13326_s6 + $0xb58] sm:$0xff]  ;;  %v7345_v63 = vpack.c.bf16 %v5887_v55, %v5883_v54  ;;  %v5923_v55 = vld [vmem:[%s13326_s6 + $0xc40] sm:$0xff] }
 0x268   : > { %7312 = vmatprep.subr.bf16.mxu1 %v7311_v12  ;;  %v7331_v12 = vpack.c.bf16 %v5856_v4, %v5852_v3  ;;  %v5896_v60 = vld [vmem:[%s13326_s6 + $0xb68] sm:$0xff]  ;;  %v5891_v3 = vld [vmem:[%s13326_s6 + $0xb40] sm:$0xff] }
 0x269   : > { %v7347_v2 = vpack.c.bf16 %v5896_v60, %v5892_v59  ;;  %v5895_v4 = vld [vmem:[%s13326_s6 + $0xb60] sm:$0xff]  ;;  %v5929_v59 = vld [vmem:[%s13326_s6 + $0xc70] sm:$0xff]  ;;  %v5932_v60 = vld [vmem:[%s13326_s6 + $0xc88] sm:$0xff] }
 0x26a   : > { %7274 = vmatpush1.bf16.msra.mxu0 %v7273_v20  ;;  %v5860_v20 = vld [vmem:[%s13326_s6 + $0xa78] sm:$0x1f]  ;;  %v7349_v14 = vpack.c.bf16 %v5895_v4, %v5891_v3  ;;  %v5931_v4 = vld [vmem:[%s13326_s6 + $0xc80] sm:$0xff] }
 0x26b   : > { %7314 = vmatpush1.bf16.msra.mxu1 %v7313_v21  ;;  %7276 = vmatprep.subr.bf16.mxu0 %v7275_v22  ;;  %v5868_v21 = vld [vmem:[%s13326_s6 + $0xa88] sm:$0xff] }
 0x26c   : > { %7316 = vmatprep.subr.bf16.mxu1 %v7315_v26  ;;  %v5872_v22 = vld [vmem:[%s13326_s6 + $0xaa8] sm:$0xff]  ;;  %v5871_v26 = vld [vmem:[%s13326_s6 + $0xaa0] sm:$0xff] }
 0x26d   : > { %v7335_v31 = vpack.c.bf16 %v5872_v22, %v5868_v21  ;;  %v7337_v36 = vpack.c.bf16 %v5871_v26, %v5867_v25  ;;  %v5901_v21 = vld [vmem:[%s13326_s6 + $0xb90] sm:$0xff]  ;;  %v5912_v25 = vld [vmem:[%s13326_s6 + $0xbe8] sm:$0xff]  ;;  %v5910_v26 = vld [vmem:[%s13326_s6 + $0xbd8] sm:$0xff] }
 0x26e   : > { %7278 = vmatpush1.bf16.msra.mxu0 %v7277_v32  ;;  %v5876_v32 = vld [vmem:[%s13326_s6 + $0xac8] sm:$0xff]  ;;  %v7393_v29 = vpack.c.bf16 %v5905_v23, %v5901_v21  ;;  %v5943_v21 = vld [vmem:[%s13326_s6 + $0xce0] sm:$0xff]  ;;  %v5941_v23 = vld [vmem:[%s13326_s6 + $0xcd0] sm:$0xff] }
 0x26f   : > { %7318 = vmatpush1.bf16.msra.mxu1 %v7317_v33  ;;  %7280 = vmatprep.subr.bf16.mxu0 %v7279_v34  ;;  %v5880_v33 = vld [vmem:[%s13326_s6 + $0xae8] sm:$0xff]  ;;  %v1706_v34 = vrot.slane %v9029_v16, 3 }
 0x270   : > { %7320 = vmatprep.subr.bf16.mxu1 %v7319_v38  ;;  %v5882_v38 = vld [vmem:[%s13326_s6 + $0xaf8] sm:$0xff]  ;;  %v7339_v43 = vpack.c.bf16 %v5880_v33, %v5876_v32  ;;  %v5911_v32 = vld [vmem:[%s13326_s6 + $0xbe0] sm:$0xff]  ;;  %v5909_v33 = vld [vmem:[%s13326_s6 + $0xbd0] sm:$0xff] }
 0x271   : > { %v7379_v48 = vpack.c.bf16 %v5882_v38, %v5878_v37  ;;  %v5920_v37 = vld [vmem:[%s13326_s6 + $0xc28] sm:$0xff]  ;;  %v5918_v38 = vld [vmem:[%s13326_s6 + $0xc18] sm:$0xff] }
 0x272   : > { %7282 = vmatpush1.bf16.msra.mxu0 %v7281_v44  ;;  %v5881_v44 = vld [vmem:[%s13326_s6 + $0xaf0] sm:$0xff] }
 0x273   : > { %7322 = vmatpush1.bf16.msra.mxu1 %v7321_v45  ;;  %7284 = vmatprep.subr.bf16.mxu0 %v7283_v46  ;;  %v5884_v45 = vld [vmem:[%s13326_s6 + $0xb08] sm:$0xff]  ;;  %v7381_v52 = vpack.c.bf16 %v5881_v44, %v5877_v42  ;;  %v5919_v44 = vld [vmem:[%s13326_s6 + $0xc20] sm:$0xff] }
 0x274   : > { %7324 = vmatprep.subr.bf16.mxu1 %v7323_v50  ;;  %v5888_v46 = vld [vmem:[%s13326_s6 + $0xb28] sm:$0xff]  ;;  %v5890_v50 = vld [vmem:[%s13326_s6 + $0xb38] sm:$0xff] }
 0x275   : > { %v7343_v53 = vpack.c.bf16 %v5888_v46, %v5884_v45  ;;  %v5917_v45 = vld [vmem:[%s13326_s6 + $0xc10] sm:$0xff] }
 0x276   : > { %7286 = vmatpush1.bf16.msra.mxu0 %v7285_v56  ;;  %v5885_v56 = vld [vmem:[%s13326_s6 + $0xb10] sm:$0xff] }
 0x277   : > { %7326 = vmatpush1.bf16.msra.mxu1 %v7325_v57  ;;  %7288 = vmatprep.subr.bf16.mxu0 %v7287_v58  ;;  %v7383_v57 = vpack.c.bf16 %v5890_v50, %v5886_v49  ;;  %v5889_v58 = vld [vmem:[%s13326_s6 + $0xb30] sm:$0xff]  ;;  %v5928_v49 = vld [vmem:[%s13326_s6 + $0xc68] sm:$0xff]  ;;  %v5926_v50 = vld [vmem:[%s13326_s6 + $0xc58] sm:$0xff] }
 0x278   : > { %7328 = vmatprep.subr.bf16.mxu1 %v7327_v62  ;;  %v5898_v62 = vld [vmem:[%s13326_s6 + $0xb78] sm:$0xff]  ;;  %v7385_v1 = vpack.c.bf16 %v5889_v58, %v5885_v56  ;;  %v5927_v56 = vld [vmem:[%s13326_s6 + $0xc60] sm:$0xff] }
 0x27a   : > { %7290 = vmatpush1.bf16.msra.mxu0 %v7289_v5  ;;  %v5893_v5 = vld [vmem:[%s13326_s6 + $0xb50] sm:$0xff] }
 0x27b   : > { %7330 = vmatpush1.bf16.msra.mxu1 %v7329_v6  ;;  %7292 = vmatprep.subr.bf16.mxu0 %v7291_v7  ;;  %v7387_v6 = vpack.c.bf16 %v5898_v62, %v5894_v61  ;;  %v5897_v7 = vld [vmem:[%s13326_s6 + $0xb70] sm:$0xff]  ;;  %v5936_v61 = vld [vmem:[%s13326_s6 + $0xca8] sm:$0xff]  ;;  %v5934_v62 = vld [vmem:[%s13326_s6 + $0xc98] sm:$0xff] }
 0x27c   : > { %7332 = vmatprep.subr.bf16.mxu1 %v7331_v12  ;;  %v5902_v12 = vld [vmem:[%s13326_s6 + $0xb98] sm:$0xff]  ;;  %v7367_v3 = vpack.c.bf16 %v5936_v61, %v5932_v60 }
 0x27d   : > { %v7391_v22 = vpack.c.bf16 %v5906_v13, %v5902_v12  ;;  %v5944_v12 = vld [vmem:[%s13326_s6 + $0xce8] sm:$0xff]  ;;  %v5942_v13 = vld [vmem:[%s13326_s6 + $0xcd8] sm:$0xff] }
 0x27e   : > { %7294 = vmatpush1.bf16.msra.mxu0 %v7293_v15  ;;  %v7389_v15 = vpack.c.bf16 %v5897_v7, %v5893_v5  ;;  %v5935_v5 = vld [vmem:[%s13326_s6 + $0xca0] sm:$0xff] }
 0x27f   : > { %7334 = vmatpush1.bf16.msra.mxu1 %v7333_v18  ;;  %5861 = vmatprep.subr.msk.mxu0 %vm887_vm3, %v5858_v19  ;;  %v7351_v18 = vpack.c.bf16 %v5904_v9, %v5900_v8  ;;  %v5899_v19 = vld [vmem:[%s13326_s6 + $0xb80] sm:$0xff]  ;;  %v5937_v8 = vld [vmem:[%s13326_s6 + $0xcb0] sm:$0xff]  ;;  %v5940_v9 = vld [vmem:[%s13326_s6 + $0xcc8] sm:$0xff] }
 0x280   : > { %5864 = vmatprep.subr.msk.mxu1 %vm887_vm3, %v5860_v20  ;;  %v5903_v20 = vld [vmem:[%s13326_s6 + $0xba0] sm:$0xff] }
 0x281   : > { %v7353_v28 = vpack.c.bf16 %v5903_v20, %v5899_v19  ;;  %v7371_v19 = vpack.c.bf16 %v5944_v12, %v5940_v9  ;;  %v5939_v20 = vld [vmem:[%s13326_s6 + $0xcc0] sm:$0xff] }
 0x282   : > { %5862 = vmatpush1.msk.msra.mxu0 %vm887_vm3, %v5857_v27  ;;  %v5914_v27 = vld [vmem:[%s13326_s6 + $0xbf8] sm:$0xff] }
 0x283   : > { %5865 = vmatpush1.msk.msra.mxu1 %vm887_vm3, %v5859_v30  ;;  %1788 = vmatmul.mubr.f32.vlgmr.msra.gmra.mrb[24].mxu0 %v1706_v34  ;;  %v7355_v30 = vpack.c.bf16 %v5912_v25, %v5908_v24  ;;  %v5945_v24 = vld [vmem:[%s13326_s6 + $0xcf0] sm:$0xff]  ;;  %v7373_v25 = vpack.c.bf16 %v5943_v21, %v5939_v20  ;;  %v5990_v20 = vld [vmem:[%s13326_s6 + $0xe28] sm:$0xff] }
 0x284   : > { %1859 = vmatmul.mubr.f32.vlgmr.msra.gmra.mrb[10].mxu1 %v1706_v34  ;;  %7336 = vmatprep.subr.bf16.mxu0 %v7335_v31  ;;  %v5907_v31 = vld [vmem:[%s13326_s6 + $0xbc0] sm:$0xff]  ;;  %v7395_v34 = vpack.c.bf16 %v5914_v27, %v5910_v26  ;;  %v7413_v26 = vpack.c.bf16 %v5945_v24, %v5941_v23  ;;  %v5948_v27 = vld [vmem:[%s13326_s6 + $0xd08] sm:$0x1f]  ;;  %v5996_v23 = vld [vmem:[%s13326_s6 + $0xe58] sm:$0xff] }
 0x285   : > { %7376 = vmatprep.subr.bf16.mxu1 %v7375_v35  ;;  %7338 = vmatpush1.bf16.msra.mxu0 %v7337_v36  ;;  %v5913_v35 = vld [vmem:[%s13326_s6 + $0xbf0] sm:$0xff]  ;;  %v5916_v36 = vld [vmem:[%s13326_s6 + $0xc08] sm:$0xff]  ;;  %v7357_v40 = vpack.c.bf16 %v5911_v32, %v5907_v31  ;;  %v5960_v31 = vld [vmem:[%s13326_s6 + $0xd38] sm:$0xff] }
 0x286   : > { %5953 = vmatprep.mubr.msk.f32.mxu0 %vm883_vm4, %v1981_v47  ;;  %7378 = vmatpush1.bf16.msra.mxu1 %v7377_v39  ;;  %v5922_v39 = vld [vmem:[%s13326_s6 + $0xc38] sm:$0xff]  ;;  %v7397_v41 = vpack.c.bf16 %v5913_v35, %v5909_v33  ;;  %v7359_v42 = vpack.c.bf16 %v5920_v37, %v5916_v36  ;;  %v5957_v33 = vld [vmem:[%s13326_s6 + $0xd20] sm:$0xff]  ;;  %v5959_v36 = vld [vmem:[%s13326_s6 + $0xd30] sm:$0xff] }
 0x287   : > { %5956 = vmatprep.mubr.msk.f32.mxu1 %vm883_vm4, %v1981_v47  ;;  %7340 = vmatprep.subr.bf16.mxu0 %v7339_v43  ;;  %v5915_v43 = vld [vmem:[%s13326_s6 + $0xc00] sm:$0xff]  ;;  %v7399_v46 = vpack.c.bf16 %v5922_v39, %v5918_v38  ;;  %v5921_v47 = vld [vmem:[%s13326_s6 + $0xc30] sm:$0xff]  ;;  %v5964_v32 = vld [vmem:[%s13326_s6 + $0xd58] sm:$0xff] }
 0x288   : > { %7380 = vmatprep.subr.bf16.mxu1 %v7379_v48  ;;  %v5924_v48 = vld [vmem:[%s13326_s6 + $0xc48] sm:$0xff]  ;;  %v5947_v35 = vld [vmem:[%s13326_s6 + $0xd00] sm:$0x1f]  ;;  %v5963_v37 = vld [vmem:[%s13326_s6 + $0xd50] sm:$0xff] }
 0x289   : > { %7342 = vmatpush1.bf16.msra.mxu0 %v7341_v51  ;;  %v5930_v51 = vld [vmem:[%s13326_s6 + $0xc78] sm:$0xff]  ;;  %v7363_v54 = vpack.c.bf16 %v5928_v49, %v5924_v48  ;;  %v5949_v38 = vld [vmem:[%s13326_s6 + $0xd10] sm:$0x1f]  ;;  %v5965_v48 = vld [vmem:[%s13326_s6 + $0xd60] sm:$0xff] }
 0x28a   : > { %7382 = vmatpush1.bf16.msra.mxu1 %v7381_v52  ;;  %7344 = vmatprep.subr.bf16.mxu0 %v7343_v53  ;;  %v7361_v52 = vpack.c.bf16 %v5919_v44, %v5915_v43  ;;  %v7401_v53 = vpack.c.bf16 %v5921_v47, %v5917_v45  ;;  %v7403_v58 = vpack.c.bf16 %v5930_v51, %v5926_v50  ;;  %v5968_v45 = vld [vmem:[%s13326_s6 + $0xd78] sm:$0xff]  ;;  %v5969_v49 = vld [vmem:[%s13326_s6 + $0xd80] sm:$0xff]  ;;  %v5967_v50 = vld [vmem:[%s13326_s6 + $0xd70] sm:$0xff] }
 0x28b   : > { %7384 = vmatprep.subr.bf16.mxu1 %v7383_v57  ;;  %v5925_v57 = vld [vmem:[%s13326_s6 + $0xc50] sm:$0xff]  ;;  %v7455_v43 = vpack.c.bf16 %v5964_v32, %v5960_v31  ;;  %v7457_v47 = vpack.c.bf16 %v5963_v37, %v5959_v36  ;;  %v5994_v21 = vld [vmem:[%s13326_s6 + $0xe48] sm:$0xff] }
 0x28c   : > { %v5995_v31 = vld [vmem:[%s13326_s6 + $0xe50] sm:$0xff]  ;;  %v5998_v32 = vld [vmem:[%s13326_s6 + $0xe68] sm:$0xff] }
 0x28d   : > { %7346 = vmatpush1.bf16.msra.mxu0 %v7345_v63  ;;  %v5938_v63 = vld [vmem:[%s13326_s6 + $0xcb8] sm:$0xff] }
 0x28e   : > { %7386 = vmatpush1.bf16.msra.mxu1 %v7385_v1  ;;  %7348 = vmatprep.subr.bf16.mxu0 %v7347_v2  ;;  %v7365_v1 = vpack.c.bf16 %v5927_v56, %v5923_v55  ;;  %v7405_v2 = vpack.c.bf16 %v5929_v59, %v5925_v57  ;;  %v7407_v7 = vpack.c.bf16 %v5938_v63, %v5934_v62  ;;  %v2255_v55 = vrot.slane %v9019_v10, 5  ;;  %v5976_v57 = vld [vmem:[%s13326_s6 + $0xdb8] sm:$0xff]  ;;  %v5973_v62 = vld [vmem:[%s13326_s6 + $0xda0] sm:$0xff] }
 0x28f   : > { %7388 = vmatprep.subr.bf16.mxu1 %v7387_v6  ;;  %v5933_v6 = vld [vmem:[%s13326_s6 + $0xc90] sm:$0xff]  ;;  %v7421_v59 = vpack.c.bf16 %v5969_v49, %v5965_v48  ;;  %v5977_v63 = vld [vmem:[%s13326_s6 + $0xdc0] sm:$0xff] }
 0x291   : > { %7350 = vmatpush1.bf16.msra.mxu0 %v7349_v14  ;;  %v5946_v14 = vld [vmem:[%s13326_s6 + $0xcf8] sm:$0xff] }
 0x292   : > { %7390 = vmatpush1.bf16.msra.mxu1 %v7389_v15  ;;  %7352 = vmatprep.subr.bf16.mxu0 %v7351_v18  ;;  %v7369_v15 = vpack.c.bf16 %v5935_v5, %v5931_v4  ;;  %v7409_v18 = vpack.c.bf16 %v5937_v8, %v5933_v6  ;;  %v5982_v4 = vld [vmem:[%s13326_s6 + $0xde8] sm:$0xff]  ;;  %v5984_v6 = vld [vmem:[%s13326_s6 + $0xdf8] sm:$0xff]  ;;  %v7425_v8 = vpack.c.bf16 %v5977_v63, %v5973_v62  ;;  %v6013_v63 = vld [vmem:[%s13326_s6 + $0xee0] sm:$0xff] }
 0x293   : > { %7392 = vmatprep.subr.bf16.mxu1 %v7391_v22  ;;  %v7411_v22 = vpack.c.bf16 %v5946_v14, %v5942_v13  ;;  %v5986_v5 = vld [vmem:[%s13326_s6 + $0xe08] sm:$0xff]  ;;  %v5981_v13 = vld [vmem:[%s13326_s6 + $0xde0] sm:$0xff] }
 0x294   : > { %v7427_v12 = vpack.c.bf16 %v5986_v5, %v5982_v4  ;;  %v5985_v14 = vld [vmem:[%s13326_s6 + $0xe00] sm:$0xff]  ;;  %v6019_v4 = vld [vmem:[%s13326_s6 + $0xf10] sm:$0xff]  ;;  %v6022_v5 = vld [vmem:[%s13326_s6 + $0xf28] sm:$0xff] }
 0x295   : > { %7354 = vmatpush1.bf16.msra.mxu0 %v7353_v28  ;;  %v5950_v28 = vld [vmem:[%s13326_s6 + $0xd18] sm:$0x1f]  ;;  %v7429_v24 = vpack.c.bf16 %v5985_v14, %v5981_v13  ;;  %v6021_v14 = vld [vmem:[%s13326_s6 + $0xf20] sm:$0xff] }
 0x296   : > { %7394 = vmatpush1.bf16.msra.mxu1 %v7393_v29  ;;  %7356 = vmatprep.subr.bf16.mxu0 %v7355_v30  ;;  %v5958_v29 = vld [vmem:[%s13326_s6 + $0xd28] sm:$0xff] }
 0x297   : > { %7396 = vmatprep.subr.bf16.mxu1 %v7395_v34  ;;  %v5962_v30 = vld [vmem:[%s13326_s6 + $0xd48] sm:$0xff]  ;;  %v5961_v34 = vld [vmem:[%s13326_s6 + $0xd40] sm:$0xff] }
 0x298   : > { %v7415_v39 = vpack.c.bf16 %v5962_v30, %v5958_v29  ;;  %v7417_v44 = vpack.c.bf16 %v5961_v34, %v5957_v33  ;;  %v5991_v29 = vld [vmem:[%s13326_s6 + $0xe30] sm:$0xff]  ;;  %v6002_v33 = vld [vmem:[%s13326_s6 + $0xe88] sm:$0xff]  ;;  %v6000_v34 = vld [vmem:[%s13326_s6 + $0xe78] sm:$0xff] }
 0x299   : > { %7358 = vmatpush1.bf16.msra.mxu0 %v7357_v40  ;;  %v5966_v40 = vld [vmem:[%s13326_s6 + $0xd68] sm:$0xff]  ;;  %v7473_v37 = vpack.c.bf16 %v5995_v31, %v5991_v29  ;;  %v6033_v29 = vld [vmem:[%s13326_s6 + $0xf80] sm:$0xff] }
 0x29a   : > { %7398 = vmatpush1.bf16.msra.mxu1 %v7397_v41  ;;  %7360 = vmatprep.subr.bf16.mxu0 %v7359_v42  ;;  %v5970_v41 = vld [vmem:[%s13326_s6 + $0xd88] sm:$0xff]  ;;  %v1980_v42 = vrot.slane %v9029_v16, 4 }
 0x29b   : > { %7400 = vmatprep.subr.bf16.mxu1 %v7399_v46  ;;  %v5972_v46 = vld [vmem:[%s13326_s6 + $0xd98] sm:$0xff]  ;;  %v7419_v51 = vpack.c.bf16 %v5970_v41, %v5966_v40  ;;  %v6001_v40 = vld [vmem:[%s13326_s6 + $0xe80] sm:$0xff]  ;;  %v5999_v41 = vld [vmem:[%s13326_s6 + $0xe70] sm:$0xff] }
 0x29c   : > { %v7459_v56 = vpack.c.bf16 %v5972_v46, %v5968_v45  ;;  %v6010_v45 = vld [vmem:[%s13326_s6 + $0xec8] sm:$0xff]  ;;  %v6008_v46 = vld [vmem:[%s13326_s6 + $0xeb8] sm:$0xff] }
 0x29d   : > { %7362 = vmatpush1.bf16.msra.mxu0 %v7361_v52  ;;  %v5971_v52 = vld [vmem:[%s13326_s6 + $0xd90] sm:$0xff] }
 0x29e   : > { %7402 = vmatpush1.bf16.msra.mxu1 %v7401_v53  ;;  %7364 = vmatprep.subr.bf16.mxu0 %v7363_v54  ;;  %v5974_v53 = vld [vmem:[%s13326_s6 + $0xda8] sm:$0xff]  ;;  %v7461_v60 = vpack.c.bf16 %v5971_v52, %v5967_v50  ;;  %v6009_v52 = vld [vmem:[%s13326_s6 + $0xec0] sm:$0xff] }
 0x29f   : > { %7404 = vmatprep.subr.bf16.mxu1 %v7403_v58  ;;  %v5978_v54 = vld [vmem:[%s13326_s6 + $0xdc8] sm:$0xff]  ;;  %v5980_v58 = vld [vmem:[%s13326_s6 + $0xdd8] sm:$0xff] }
 0x2a0   : > { %v7423_v61 = vpack.c.bf16 %v5978_v54, %v5974_v53  ;;  %v6007_v53 = vld [vmem:[%s13326_s6 + $0xeb0] sm:$0xff] }
 0x2a1   : > { %7366 = vmatpush1.bf16.msra.mxu0 %v7365_v1  ;;  %v5975_v1 = vld [vmem:[%s13326_s6 + $0xdb0] sm:$0xff] }
 0x2a2   : > { %7406 = vmatpush1.bf16.msra.mxu1 %v7405_v2  ;;  %7368 = vmatprep.subr.bf16.mxu0 %v7367_v3  ;;  %v7463_v2 = vpack.c.bf16 %v5980_v58, %v5976_v57  ;;  %v5979_v3 = vld [vmem:[%s13326_s6 + $0xdd0] sm:$0xff]  ;;  %v6018_v57 = vld [vmem:[%s13326_s6 + $0xf08] sm:$0xff]  ;;  %v6016_v58 = vld [vmem:[%s13326_s6 + $0xef8] sm:$0xff] }
 0x2a3   : > { %7408 = vmatprep.subr.bf16.mxu1 %v7407_v7  ;;  %v5988_v7 = vld [vmem:[%s13326_s6 + $0xe18] sm:$0xff]  ;;  %v7465_v9 = vpack.c.bf16 %v5979_v3, %v5975_v1  ;;  %v6017_v1 = vld [vmem:[%s13326_s6 + $0xf00] sm:$0xff] }
 0x2a5   : > { %7370 = vmatpush1.bf16.msra.mxu0 %v7369_v15  ;;  %v5983_v15 = vld [vmem:[%s13326_s6 + $0xdf0] sm:$0xff] }
 0x2a6   : > { %7410 = vmatpush1.bf16.msra.mxu1 %v7409_v18  ;;  %7372 = vmatprep.subr.bf16.mxu0 %v7371_v19  ;;  %v7467_v18 = vpack.c.bf16 %v5988_v7, %v5984_v6  ;;  %v5987_v19 = vld [vmem:[%s13326_s6 + $0xe10] sm:$0xff]  ;;  %v6026_v6 = vld [vmem:[%s13326_s6 + $0xf48] sm:$0xff]  ;;  %v6024_v7 = vld [vmem:[%s13326_s6 + $0xf38] sm:$0xff] }
 0x2a7   : > { %7412 = vmatprep.subr.bf16.mxu1 %v7411_v22  ;;  %v5992_v22 = vld [vmem:[%s13326_s6 + $0xe38] sm:$0xff]  ;;  %v7447_v13 = vpack.c.bf16 %v6026_v6, %v6022_v5  ;;  %v6055_v5 = vld [vmem:[%s13326_s6 + $0x1000] sm:$0xff] }
 0x2a8   : > { %v7471_v30 = vpack.c.bf16 %v5996_v23, %v5992_v22  ;;  %v6034_v22 = vld [vmem:[%s13326_s6 + $0xf88] sm:$0xff]  ;;  %v6032_v23 = vld [vmem:[%s13326_s6 + $0xf78] sm:$0xff]  ;;  %v6059_v6 = vld [vmem:[%s13326_s6 + $0x1020] sm:$0xff] }
 0x2a9   : > { %7374 = vmatpush1.bf16.msra.mxu0 %v7373_v25  ;;  %v7469_v25 = vpack.c.bf16 %v5987_v19, %v5983_v15  ;;  %v6025_v15 = vld [vmem:[%s13326_s6 + $0xf40] sm:$0xff] }
 0x2aa   : > { %7414 = vmatpush1.bf16.msra.mxu1 %v7413_v26  ;;  %5951 = vmatprep.subr.msk.mxu0 %vm887_vm3, %v5948_v27  ;;  %v7431_v26 = vpack.c.bf16 %v5994_v21, %v5990_v20  ;;  %v5989_v27 = vld [vmem:[%s13326_s6 + $0xe20] sm:$0xff]  ;;  %v6027_v20 = vld [vmem:[%s13326_s6 + $0xf50] sm:$0xff]  ;;  %v6030_v21 = vld [vmem:[%s13326_s6 + $0xf68] sm:$0xff] }
 0x2ab   : > { %5954 = vmatprep.subr.msk.mxu1 %vm887_vm3, %v5950_v28  ;;  %v5993_v28 = vld [vmem:[%s13326_s6 + $0xe40] sm:$0xff] }
 0x2ac   : > { %v7433_v36 = vpack.c.bf16 %v5993_v28, %v5989_v27  ;;  %v7451_v27 = vpack.c.bf16 %v6034_v22, %v6030_v21  ;;  %v6029_v28 = vld [vmem:[%s13326_s6 + $0xf60] sm:$0xff]  ;;  %v6070_v21 = vld [vmem:[%s13326_s6 + $0x1078] sm:$0xff]  ;;  %v7501_v22 = vpack.c.bf16 %v6059_v6, %v6055_v5  ;;  %v6093_v5 = vld [vmem:[%s13326_s6 + $0x1130] sm:$0xff] }
 0x2ad   : > { %5952 = vmatpush1.msk.msra.mxu0 %vm887_vm3, %v5947_v35  ;;  %v6004_v35 = vld [vmem:[%s13326_s6 + $0xe98] sm:$0xff]  ;;  %v6096_v6 = vld [vmem:[%s13326_s6 + $0x1148] sm:$0xff] }
 0x2ae   : > { %5955 = vmatpush1.msk.msra.mxu1 %vm887_vm3, %v5949_v38  ;;  %2062 = vmatmul.mubr.f32.vlgmr.msra.gmra.mrb[26].mxu0 %v1980_v42  ;;  %v7435_v38 = vpack.c.bf16 %v6002_v33, %v5998_v32  ;;  %v6031_v33 = vld [vmem:[%s13326_s6 + $0xf70] sm:$0xff] }
 0x2af   : > { %2133 = vmatmul.mubr.f32.vlgmr.msra.gmra.mrb[12].mxu1 %v1980_v42  ;;  %7416 = vmatprep.subr.bf16.mxu0 %v7415_v39  ;;  %v5997_v39 = vld [vmem:[%s13326_s6 + $0xe60] sm:$0xff]  ;;  %v7475_v42 = vpack.c.bf16 %v6004_v35, %v6000_v34  ;;  %v6035_v34 = vld [vmem:[%s13326_s6 + $0xf90] sm:$0xff]  ;;  %v757_v35 = vlaneseq }
 0x2b0   : > { %7456 = vmatprep.subr.bf16.mxu1 %v7455_v43  ;;  %7418 = vmatpush1.bf16.msra.mxu0 %v7417_v44  ;;  %v6003_v43 = vld [vmem:[%s13326_s6 + $0xe90] sm:$0xff]  ;;  %v6006_v44 = vld [vmem:[%s13326_s6 + $0xea8] sm:$0xff]  ;;  %v7437_v48 = vpack.c.bf16 %v6001_v40, %v5997_v39  ;;  %v6040_v40 = vld [vmem:[%s13326_s6 + $0xfb8] sm:$0x1f] }
 0x2b1   : > { %6043 = vmatprep.mubr.msk.f32.mxu0 %vm883_vm4, %v2255_v55  ;;  %7458 = vmatpush1.bf16.msra.mxu1 %v7457_v47  ;;  %v6012_v47 = vld [vmem:[%s13326_s6 + $0xed8] sm:$0xff]  ;;  %v7477_v49 = vpack.c.bf16 %v6003_v43, %v5999_v41  ;;  %v7439_v50 = vpack.c.bf16 %v6010_v45, %v6006_v44  ;;  %v6038_v39 = vld [vmem:[%s13326_s6 + $0xfa8] sm:$0x1f]  ;;  %v10295_v44 = vshrl.u32 %v757_v35, 7 }
 0x2b2   : > { %6046 = vmatprep.mubr.msk.f32.mxu1 %vm883_vm4, %v2255_v55  ;;  %7420 = vmatprep.subr.bf16.mxu0 %v7419_v51  ;;  %v6005_v51 = vld [vmem:[%s13326_s6 + $0xea0] sm:$0xff]  ;;  %v7479_v54 = vpack.c.bf16 %v6012_v47, %v6008_v46  ;;  %v6011_v55 = vld [vmem:[%s13326_s6 + $0xed0] sm:$0xff]  ;;  %v6048_v41 = vld [vmem:[%s13326_s6 + $0xfc8] sm:$0xff] }
 0x2b3   : > { %7460 = vmatprep.subr.bf16.mxu1 %v7459_v56  ;;  %v6014_v56 = vld [vmem:[%s13326_s6 + $0xee8] sm:$0xff]  ;;  %v6050_v43 = vld [vmem:[%s13326_s6 + $0xfd8] sm:$0xff]  ;;  %v6047_v46 = vld [vmem:[%s13326_s6 + $0xfc0] sm:$0xff] }
 0x2b4   : > { %7422 = vmatpush1.bf16.msra.mxu0 %v7421_v59  ;;  %v6020_v59 = vld [vmem:[%s13326_s6 + $0xf18] sm:$0xff]  ;;  %v7443_v62 = vpack.c.bf16 %v6018_v57, %v6014_v56  ;;  %v6051_v47 = vld [vmem:[%s13326_s6 + $0xfe0] sm:$0xff]  ;;  %v6056_v56 = vld [vmem:[%s13326_s6 + $0x1008] sm:$0xff] }
 0x2b5   : > { %7462 = vmatpush1.bf16.msra.mxu1 %v7461_v60  ;;  %7424 = vmatprep.subr.bf16.mxu0 %v7423_v61  ;;  %v7441_v60 = vpack.c.bf16 %v6009_v52, %v6005_v51  ;;  %v7481_v61 = vpack.c.bf16 %v6011_v55, %v6007_v53  ;;  %v7483_v3 = vpack.c.bf16 %v6020_v59, %v6016_v58  ;;  %v6054_v45 = vld [vmem:[%s13326_s6 + $0xff8] sm:$0xff]  ;;  %v6039_v52 = vld [vmem:[%s13326_s6 + $0xfb0] sm:$0x1f]  ;;  %v6060_v57 = vld [vmem:[%s13326_s6 + $0x1028] sm:$0xff]  ;;  %v2254_v58 = vrot.slane %v9029_v16, 5 }
 0x2b6   : > { %7464 = vmatprep.subr.bf16.mxu1 %v7463_v2  ;;  %v6015_v2 = vld [vmem:[%s13326_s6 + $0xef0] sm:$0xff]  ;;  %v7535_v59 = vpack.c.bf16 %v6054_v45, %v6050_v43  ;;  %v6080_v43 = vld [vmem:[%s13326_s6 + $0x10c8] sm:$0xff] }
 0x2b7   : > { %v6084_v45 = vld [vmem:[%s13326_s6 + $0x10e8] sm:$0xff] }
 0x2b8   : > { %7426 = vmatpush1.bf16.msra.mxu0 %v7425_v8  ;;  %v6028_v8 = vld [vmem:[%s13326_s6 + $0xf58] sm:$0xff] }
 0x2b9   : > { %7466 = vmatpush1.bf16.msra.mxu1 %v7465_v9  ;;  %7428 = vmatprep.subr.bf16.mxu0 %v7427_v12  ;;  %v7445_v9 = vpack.c.bf16 %v6017_v1, %v6013_v63  ;;  %v7485_v12 = vpack.c.bf16 %v6019_v4, %v6015_v2  ;;  %v7487_v19 = vpack.c.bf16 %v6028_v8, %v6024_v7  ;;  %v6058_v63 = vld [vmem:[%s13326_s6 + $0x1018] sm:$0xff]  ;;  %v6057_v7 = vld [vmem:[%s13326_s6 + $0x1010] sm:$0xff] }
 0x2ba   : > { %7468 = vmatprep.subr.bf16.mxu1 %v7467_v18  ;;  %v6023_v18 = vld [vmem:[%s13326_s6 + $0xf30] sm:$0xff]  ;;  %v6062_v1 = vld [vmem:[%s13326_s6 + $0x1038] sm:$0xff]  ;;  %v7499_v8 = vpack.c.bf16 %v6060_v57, %v6056_v56  ;;  %v6088_v57 = vld [vmem:[%s13326_s6 + $0x1108] sm:$0xff] }
 0x2bb   : > { %v6085_v56 = vld [vmem:[%s13326_s6 + $0x10f0] sm:$0xff] }
 0x2bc   : > { %7430 = vmatpush1.bf16.msra.mxu0 %v7429_v24  ;;  %v6036_v24 = vld [vmem:[%s13326_s6 + $0xf98] sm:$0xff] }
 0x2bd   : > { %7470 = vmatpush1.bf16.msra.mxu1 %v7469_v25  ;;  %7432 = vmatprep.subr.bf16.mxu0 %v7431_v26  ;;  %v7449_v25 = vpack.c.bf16 %v6025_v15, %v6021_v14  ;;  %v7489_v26 = vpack.c.bf16 %v6027_v20, %v6023_v18  ;;  %v7491_v32 = vpack.c.bf16 %v6036_v24, %v6032_v23  ;;  %v2529_v14 = vrot.slane %v9019_v10, 6  ;;  %v6066_v20 = vld [vmem:[%s13326_s6 + $0x1058] sm:$0xff] }
 0x2be   : > { %7472 = vmatprep.subr.bf16.mxu1 %v7471_v30  ;;  %v8498_v30 = vmov 1966171168  }
 0x2bf   : > { %v1049_v31 = vunpack.c.l.s4 %v8498_v30  ;;  %v6069_v30 = vld [vmem:[%s13326_s6 + $0x1070] sm:$0xff] }
 0x2c0   : > { %7434 = vmatpush1.bf16.msra.mxu0 %v7433_v36  ;;  %v7453_v36 = vpack.c.bf16 %v6033_v29, %v6029_v28  ;;  %v6065_v28 = vld [vmem:[%s13326_s6 + $0x1050] sm:$0xff]  ;;  %v7543_v29 = vpack.c.bf16 %v6070_v21, %v6066_v20  ;;  %v6099_v20 = vld [vmem:[%s13326_s6 + $0x1160] sm:$0xff] }
 0x2c1   : > { %7474 = vmatpush1.bf16.msra.mxu1 %v7473_v37  ;;  %7436 = vmatprep.subr.bf16.mxu0 %v7435_v38  ;;  %v7493_v37 = vpack.c.bf16 %v6035_v34, %v6031_v33  ;;  %v1050_v38 = vunpack.c.0.s8 %v1049_v31  ;;  %v6072_v31 = vld [vmem:[%s13326_s6 + $0x1088] sm:$0xff]  ;;  %v6074_v33 = vld [vmem:[%s13326_s6 + $0x1098] sm:$0xff]  ;;  %v6097_v21 = vld [vmem:[%s13326_s6 + $0x1150] sm:$0xff] }
 0x2c2   : > { %7476 = vmatprep.subr.bf16.mxu1 %v7475_v42  ;;  %v6052_v42 = vld [vmem:[%s13326_s6 + $0xfe8] sm:$0xff]  ;;  %v6078_v34 = vld [vmem:[%s13326_s6 + $0x10b8] sm:$0xff] }
 0x2c3   : > { %v10317_v51 = vsub.s32 %v1050_v38, %v10295_v44  ;;  %v7495_v53 = vpack.c.bf16 %v6052_v42, %v6048_v41  ;;  %v6071_v38 = vld [vmem:[%s13326_s6 + $0x1080] sm:$0xff]  ;;  %v7547_v41 = vpack.c.bf16 %v6078_v34, %v6074_v33  ;;  %v6077_v42 = vld [vmem:[%s13326_s6 + $0x10b0] sm:$0xff] }
 0x2c4   : > { %7438 = vmatpush1.bf16.msra.mxu0 %v7437_v48  ;;  %v6037_v48 = vld [vmem:[%s13326_s6 + $0xfa0] sm:$0x1f] }
 0x2c5   : > { %7478 = vmatpush1.bf16.msra.mxu1 %v7477_v49  ;;  %7440 = vmatprep.subr.bf16.mxu0 %v7439_v50  ;;  %v6049_v49 = vld [vmem:[%s13326_s6 + $0xfd0] sm:$0xff] }
 0x2c6   : > { %7480 = vmatprep.subr.bf16.mxu1 %v7479_v54  ;;  %v6053_v50 = vld [vmem:[%s13326_s6 + $0xff0] sm:$0xff] }
 0x2c7   : > { %v7537_v2 = vpack.c.bf16 %v6053_v50, %v6049_v49  ;;  %v7511_v50 = vpack.c.bf16 %v6084_v45, %v6080_v43  ;;  %v751_v43 = vld [vmem:[%s13327_s7] ss:$4 sm:$0xf] }
 0x2c8   : > { %7442 = vmatpush1.bf16.msra.mxu0 %v7441_v60  ;;  %v7497_v60 = vpack.c.bf16 %v6051_v47, %v6047_v46  ;;  %v6082_v46 = vld [vmem:[%s13326_s6 + $0x10d8] sm:$0xff] }
 0x2c9   : > { %7482 = vmatpush1.bf16.msra.mxu1 %v7481_v61  ;;  %7444 = vmatprep.subr.bf16.mxu0 %v7443_v62  ;;  %v6086_v47 = vld [vmem:[%s13326_s6 + $0x10f8] sm:$0xff] }
 0x2ca   : > { %7484 = vmatprep.subr.bf16.mxu1 %v7483_v3 }
 0x2cc   : > { %7446 = vmatpush1.bf16.msra.mxu0 %v7445_v9  ;;  %v6061_v9 = vld [vmem:[%s13326_s6 + $0x1030] sm:$0xff] }
 0x2cd   : > { %7486 = vmatpush1.bf16.msra.mxu1 %v7485_v12  ;;  %7448 = vmatprep.subr.bf16.mxu0 %v7447_v13  ;;  %v6064_v12 = vld [vmem:[%s13326_s6 + $0x1048] sm:$0xff]  ;;  %v7541_v24 = vpack.c.bf16 %v6061_v9, %v6057_v7  ;;  %v6102_v9 = vld [vmem:[%s13326_s6 + $0x1178] sm:$0xff] }
 0x2ce   : > { %7488 = vmatprep.subr.bf16.mxu1 %v7487_v19  ;;  %v6068_v13 = vld [vmem:[%s13326_s6 + $0x1068] sm:$0xff]  ;;  %v7539_v19 = vpack.c.bf16 %v6062_v1, %v6058_v63  ;;  %v6087_v1 = vld [vmem:[%s13326_s6 + $0x1100] sm:$0xff] }
 0x2cf   : > { %v6100_v7 = vld [vmem:[%s13326_s6 + $0x1168] sm:$0xff] }
 0x2d0   : > { %7450 = vmatpush1.bf16.msra.mxu0 %v7449_v25  ;;  %v7503_v25 = vpack.c.bf16 %v6068_v13, %v6064_v12 }
 0x2d1   : > { %7490 = vmatpush1.bf16.msra.mxu1 %v7489_v26  ;;  %7452 = vmatprep.subr.bf16.mxu0 %v7451_v27  ;;  %v6063_v26 = vld [vmem:[%s13326_s6 + $0x1040] sm:$0xff] }
 0x2d2   : > { %7492 = vmatprep.subr.bf16.mxu1 %v7491_v32  ;;  %v6067_v27 = vld [vmem:[%s13326_s6 + $0x1060] sm:$0xff]  ;;  %v6076_v32 = vld [vmem:[%s13326_s6 + $0x10a8] sm:$0xff] }
 0x2d3   : > { %v7505_v35 = vpack.c.bf16 %v6067_v27, %v6063_v26  ;;  %v6104_v26 = vld [vmem:[%s13326_s6 + $0x1188] sm:$0xff] }
 0x2d4   : > { %7454 = vmatpush1.bf16.msra.mxu0 %v7453_v36  ;;  %v7545_v36 = vpack.c.bf16 %v6069_v30, %v6065_v28  ;;  %v6108_v27 = vld [vmem:[%s13326_s6 + $0x11a8] sm:$0xff]  ;;  %v10490_v28 = vpop.permute.xlu0 %658  ;;  %v6106_v30 = vld [vmem:[%s13326_s6 + $0x1198] sm:$0xff] }
 0x2d5   : > { %7494 = vmatpush1.bf16.msra.mxu1 %v7493_v37  ;;  %6041 = vmatprep.subr.msk.mxu0 %vm887_vm3, %v6038_v39  ;;  %v7507_v37 = vpack.c.bf16 %v6076_v32, %v6072_v31  ;;  %v6075_v39 = vld [vmem:[%s13326_s6 + $0x10a0] sm:$0xff]  ;;  %v6110_v31 = vld [vmem:[%s13326_s6 + $0x11b8] sm:$0xff]  ;;  %v7523_v34 = vpack.c.bf16 %v6108_v27, %v6104_v26 }
 0x2d6   : > { %6044 = vmatprep.subr.msk.mxu1 %vm887_vm3, %v6040_v40  ;;  %v966_v54 = vpop.f32.mrb[18].mxu0  ;;  %v1037_v55 = vpop.f32.mrb[4].mxu1  ;;  %v6073_v40 = vld [vmem:[%s13326_s6 + $0x1090] sm:$0xff] }
 0x2d7   : > { %v968_v61 = vpop.f32.mrb[19].mxu0  ;;  %v1039_v62 = vpop.f32.mrb[5].mxu1  ;;  %v7549_v49 = vpack.c.bf16 %v6077_v42, %v6073_v40  ;;  %v6109_v40 = vld [vmem:[%s13326_s6 + $0x11b0] sm:$0xff]  ;;  %v6116_v42 = vld [vmem:[%s13326_s6 + $0x11e8] sm:$0xff] }
 0x2d8   : > { %6042 = vmatpush1.msk.msra.mxu0 %vm887_vm3, %v6037_v48  ;;  %v1046_v3 = vcombine.low %v966_v54, %v968_v61  ;;  %v1047_v4 = vcombine.low %v1037_v55, %v1039_v62  ;;  %v7509_v48 = vpack.c.bf16 %v6075_v39, %v6071_v38  ;;  %v6081_v54 = vld [vmem:[%s13326_s6 + $0x10d0] sm:$0xff]  ;;  %v7551_v55 = vpack.c.bf16 %v6086_v47, %v6082_v46  ;;  %v767_v45 = vpop.permute.xlu0 %766  ;;  %v6114_v46 = vld [vmem:[%s13326_s6 + $0x11d8] sm:$0xff] }
 0x2d9   : > { %6045 = vmatpush1.msk.msra.mxu1 %vm887_vm3, %v6039_v52  ;;  %2336 = vmatmul.mubr.f32.vlgmr.msra.gmra.mrb[28].mxu0 %v2254_v58  ;;  %v6079_v52 = vld [vmem:[%s13326_s6 + $0x10c0] sm:$0xff]  ;;  %v7553_v62 = vpack.c.bf16 %v6085_v56, %v6081_v54  ;;  %v7563_v39 = vpack.c.bf16 %v6110_v31, %v6106_v30  ;;  %v6118_v47 = vld [vmem:[%s13326_s6 + $0x11f8] sm:$0xff]  ;;  %v6113_v56 = vld [vmem:[%s13326_s6 + $0x11d0] sm:$0xff] }
 0x2da   : > { %2407 = vmatmul.mubr.f32.vlgmr.msra.gmra.mrb[14].mxu1 %v2254_v58  ;;  %7496 = vmatprep.subr.bf16.mxu0 %v7495_v53  ;;  %v10358_v15 = vrot.slane %v1046_v3, %v10317_v51  ;;  %v10361_v18 = vrot.slane %v1047_v4, %v10317_v51  ;;  %v6083_v53 = vld [vmem:[%s13326_s6 + $0x10e0] sm:$0xff]  ;;  %v6092_v58 = vld [vmem:[%s13326_s6 + $0x1128] sm:$0xff]  ;;  %v6089_v3 = vld [vmem:[%s13326_s6 + $0x1110] sm:$0xff] }
 0x2db   : > { %7536 = vmatprep.subr.bf16.mxu1 %v7535_v59  ;;  %7498 = vmatpush1.bf16.msra.mxu0 %v7497_v60  ;;  %v6090_v59 = vld [vmem:[%s13326_s6 + $0x1118] sm:$0xff]  ;;  %v7513_v61 = vpack.c.bf16 %v6083_v53, %v6079_v52  ;;  %v7515_v63 = vpack.c.bf16 %v6092_v58, %v6088_v57  ;;  %v7557_v13 = vpack.c.bf16 %v6093_v5, %v6089_v3  ;;  %v6111_v54 = vld [vmem:[%s13326_s6 + $0x11c0] sm:$0xff]  ;;  %v6128_v31 = vld [vmem:[%s13326_s6 + $0x1248] sm:$0x1f] }
 0x2dc   : > { %6133 = vmatprep.mubr.msk.f32.mxu0 %vm883_vm4, %v2529_v14  ;;  %7538 = vmatpush1.bf16.msra.mxu1 %v7537_v2  ;;  %v1062_v23 = vcombine.low %v10358_v15, %v10361_v18  ;;  %v6094_v60 = vld [vmem:[%s13326_s6 + $0x1138] sm:$0xff]  ;;  %v6091_v2 = vld [vmem:[%s13326_s6 + $0x1120] sm:$0xff]  ;;  %v6158_v15 = vld [vmem:[%s13326_s6 + $0x1308] sm:$0xff]  ;;  %v2803_v18 = vrot.slane %v9019_v10, 7 }
 0x2dd   : > { %6136 = vmatprep.mubr.msk.f32.mxu1 %vm883_vm4, %v2529_v14  ;;  %7500 = vmatprep.subr.bf16.mxu0 %v7499_v8  ;;  %v7555_v4 = vpack.c.bf16 %v6094_v60, %v6090_v59  ;;  %v6098_v8 = vld [vmem:[%s13326_s6 + $0x1158] sm:$0xff]  ;;  %v7517_v12 = vpack.c.bf16 %v6091_v2, %v6087_v1  ;;  %v7519_v14 = vpack.c.bf16 %v6100_v7, %v6096_v6  ;;  %v6117_v60 = vld [vmem:[%s13326_s6 + $0x11f0] sm:$0xff]  ;;  %v6119_v6 = vld [vmem:[%s13326_s6 + $0x1200] sm:$0xff] }
 0x2de   : > { %7540 = vmatprep.subr.bf16.mxu1 %v7539_v19  ;;  %v6095_v19 = vld [vmem:[%s13326_s6 + $0x1140] sm:$0xff]  ;;  %v7567_v59 = vpack.c.bf16 %v6118_v47, %v6114_v46  ;;  %v6122_v1 = vld [vmem:[%s13326_s6 + $0x1218] sm:$0xff]  ;;  %v6150_v46 = vld [vmem:[%s13326_s6 + $0x12c8] sm:$0xff] }
 0x2df   : > { %7502 = vmatpush1.bf16.msra.mxu0 %v7501_v22  ;;  %v10479_v22 = vsub.s32 0, %v10295_v44  ;;  %v7521_v32 = vpack.c.bf16 %v6099_v20, %v6095_v19  ;;  %v6126_v2 = vld [vmem:[%s13326_s6 + $0x1238] sm:$0xff]  ;;  %v6123_v7 = vld [vmem:[%s13326_s6 + $0x1220] sm:$0xff]  ;;  %v6125_v19 = vld [vmem:[%s13326_s6 + $0x1230] sm:$0xff] }
 0x2e0   : > { %7542 = vmatpush1.bf16.msra.mxu1 %v7541_v24  ;;  %7504 = vmatprep.subr.bf16.mxu0 %v7503_v25  ;;  %v7559_v24 = vpack.c.bf16 %v6102_v9, %v6098_v8  ;;  %v6101_v25 = vld [vmem:[%s13326_s6 + $0x1170] sm:$0xff]  ;;  %v5589_v20 = vld [vmem:[%s13327_s7 + $0x2] ss:$4 sm:$0xf] }
 0x2e1   : > { %7544 = vmatprep.subr.bf16.mxu1 %v7543_v29  ;;  %v755_v29 = vpop.permute.xlu1 %754  ;;  %v7561_v33 = vpack.c.bf16 %v6101_v25, %v6097_v21  ;;  %v772_v58 = vrot.slane %v767_v45, %v10479_v22  ;;  %v5590_v25 = vld [vmem:[%s13327_s7 + $0x3] ss:$4 sm:$0xf] }
 0x2e2   : > { %v760_v38 = vrot.slane %v755_v29, %v10479_v22  ;;  %v6146_v45 = vld [vmem:[%s13326_s6 + $0x12a8] sm:$0xff]  ;;  %v6153_v10 = vld [vmem:[%s13326_s6 + $0x12e0] sm:$0xff] }
 0x2e3   : > { %7506 = vmatpush1.bf16.msra.mxu0 %v7505_v35  ;;  %v6103_v35 = vld [vmem:[%s13326_s6 + $0x1180] sm:$0xff] }
 0x2e4   : > { %7546 = vmatpush1.bf16.msra.mxu1 %v7545_v36  ;;  %7508 = vmatprep.subr.bf16.mxu0 %v7507_v37  ;;  %v6107_v36 = vld [vmem:[%s13326_s6 + $0x11a0] sm:$0xff]  ;;  %v6105_v37 = vld [vmem:[%s13326_s6 + $0x1190] sm:$0xff]  ;;  %v761_v57 = vmul.f32 %v760_v38, %v751_v43 }
 0x2e5   : > { %7548 = vmatprep.subr.bf16.mxu1 %v7547_v41  ;;  %v6112_v41 = vld [vmem:[%s13326_s6 + $0x11c8] sm:$0xff]  ;;  %v7565_v52 = vpack.c.bf16 %v6109_v40, %v6105_v37  ;;  %v6144_v37 = vld [vmem:[%s13326_s6 + $0x1298] sm:$0xff]  ;;  %v6137_v38 = vld [vmem:[%s13326_s6 + $0x1260] sm:$0xff] }
 0x2e6   : > { %v7527_v53 = vpack.c.bf16 %v6116_v42, %v6112_v41  ;;  %v6139_v40 = vld [vmem:[%s13326_s6 + $0x1270] sm:$0xff] }
 0x2e7   : > { %7510 = vmatpush1.bf16.msra.mxu0 %v7509_v48  ;;  %v7525_v48 = vpack.c.bf16 %v6107_v36, %v6103_v35  ;;  %v6142_v35 = vld [vmem:[%s13326_s6 + $0x1288] sm:$0xff]  ;;  %v6140_v36 = vld [vmem:[%s13326_s6 + $0x1278] sm:$0xff]  ;;  %v6143_v43 = vld [vmem:[%s13326_s6 + $0x1290] sm:$0xff] }
 0x2e8   : > { %7550 = vmatpush1.bf16.msra.mxu1 %v7549_v49  ;;  %7512 = vmatprep.subr.bf16.mxu0 %v7511_v50  ;;  %v750_v49 = vld [vmem:[%s13328_s8] sm:$0xf]  ;;  %v779_v50 = vpop.permute.xlu1 %778 }
 0x2e9   : > { %7552 = vmatprep.subr.bf16.mxu1 %v7551_v55  ;;  %v6115_v55 = vld [vmem:[%s13326_s6 + $0x11e0] sm:$0xff]  ;;  %v762_v8 = vadd.f32 %v761_v57, %v750_v49  ;;  %v6129_v49 = vld [vmem:[%s13326_s6 + $0x1250] sm:$0x1f] }
 0x2ea   : > { %v7529_v3 = vpack.c.bf16 %v6115_v55, %v6111_v54  ;;  %v7615_v55 = vpack.c.bf16 %v6144_v37, %v6140_v36 }
 0x2eb   : > { %7514 = vmatpush1.bf16.msra.mxu0 %v7513_v61  ;;  %v6120_v61 = vld [vmem:[%s13326_s6 + $0x1208] sm:$0xff] }
 0x2ec   : > { %7554 = vmatpush1.bf16.msra.mxu1 %v7553_v62  ;;  %7516 = vmatprep.subr.bf16.mxu0 %v7515_v63  ;;  %v6124_v62 = vld [vmem:[%s13326_s6 + $0x1228] sm:$0xff]  ;;  %v791_v21 = vpop.permute.xlu1 %790 }
 0x2ed   : > { %7556 = vmatprep.subr.bf16.mxu1 %v7555_v4  ;;  %v5588_v63 = vld [vmem:[%s13327_s7 + $0x1] ss:$4 sm:$0xf]  ;;  %v7569_v4 = vpack.c.bf16 %v6117_v60, %v6113_v56  ;;  %v7531_v5 = vpack.c.bf16 %v6124_v62, %v6120_v61  ;;  %v796_v30 = vrot.slane %v791_v21, %v10479_v22  ;;  %v6152_v60 = vld [vmem:[%s13326_s6 + $0x12d8] sm:$0xff]  ;;  %v7617_v61 = vpack.c.bf16 %v6143_v43, %v6139_v40  ;;  %v6163_v40 = vld [vmem:[%s13326_s6 + $0x1330] sm:$0xff] }
 0x2ee   : > { %v773_v9 = vmul.f32 %v5588_v63, %v772_v58  ;;  %v7579_v62 = vpack.c.bf16 %v6150_v46, %v6146_v45  ;;  %v6145_v63 = vld [vmem:[%s13326_s6 + $0x12a0] sm:$0xff]  ;;  %v6170_v43 = vld [vmem:[%s13326_s6 + $0x1368] sm:$0xff]  ;;  %v6172_v46 = vld [vmem:[%s13326_s6 + $0x1378] sm:$0xff] }
 0x2ef   : > { %7518 = vmatpush1.bf16.msra.mxu0 %v7517_v12  ;;  %v784_v12 = vrot.slane %v779_v50, %v10479_v22  ;;  %v2528_v50 = vrot.slane %v9029_v16, 6  ;;  %v6157_v21 = vld [vmem:[%s13326_s6 + $0x1300] sm:$0xff]  ;;  %v6174_v45 = vld [vmem:[%s13326_s6 + $0x1388] sm:$0xff] }
 0x2f0   : > { %7558 = vmatpush1.bf16.msra.mxu1 %v7557_v13  ;;  %7520 = vmatprep.subr.bf16.mxu0 %v7519_v14  ;;  %v7571_v13 = vpack.c.bf16 %v6126_v2, %v6122_v1  ;;  %v6121_v14 = vld [vmem:[%s13326_s6 + $0x1210] sm:$0xff]  ;;  %v774_v27 = vadd.f32 %v773_v9, %v762_v8  ;;  %v6149_v1 = vld [vmem:[%s13326_s6 + $0x12c0] sm:$0xff]  ;;  %v6156_v8 = vld [vmem:[%s13326_s6 + $0x12f8] sm:$0xff] }
 0x2f1   : > { %7560 = vmatprep.subr.bf16.mxu1 %v7559_v24  ;;  %v7533_v24 = vpack.c.bf16 %v6123_v7, %v6119_v6  ;;  %v7573_v26 = vpack.c.bf16 %v6125_v19, %v6121_v14  ;;  %v785_v29 = vmul.f32 %v5589_v20, %v784_v12  ;;  %v6147_v2 = vld [vmem:[%s13326_s6 + $0x12b0] sm:$0xff]  ;;  %v6154_v7 = vld [vmem:[%s13326_s6 + $0x12e8] sm:$0xff]  ;;  %v6160_v9 = vld [vmem:[%s13326_s6 + $0x1318] sm:$0xff]  ;;  %v7581_v14 = vpack.c.bf16 %v6149_v1, %v6145_v63 }
 0x2f2   : > { %v6151_v6 = vld [vmem:[%s13326_s6 + $0x12d0] sm:$0xff]  ;;  %v7583_v20 = vpack.c.bf16 %v6158_v15, %v6154_v7  ;;  %v6177_v1 = vld [vmem:[%s13326_s6 + $0x13a0] sm:$0xff]  ;;  %v6190_v7 = vld [vmem:[%s13326_s6 + $0x1408] sm:$0xff] }
 0x2f3   : > { %7522 = vmatpush1.bf16.msra.mxu0 %v7521_v32  ;;  %v6130_v32 = vld [vmem:[%s13326_s6 + $0x1258] sm:$0x1f]  ;;  %v786_v47 = vadd.f32 %v785_v29, %v774_v27  ;;  %v7621_v19 = vpack.c.bf16 %v6151_v6, %v6147_v2  ;;  %v7623_v27 = vpack.c.bf16 %v6160_v9, %v6156_v8  ;;  %v6159_v29 = vld [vmem:[%s13326_s6 + $0x1310] sm:$0xff]  ;;  %v6181_v2 = vld [vmem:[%s13326_s6 + $0x13c0] sm:$0xff] }
 0x2f4   : > { %7562 = vmatpush1.bf16.msra.mxu1 %v7561_v33  ;;  %7524 = vmatprep.subr.bf16.mxu0 %v7523_v34  ;;  %v6138_v33 = vld [vmem:[%s13326_s6 + $0x1268] sm:$0xff]  ;;  %v6127_v34 = vld [vmem:[%s13326_s6 + $0x1240] sm:$0x1f]  ;;  %v6188_v15 = vld [vmem:[%s13326_s6 + $0x13f8] sm:$0xff] }
 0x2f5   : > { %7564 = vmatprep.subr.bf16.mxu1 %v7563_v39  ;;  %v6141_v39 = vld [vmem:[%s13326_s6 + $0x1280] sm:$0xff]  ;;  %v6186_v6 = vld [vmem:[%s13326_s6 + $0x13e8] sm:$0xff] }
 0x2f6   : > { %v7577_v56 = vpack.c.bf16 %v6141_v39, %v6137_v38  ;;  %v6161_v38 = vld [vmem:[%s13326_s6 + $0x1320] sm:$0xff]  ;;  %v7599_v9 = vpack.c.bf16 %v6190_v7, %v6186_v6  ;;  %v6234_v6 = vld [vmem:[%s13326_s6 + $0x1538] sm:$0xff] }
 0x2f7   : > { %7526 = vmatpush1.bf16.msra.mxu0 %v7525_v48  ;;  %v797_v48 = vmul.f32 %v5590_v25, %v796_v30  ;;  %v6162_v30 = vld [vmem:[%s13326_s6 + $0x1328] sm:$0xff]  ;;  %v6165_v39 = vld [vmem:[%s13326_s6 + $0x1340] sm:$0xff] }
 0x2f8   : > { %7566 = vmatpush1.bf16.msra.mxu1 %v7565_v52  ;;  %7528 = vmatprep.subr.bf16.mxu0 %v7527_v53  ;;  %v7575_v52 = vpack.c.bf16 %v6142_v35, %v6138_v33  ;;  %v6168_v33 = vld [vmem:[%s13326_s6 + $0x1358] sm:$0xff]  ;;  %v7585_v35 = vpack.c.bf16 %v6157_v21, %v6153_v10  ;;  %v6194_v10 = vld [vmem:[%s13326_s6 + $0x1428] sm:$0xff]  ;;  %v6227_v7 = vld [vmem:[%s13326_s6 + $0x1500] sm:$0xff] }
 0x2f9   : > { %7568 = vmatprep.subr.bf16.mxu1 %v7567_v59  ;;  %v6148_v59 = vld [vmem:[%s13326_s6 + $0x12b8] sm:$0xff]  ;;  %v798_v12 = vadd.f32 %v797_v48, %v786_v47  ;;  %v7589_v48 = vpack.c.bf16 %v6165_v39, %v6161_v38  ;;  %v6198_v21 = vld [vmem:[%s13326_s6 + $0x1448] sm:$0xff] }
 0x2fa   : > { %v6176_v47 = vld [vmem:[%s13326_s6 + $0x1398] sm:$0xff] }
 0x2fb   : > { %7530 = vmatpush1.bf16.msra.mxu0 %v7529_v3  ;;  %v1069_v3 = vrot.slane %v1062_v23, %v10317_v51  ;;  %v7619_v23 = vpack.c.bf16 %v6152_v60, %v6148_v59  ;;  %v6180_v59 = vld [vmem:[%s13326_s6 + $0x13b8] sm:$0xff] }
 0x2fc   : > { %7570 = vmatpush1.bf16.msra.mxu1 %v7569_v4  ;;  %7532 = vmatprep.subr.bf16.mxu0 %v7531_v5  ;;  %v6184_v60 = vld [vmem:[%s13326_s6 + $0x13d8] sm:$0xff] }
 0x2fd   : > { %7572 = vmatprep.subr.bf16.mxu1 %v7571_v13  ;;  %v1071_v25 = vadd.f32 %v1069_v3, %v798_v12  ;;  %v6179_v3 = vld [vmem:[%s13326_s6 + $0x13b0] sm:$0xff]  ;;  %v6185_v12 = vld [vmem:[%s13326_s6 + $0x13e0] sm:$0xff]  ;;  %v6204_v38 = vld [vmem:[%s13326_s6 + $0x1478] sm:$0xff] }
 0x2fe   : > { %v6208_v39 = vld [vmem:[%s13326_s6 + $0x1498] sm:$0xff] }
 0x2ff   : > { %7534 = vmatpush1.bf16.msra.mxu0 %v7533_v24  ;;  %v6155_v24 = vld [vmem:[%s13326_s6 + $0x12f0] sm:$0xff] }
 0x300   : > { %7574 = vmatpush1.bf16.msra.mxu1 %v7573_v26  ;;  %6131 = vmatprep.subr.msk.mxu0 %vm887_vm3, %v6128_v31  ;;  %v1241_v41 = vpop.f32.mrb[20].mxu0  ;;  %v1312_v42 = vpop.f32.mrb[6].mxu1  ;;  %v6166_v31 = vld [vmem:[%s13326_s6 + $0x1348] sm:$0xff]  ;;  %v7625_v36 = vpack.c.bf16 %v6159_v29, %v6155_v24  ;;  %v6196_v24 = vld [vmem:[%s13326_s6 + $0x1438] sm:$0xff]  ;;  %v7603_v29 = vpack.c.bf16 %v6198_v21, %v6194_v10 }
 0x301   : > { %6134 = vmatprep.subr.msk.mxu1 %vm887_vm3, %v6130_v32  ;;  %v1243_v53 = vpop.f32.mrb[21].mxu0  ;;  %v1314_v54 = vpop.f32.mrb[7].mxu1  ;;  %v6164_v32 = vld [vmem:[%s13326_s6 + $0x1338] sm:$0xff]  ;;  %v7587_v37 = vpack.c.bf16 %v6166_v31, %v6162_v30  ;;  %v6193_v30 = vld [vmem:[%s13326_s6 + $0x1420] sm:$0xff]  ;;  %v6236_v10 = vld [vmem:[%s13326_s6 + $0x1548] sm:$0xff] }
 0x302   : > { %v1321_v57 = vcombine.low %v1241_v41, %v1243_v53  ;;  %v1322_v58 = vcombine.low %v1312_v42, %v1314_v54  ;;  %v7627_v41 = vpack.c.bf16 %v6168_v33, %v6164_v32  ;;  %v6167_v42 = vld [vmem:[%s13326_s6 + $0x1350] sm:$0xff]  ;;  %v6173_v53 = vld [vmem:[%s13326_s6 + $0x1380] sm:$0xff]  ;;  %v6240_v21 = vld [vmem:[%s13326_s6 + $0x1568] sm:$0xff] }
 0x303   : > { %6132 = vmatpush1.msk.msra.mxu0 %vm887_vm3, %v6127_v34  ;;  %v6171_v54 = vld [vmem:[%s13326_s6 + $0x1370] sm:$0xff]  ;;  %v6197_v31 = vld [vmem:[%s13326_s6 + $0x1440] sm:$0xff] }
 0x304   : > { %6135 = vmatpush1.msk.msra.mxu1 %vm887_vm3, %v6129_v49  ;;  %2610 = vmatmul.mubr.f32.vlgmr.msra.gmra.mrb[30].mxu0 %v2528_v50  ;;  %v1329_v4 = vrot.slane %v1321_v57, %v10317_v51  ;;  %v1336_v5 = vrot.slane %v1322_v58, %v10317_v51  ;;  %v7629_v49 = vpack.c.bf16 %v6167_v42, %v6163_v40  ;;  %v6178_v57 = vld [vmem:[%s13326_s6 + $0x13a8] sm:$0xff]  ;;  %v6195_v32 = vld [vmem:[%s13326_s6 + $0x1430] sm:$0xff] }
 0x305   : > { %2681 = vmatmul.mubr.f32.vlgmr.msra.gmra.mrb[16].mxu1 %v2528_v50  ;;  %7576 = vmatprep.subr.bf16.mxu0 %v7575_v52  ;;  %v7591_v50 = vpack.c.bf16 %v6174_v45, %v6170_v43  ;;  %v6169_v52 = vld [vmem:[%s13326_s6 + $0x1360] sm:$0xff]  ;;  %v6182_v58 = vld [vmem:[%s13326_s6 + $0x13c8] sm:$0xff]  ;;  %v7605_v40 = vpack.c.bf16 %v6197_v31, %v6193_v30  ;;  %v6242_v30 = vld [vmem:[%s13326_s6 + $0x1578] sm:$0xff] }
 0x306   : > { %7616 = vmatprep.subr.bf16.mxu1 %v7615_v55  ;;  %7578 = vmatpush1.bf16.msra.mxu0 %v7577_v56  ;;  %v1337_v13 = vcombine.low %v1329_v4, %v1336_v5  ;;  %v7631_v55 = vpack.c.bf16 %v6176_v47, %v6172_v46  ;;  %v6175_v56 = vld [vmem:[%s13326_s6 + $0x1390] sm:$0xff]  ;;  %v7595_v63 = vpack.c.bf16 %v6182_v58, %v6178_v57  ;;  %v6201_v43 = vld [vmem:[%s13326_s6 + $0x1460] sm:$0xff] }
 0x307   : > { %6223 = vmatprep.mubr.msk.f32.mxu0 %vm883_vm4, %v2803_v18  ;;  %7618 = vmatpush1.bf16.msra.mxu1 %v7617_v61  ;;  %v7593_v61 = vpack.c.bf16 %v6173_v53, %v6169_v52  ;;  %v7635_v4 = vpack.c.bf16 %v6184_v60, %v6180_v59  ;;  %v6183_v5 = vld [vmem:[%s13326_s6 + $0x13d0] sm:$0xff]  ;;  %v6205_v45 = vld [vmem:[%s13326_s6 + $0x1480] sm:$0xff]  ;;  %v7647_v47 = vpack.c.bf16 %v6208_v39, %v6204_v38  ;;  %v6212_v52 = vld [vmem:[%s13326_s6 + $0x14b8] sm:$0xff] }
 0x308   : > { %6226 = vmatprep.mubr.msk.f32.mxu1 %vm883_vm4, %v2803_v18  ;;  %v1344_v26 = vrot.slane %v1337_v13, %v10317_v51  ;;  %7580 = vmatprep.subr.bf16.mxu0 %v7579_v62  ;;  %v7633_v62 = vpack.c.bf16 %v6175_v56, %v6171_v54  ;;  %v6192_v18 = vld [vmem:[%s13326_s6 + $0x1418] sm:$0xff]  ;;  %v7637_v8 = vpack.c.bf16 %v6183_v5, %v6179_v3  ;;  %v6189_v13 = vld [vmem:[%s13326_s6 + $0x1400] sm:$0xff]  ;;  %v6203_v46 = vld [vmem:[%s13326_s6 + $0x1470] sm:$0xff] }
 0x309   : > { %7620 = vmatprep.subr.bf16.mxu1 %v7619_v23  ;;  %v7597_v23 = vpack.c.bf16 %v6181_v2, %v6177_v1  ;;  %v6216_v53 = vld [vmem:[%s13326_s6 + $0x14d8] sm:$0xff]  ;;  %v7609_v54 = vpack.c.bf16 %v6205_v45, %v6201_v43  ;;  %v6209_v57 = vld [vmem:[%s13326_s6 + $0x14a0] sm:$0xff]  ;;  %v6211_v60 = vld [vmem:[%s13326_s6 + $0x14b0] sm:$0xff] }
 0x30a   : > { %v10688_v34 = vadd.f32 %v1344_v26, %v1071_v25  ;;  %7582 = vmatpush1.bf16.msra.mxu0 %v7581_v14  ;;  %v6187_v14 = vld [vmem:[%s13326_s6 + $0x13f0] sm:$0xff]  ;;  %v6200_v25 = vld [vmem:[%s13326_s6 + $0x1458] sm:$0xff]  ;;  %v7601_v26 = vpack.c.bf16 %v6189_v13, %v6185_v12  ;;  %v6213_v58 = vld [vmem:[%s13326_s6 + $0x14c0] sm:$0xff]  ;;  %v7651_v59 = vpack.c.bf16 %v6216_v53, %v6212_v52  ;;  %v743_v12 = vadd.f32 %v9031_v17, %v10490_v28 }
 0x30b   : > { %7622 = vmatpush1.bf16.msra.mxu1 %v7621_v19  ;;  %7584 = vmatprep.subr.bf16.mxu0 %v7583_v20  ;;  %v7639_v19 = vpack.c.bf16 %v6192_v18, %v6188_v15  ;;  %v6191_v20 = vld [vmem:[%s13326_s6 + $0x1410] sm:$0xff]  ;;  %v7643_v33 = vpack.c.bf16 %v6200_v25, %v6196_v24  ;;  %v6218_v1 = vld [vmem:[%s13326_s6 + $0x14e8] sm:$0x1f]  ;;  %v6220_v2 = vld [vmem:[%s13326_s6 + $0x14f8] sm:$0x1f]  ;;  %v2802_v24 = vrot.slane %v9029_v16, 7 }
 0x30c   : > { %7624 = vmatprep.subr.bf16.mxu1 %v7623_v27  ;;  %v7641_v27 = vpack.c.bf16 %v6191_v20, %v6187_v14  ;;  %v6228_v3 = vld [vmem:[%s13326_s6 + $0x1508] sm:$0xff]  ;;  %v6230_v5 = vld [vmem:[%s13326_s6 + $0x1518] sm:$0xff]  ;;  %v6231_v15 = vld [vmem:[%s13326_s6 + $0x1520] sm:$0xff] }
 0x30d   : > { %v6217_v18 = vld [vmem:[%s13326_s6 + $0x14e0] sm:$0x1f]  ;;  %v6219_v13 = vld [vmem:[%s13326_s6 + $0x14f0] sm:$0x1f]  ;;  %v7695_v17 = vpack.c.bf16 %v6234_v6, %v6230_v5  ;;  %v7657_v25 = vpack.c.bf16 %v6231_v15, %v6227_v7  ;;  %v6244_v39 = vld [vmem:[%s13326_s6 + $0x1588] sm:$0xff] }
 0x30e   : > { %7586 = vmatpush1.bf16.msra.mxu0 %v7585_v35  ;;  %v6199_v35 = vld [vmem:[%s13326_s6 + $0x1450] sm:$0xff]  ;;  %v6235_v16 = vld [vmem:[%s13326_s6 + $0x1540] sm:$0xff]  ;;  %v6246_v45 = vld [vmem:[%s13326_s6 + $0x1598] sm:$0xff] }
 0x30f   : > { %7626 = vmatpush1.bf16.msra.mxu1 %v7625_v36  ;;  %7588 = vmatprep.subr.bf16.mxu0 %v7587_v37  ;;  %v6202_v36 = vld [vmem:[%s13326_s6 + $0x1468] sm:$0xff]  ;;  %v6241_v38 = vld [vmem:[%s13326_s6 + $0x1570] sm:$0xff]  ;;  %v6243_v52 = vld [vmem:[%s13326_s6 + $0x1580] sm:$0xff] }
 0x310   : > { %7628 = vmatprep.subr.bf16.mxu1 %v7627_v41  ;;  %v6206_v37 = vld [vmem:[%s13326_s6 + $0x1488] sm:$0xff]  ;;  %v7645_v41 = vpack.c.bf16 %v6199_v35, %v6195_v32  ;;  %v6237_v35 = vld [vmem:[%s13326_s6 + $0x1550] sm:$0xff]  ;;  %v6247_v53 = vld [vmem:[%s13326_s6 + $0x15a0] sm:$0xff] }
 0x311   : > { %v7607_v42 = vpack.c.bf16 %v6206_v37, %v6202_v36  ;;  %v7659_v37 = vpack.c.bf16 %v6240_v21, %v6236_v10  ;;  %v6253_v5 = vld [vmem:[%s13326_s6 + $0x15d0] sm:$0xff]  ;;  %v6260_v7 = vld [vmem:[%s13326_s6 + $0x1608] sm:$0xff] }
 0x312   : > { %7590 = vmatpush1.bf16.msra.mxu0 %v7589_v48  ;;  %v6207_v48 = vld [vmem:[%s13326_s6 + $0x1490] sm:$0xff]  ;;  %v6264_v15 = vld [vmem:[%s13326_s6 + $0x1628] sm:$0xff] }
 0x313   : > { %7630 = vmatpush1.bf16.msra.mxu1 %v7629_v49  ;;  %7592 = vmatprep.subr.bf16.mxu0 %v7591_v50  ;;  %v6210_v49 = vld [vmem:[%s13326_s6 + $0x14a8] sm:$0xff]  ;;  %v6265_v10 = vld [vmem:[%s13326_s6 + $0x1630] sm:$0xff] }
 0x314   : > { %7632 = vmatprep.subr.bf16.mxu1 %v7631_v55  ;;  %v6214_v50 = vld [vmem:[%s13326_s6 + $0x14c8] sm:$0xff]  ;;  %v7649_v55 = vpack.c.bf16 %v6207_v48, %v6203_v46  ;;  %v6250_v46 = vld [vmem:[%s13326_s6 + $0x15b8] sm:$0xff] }
 0x315   : > { %v7611_v56 = vpack.c.bf16 %v6214_v50, %v6210_v49  ;;  %v7701_v49 = vpack.c.bf16 %v6241_v38, %v6237_v35  ;;  %v6268_v21 = vld [vmem:[%s13326_s6 + $0x1648] sm:$0xff]  ;;  %v6282_v38 = vld [vmem:[%s13326_s6 + $0x16b8] sm:$0xff] }
 0x316   : > { %7594 = vmatpush1.bf16.msra.mxu0 %v7593_v61  ;;  %v6215_v61 = vld [vmem:[%s13326_s6 + $0x14d0] sm:$0xff]  ;;  %v6276_v35 = vld [vmem:[%s13326_s6 + $0x1688] sm:$0xff] }
 0x317   : > { %7634 = vmatpush1.bf16.msra.mxu1 %v7633_v62  ;;  %7596 = vmatprep.subr.bf16.mxu0 %v7595_v63  ;;  %v7613_v62 = vpack.c.bf16 %v6213_v58, %v6209_v57  ;;  %v7653_v63 = vpack.c.bf16 %v6215_v61, %v6211_v60  ;;  %v6252_v57 = vld [vmem:[%s13326_s6 + $0x15c8] sm:$0xff]  ;;  %v6254_v60 = vld [vmem:[%s13326_s6 + $0x15d8] sm:$0xff] }
 0x318   : > { %7636 = vmatprep.subr.bf16.mxu1 %v7635_v4  ;;  %v6232_v4 = vld [vmem:[%s13326_s6 + $0x1528] sm:$0xff]  ;;  %v6258_v61 = vld [vmem:[%s13326_s6 + $0x15f8] sm:$0xff] }
 0x319   : > { %v7655_v14 = vpack.c.bf16 %v6232_v4, %v6228_v3  ;;  %v6256_v58 = vld [vmem:[%s13326_s6 + $0x15e8] sm:$0xff]  ;;  %v6251_v3 = vld [vmem:[%s13326_s6 + $0x15c0] sm:$0xff]  ;;  %v7707_v6 = vpack.c.bf16 %v6258_v61, %v6254_v60  ;;  %v6289_v61 = vld [vmem:[%s13326_s6 + $0x16f0] sm:$0xff] }
 0x31a   : > { %7598 = vmatpush1.bf16.msra.mxu0 %v7597_v23  ;;  %v6255_v4 = vld [vmem:[%s13326_s6 + $0x15e0] sm:$0xff] }
 0x31b   : > { %7638 = vmatpush1.bf16.msra.mxu1 %v7637_v8  ;;  %7600 = vmatprep.subr.bf16.mxu0 %v7599_v9  ;;  %v6229_v8 = vld [vmem:[%s13326_s6 + $0x1510] sm:$0xff] }
 0x31c   : > { %7640 = vmatprep.subr.bf16.mxu1 %v7639_v19  ;;  %v6233_v9 = vld [vmem:[%s13326_s6 + $0x1530] sm:$0xff] }
 0x31d   : > { %v7697_v31 = vpack.c.bf16 %v6233_v9, %v6229_v8  ;;  %v7669_v8 = vpack.c.bf16 %v6255_v4, %v6251_v3  ;;  %v6298_v3 = vld [vmem:[%s13326_s6 + $0x1738] sm:$0xff] }
 0x31e   : > { %7602 = vmatpush1.bf16.msra.mxu0 %v7601_v26 }
 0x31f   : > { %7642 = vmatpush1.bf16.msra.mxu1 %v7641_v27  ;;  %7604 = vmatprep.subr.bf16.mxu0 %v7603_v29  ;;  %v6238_v29 = vld [vmem:[%s13326_s6 + $0x1558] sm:$0xff] }
 0x320   : > { %7644 = vmatprep.subr.bf16.mxu1 %v7643_v33  ;;  %v6239_v33 = vld [vmem:[%s13326_s6 + $0x1560] sm:$0xff]  ;;  %v7699_v43 = vpack.c.bf16 %v6242_v30, %v6238_v29 }
 0x321   : > { %v6267_v30 = vld [vmem:[%s13326_s6 + $0x1640] sm:$0xff] }
 0x322   : > { %7606 = vmatpush1.bf16.msra.mxu0 %v7605_v40  ;;  %v6248_v40 = vld [vmem:[%s13326_s6 + $0x15a8] sm:$0xff] }
 0x323   : > { %7646 = vmatpush1.bf16.msra.mxu1 %v7645_v41  ;;  %7608 = vmatprep.subr.bf16.mxu0 %v7607_v42  ;;  %v10920_v41 = vmax.f32 %v743_v12, 0.0  ;;  %v7663_v50 = vpack.c.bf16 %v6248_v40, %v6244_v39  ;;  %v7671_v12 = vpack.c.bf16 %v6264_v15, %v6260_v7  ;;  %v6295_v7 = vld [vmem:[%s13326_s6 + $0x1720] sm:$0xff]  ;;  %v6293_v15 = vld [vmem:[%s13326_s6 + $0x1710] sm:$0xff] }
 0x324   : > { %7648 = vmatprep.subr.bf16.mxu1 %v7647_v47  ;;  %v7661_v47 = vpack.c.bf16 %v6239_v33, %v6235_v16  ;;  %v6273_v33 = vld [vmem:[%s13326_s6 + $0x1670] sm:$0xff] }
 0x326   : > { %7610 = vmatpush1.bf16.msra.mxu0 %v7609_v54  ;;  %v6245_v54 = vld [vmem:[%s13326_s6 + $0x1590] sm:$0xff] }
 0x327   : > { %7650 = vmatpush1.bf16.msra.mxu1 %v7649_v55  ;;  %7612 = vmatprep.subr.bf16.mxu0 %v7611_v56  ;;  %v7703_v55 = vpack.c.bf16 %v6250_v46, %v6246_v45  ;;  %v6249_v56 = vld [vmem:[%s13326_s6 + $0x15b0] sm:$0xff]  ;;  %v6279_v45 = vld [vmem:[%s13326_s6 + $0x16a0] sm:$0xff] }
 0x328   : > { %7652 = vmatprep.subr.bf16.mxu1 %v7651_v59  ;;  %v6277_v46 = vld [vmem:[%s13326_s6 + $0x1690] sm:$0xff] }
 0x32a   : > { %7614 = vmatpush1.bf16.msra.mxu0 %v7613_v62  ;;  %v7665_v62 = vpack.c.bf16 %v6247_v53, %v6243_v52  ;;  %v6286_v52 = vld [vmem:[%s13326_s6 + $0x16d8] sm:$0xff] }
 0x32b   : > { %7654 = vmatpush1.bf16.msra.mxu1 %v7653_v63  ;;  %6221 = vmatprep.subr.msk.mxu0 %vm887_vm3, %v6218_v1  ;;  %v1515_v23 = vpop.f32.mrb[22].mxu0  ;;  %v7705_v1 = vpack.c.bf16 %v6249_v56, %v6245_v54  ;;  %v6290_v53 = vld [vmem:[%s13326_s6 + $0x16f8] sm:$0xff] }
 0x32c   : > { %6224 = vmatprep.subr.msk.mxu1 %vm887_vm3, %v6220_v2  ;;  %v1586_v19 = vpop.f32.mrb[8].mxu1  ;;  %v1517_v20 = vpop.f32.mrb[23].mxu0  ;;  %v7667_v2 = vpack.c.bf16 %v6256_v58, %v6252_v57  ;;  %v6283_v57 = vld [vmem:[%s13326_s6 + $0x16c0] sm:$0xff]  ;;  %v7723_v60 = vpack.c.bf16 %v6290_v53, %v6286_v52 }
 0x32d   : > { %v1595_v26 = vcombine.low %v1515_v23, %v1517_v20  ;;  %v1588_v27 = vpop.f32.mrb[9].mxu1  ;;  %v6266_v23 = vld [vmem:[%s13326_s6 + $0x1638] sm:$0xff]  ;;  %v6287_v58 = vld [vmem:[%s13326_s6 + $0x16e0] sm:$0xff] }
 0x32e   : > { %6222 = vmatpush1.msk.msra.mxu0 %vm887_vm3, %v6217_v18  ;;  %v1596_v32 = vcombine.low %v1586_v19, %v1588_v27  ;;  %v6262_v18 = vld [vmem:[%s13326_s6 + $0x1618] sm:$0xff]  ;;  %v6261_v19 = vld [vmem:[%s13326_s6 + $0x1610] sm:$0xff]  ;;  %v7685_v4 = vpack.c.bf16 %v6287_v58, %v6283_v57  ;;  %v6325_v58 = vld [vmem:[%s13326_s6 + $0x17e0] sm:$0xff] }
 0x32f   : > { %6225 = vmatpush1.msk.msra.mxu1 %vm887_vm3, %v6219_v13  ;;  %2884 = vmatmul.mubr.f32.vlgmr.msra.gmra.mrb[32].mxu0 %v2802_v24  ;;  %v1603_v36 = vrot.slane %v1595_v26, %v10317_v51  ;;  %v6259_v13 = vld [vmem:[%s13326_s6 + $0x1600] sm:$0xff]  ;;  %v7711_v20 = vpack.c.bf16 %v6266_v23, %v6262_v18  ;;  %v7713_v27 = vpack.c.bf16 %v6265_v10, %v6261_v19  ;;  %v6297_v23 = vld [vmem:[%s13326_s6 + $0x1730] sm:$0xff] }
 0x330   : > { %2955 = vmatmul.mubr.f32.vlgmr.msra.gmra.mrb[18].mxu1 %v2802_v24  ;;  %7656 = vmatprep.subr.bf16.mxu0 %v7655_v14  ;;  %v1610_v42 = vrot.slane %v1596_v32, %v10317_v51  ;;  %v6263_v14 = vld [vmem:[%s13326_s6 + $0x1620] sm:$0xff]  ;;  %v6272_v24 = vld [vmem:[%s13326_s6 + $0x1668] sm:$0xff]  ;;  %v6269_v32 = vld [vmem:[%s13326_s6 + $0x1650] sm:$0xff]  ;;  %v7729_v19 = vpack.c.bf16 %v6297_v23, %v6293_v15 }
 0x331   : > { %7696 = vmatprep.subr.bf16.mxu1 %v7695_v17  ;;  %7658 = vmatpush1.bf16.msra.mxu0 %v7657_v25  ;;  %v6270_v17 = vld [vmem:[%s13326_s6 + $0x1658] sm:$0xff]  ;;  %v7673_v26 = vpack.c.bf16 %v6263_v14, %v6259_v13  ;;  %v7675_v29 = vpack.c.bf16 %v6272_v24, %v6268_v21  ;;  %v7717_v40 = vpack.c.bf16 %v6273_v33, %v6269_v32  ;;  %v6299_v10 = vld [vmem:[%s13326_s6 + $0x1740] sm:$0xff]  ;;  %v6318_v32 = vld [vmem:[%s13326_s6 + $0x17a8] sm:$0xff] }
 0x332   : > { %6313 = vmatprep.mubr.msk.f32.mxu0 %vm883_vm4, %v10920_v41  ;;  %7698 = vmatpush1.bf16.msra.mxu1 %v7697_v31  ;;  %v1611_v48 = vcombine.low %v1603_v36, %v1610_v42  ;;  %v6274_v25 = vld [vmem:[%s13326_s6 + $0x1678] sm:$0xff]  ;;  %v6271_v31 = vld [vmem:[%s13326_s6 + $0x1660] sm:$0xff]  ;;  %v6280_v36 = vld [vmem:[%s13326_s6 + $0x16a8] sm:$0xff] }
 0x333   : > { %6316 = vmatprep.mubr.msk.f32.mxu1 %vm883_vm4, %v10920_v41  ;;  %7660 = vmatprep.subr.bf16.mxu0 %v7659_v37  ;;  %v7715_v16 = vpack.c.bf16 %v6274_v25, %v6270_v17  ;;  %v6278_v37 = vld [vmem:[%s13326_s6 + $0x1698] sm:$0xff]  ;;  %v7677_v39 = vpack.c.bf16 %v6271_v31, %v6267_v30  ;;  %v7679_v42 = vpack.c.bf16 %v6280_v36, %v6276_v35  ;;  %v6303_v21 = vld [vmem:[%s13326_s6 + $0x1760] sm:$0xff]  ;;  %v6301_v17 = vld [vmem:[%s13326_s6 + $0x1750] sm:$0xff] }
 0x334   : > { %v1618_v59 = vrot.slane %v1611_v48, %v10317_v51  ;;  %7700 = vmatprep.subr.bf16.mxu1 %v7699_v43  ;;  %v6275_v43 = vld [vmem:[%s13326_s6 + $0x1680] sm:$0xff]  ;;  %v6281_v48 = vld [vmem:[%s13326_s6 + $0x16b0] sm:$0xff]  ;;  %v6306_v13 = vld [vmem:[%s13326_s6 + $0x1778] sm:$0xff]  ;;  %v741_v31 = vadd.f32 %v9021_v11, %v10490_v28 }
 0x335   : > { %7662 = vmatpush1.bf16.msra.mxu0 %v7661_v47  ;;  %v7719_v47 = vpack.c.bf16 %v6282_v38, %v6278_v37  ;;  %v7681_v54 = vpack.c.bf16 %v6279_v45, %v6275_v43  ;;  %v6305_v25 = vld [vmem:[%s13326_s6 + $0x1770] sm:$0xff]  ;;  %v6310_v30 = vld [vmem:[%s13326_s6 + $0x1798] sm:$0x1f]  ;;  %v6317_v11 = vld [vmem:[%s13326_s6 + $0x17a0] sm:$0xff] }
 0x336   : > { %v10959_v63 = vadd.f32 %v1618_v59, %v10688_v34  ;;  %7702 = vmatpush1.bf16.msra.mxu1 %v7701_v49  ;;  %7664 = vmatprep.subr.bf16.mxu0 %v7663_v50  ;;  %v6257_v34 = vld [vmem:[%s13326_s6 + $0x15f0] sm:$0xff]  ;;  %v6284_v49 = vld [vmem:[%s13326_s6 + $0x16c8] sm:$0xff]  ;;  %v6320_v33 = vld [vmem:[%s13326_s6 + $0x17b8] sm:$0xff] }
 0x337   : > { %7704 = vmatprep.subr.bf16.mxu1 %v7703_v55  ;;  %v7709_v9 = vpack.c.bf16 %v6257_v34, %v6253_v5  ;;  %v6288_v50 = vld [vmem:[%s13326_s6 + $0x16e8] sm:$0xff]  ;;  %v7721_v55 = vpack.c.bf16 %v6281_v48, %v6277_v46  ;;  %v6285_v59 = vld [vmem:[%s13326_s6 + $0x16d0] sm:$0xff]  ;;  %v6291_v34 = vld [vmem:[%s13326_s6 + $0x1700] sm:$0xff]  ;;  %v11163_v48 = vmax.f32 %v741_v31, 0.0 }
 0x338   : > { %v7683_v56 = vpack.c.bf16 %v6288_v50, %v6284_v49  ;;  %v7725_v5 = vpack.c.bf16 %v6289_v61, %v6285_v59  ;;  %v7689_v14 = vpack.c.bf16 %v6295_v7, %v6291_v34  ;;  %v6324_v35 = vld [vmem:[%s13326_s6 + $0x17d8] sm:$0xff]  ;;  %v6321_v28 = vld [vmem:[%s13326_s6 + $0x17c0] sm:$0xff]  ;;  %v6319_v38 = vld [vmem:[%s13326_s6 + $0x17b0] sm:$0xff] }
 0x339   : > { %7666 = vmatpush1.bf16.msra.mxu0 %v7665_v62  ;;  %v6292_v62 = vld [vmem:[%s13326_s6 + $0x1708] sm:$0xff]  ;;  %v6307_v36 = vld [vmem:[%s13326_s6 + $0x1780] sm:$0x1f]  ;;  %v7775_v49 = vpack.c.bf16 %v6324_v35, %v6320_v33  ;;  %v7737_v50 = vpack.c.bf16 %v6321_v28, %v6317_v11  ;;  %v6336_v34 = vld [vmem:[%s13326_s6 + $0x1838] sm:$0xff] }
 0x33a   : > { %7706 = vmatpush1.bf16.msra.mxu1 %v7705_v1  ;;  %7668 = vmatprep.subr.bf16.mxu0 %v7667_v2  ;;  %v6296_v1 = vld [vmem:[%s13326_s6 + $0x1728] sm:$0xff]  ;;  %v6294_v2 = vld [vmem:[%s13326_s6 + $0x1718] sm:$0xff]  ;;  %v6329_v59 = vld [vmem:[%s13326_s6 + $0x1800] sm:$0xff] }
 0x33b   : > { %7708 = vmatprep.subr.bf16.mxu1 %v7707_v6  ;;  %v7687_v6 = vpack.c.bf16 %v6296_v1, %v6292_v62  ;;  %v7727_v18 = vpack.c.bf16 %v6298_v3, %v6294_v2  ;;  %v6326_v46 = vld [vmem:[%s13326_s6 + $0x17e8] sm:$0xff]  ;;  %v6331_v1 = vld [vmem:[%s13326_s6 + $0x1810] sm:$0xff]  ;;  %v6340_v7 = vld [vmem:[%s13326_s6 + $0x1858] sm:$0xff]  ;;  %v7741_v15 = vpack.c.bf16 %v6329_v59, %v6325_v58 }
 0x33c   : > { %v6334_v2 = vld [vmem:[%s13326_s6 + $0x1828] sm:$0xff]  ;;  %v6345_v31 = vld [vmem:[%s13326_s6 + $0x1880] sm:$0xff]  ;;  %v6352_v11 = vld [vmem:[%s13326_s6 + $0x18b8] sm:$0xff] }
 0x33d   : > { %7670 = vmatpush1.bf16.msra.mxu0 %v7669_v8  ;;  %v6300_v8 = vld [vmem:[%s13326_s6 + $0x1748] sm:$0xff]  ;;  %v6356_v28 = vld [vmem:[%s13326_s6 + $0x18d8] sm:$0xff]  ;;  %v6363_v59 = vld [vmem:[%s13326_s6 + $0x1910] sm:$0xff] }
 0x33e   : > { %7710 = vmatpush1.bf16.msra.mxu1 %v7709_v9  ;;  %7672 = vmatprep.subr.bf16.mxu0 %v7671_v12  ;;  %v6304_v9 = vld [vmem:[%s13326_s6 + $0x1768] sm:$0xff]  ;;  %v6302_v12 = vld [vmem:[%s13326_s6 + $0x1758] sm:$0xff] }
 0x33f   : > { %7712 = vmatprep.subr.bf16.mxu1 %v7711_v20  ;;  %v7691_v20 = vpack.c.bf16 %v6304_v9, %v6300_v8  ;;  %v7731_v24 = vpack.c.bf16 %v6306_v13, %v6302_v12  ;;  %v6338_v3 = vld [vmem:[%s13326_s6 + $0x1848] sm:$0xff]  ;;  %v6333_v9 = vld [vmem:[%s13326_s6 + $0x1820] sm:$0xff]  ;;  %v6335_v13 = vld [vmem:[%s13326_s6 + $0x1830] sm:$0xff] }
 0x340   : > { %v7743_v8 = vpack.c.bf16 %v6338_v3, %v6334_v2  ;;  %v6337_v12 = vld [vmem:[%s13326_s6 + $0x1840] sm:$0xff]  ;;  %v6350_v33 = vld [vmem:[%s13326_s6 + $0x18a8] sm:$0xff] }
 0x341   : > { %7674 = vmatpush1.bf16.msra.mxu0 %v7673_v26  ;;  %v7693_v26 = vpack.c.bf16 %v6303_v21, %v6299_v10  ;;  %v6346_v10 = vld [vmem:[%s13326_s6 + $0x1888] sm:$0xff] }
 0x342   : > { %7714 = vmatpush1.bf16.msra.mxu1 %v7713_v27  ;;  %7676 = vmatprep.subr.bf16.mxu0 %v7675_v29  ;;  %v7733_v27 = vpack.c.bf16 %v6305_v25, %v6301_v17  ;;  %v6308_v29 = vld [vmem:[%s13326_s6 + $0x1788] sm:$0x1f]  ;;  %v6348_v17 = vld [vmem:[%s13326_s6 + $0x1898] sm:$0xff]  ;;  %v7745_v25 = vpack.c.bf16 %v6337_v12, %v6333_v9 }
 0x343   : > { %7716 = vmatprep.subr.bf16.mxu1 %v7715_v16  ;;  %v6322_v16 = vld [vmem:[%s13326_s6 + $0x17c8] sm:$0xff]  ;;  %v6380_v9 = vld [vmem:[%s13326_s6 + $0x1998] sm:$0xff] }
 0x344   : > { %v6354_v35 = vld [vmem:[%s13326_s6 + $0x18c8] sm:$0xff] }
 0x345   : > { %7678 = vmatpush1.bf16.msra.mxu0 %v7677_v39  ;;  %v6323_v39 = vld [vmem:[%s13326_s6 + $0x17d0] sm:$0xff] }
 0x346   : > { %7718 = vmatpush1.bf16.msra.mxu1 %v7717_v40  ;;  %7680 = vmatprep.subr.bf16.mxu0 %v7679_v42  ;;  %v6309_v40 = vld [vmem:[%s13326_s6 + $0x1790] sm:$0x1f]  ;;  %v7735_v42 = vpack.c.bf16 %v6322_v16, %v6318_v32 }
 0x347   : > { %7720 = vmatprep.subr.bf16.mxu1 %v7719_v47  ;;  %v6330_v47 = vld [vmem:[%s13326_s6 + $0x1808] sm:$0xff]  ;;  %v6343_v32 = vld [vmem:[%s13326_s6 + $0x1870] sm:$0xff] }
 0x348   : > { %v7739_v62 = vpack.c.bf16 %v6330_v47, %v6326_v46  ;;  %v6358_v46 = vld [vmem:[%s13326_s6 + $0x18e8] sm:$0xff] }
 0x349   : > { %7682 = vmatpush1.bf16.msra.mxu0 %v7681_v54  ;;  %v6328_v54 = vld [vmem:[%s13326_s6 + $0x17f8] sm:$0xff]  ;;  %v6362_v47 = vld [vmem:[%s13326_s6 + $0x1908] sm:$0xff] }
 0x34a   : > { %7722 = vmatpush1.bf16.msra.mxu1 %v7721_v55  ;;  %7684 = vmatprep.subr.bf16.mxu0 %v7683_v56  ;;  %v6332_v55 = vld [vmem:[%s13326_s6 + $0x1818] sm:$0xff]  ;;  %v7777_v56 = vpack.c.bf16 %v6323_v39, %v6319_v38  ;;  %v7751_v38 = vpack.c.bf16 %v6354_v35, %v6350_v33  ;;  %v6349_v39 = vld [vmem:[%s13326_s6 + $0x18a0] sm:$0xff]  ;;  %v6383_v33 = vld [vmem:[%s13326_s6 + $0x19b0] sm:$0xff] }
 0x34b   : > { %7724 = vmatprep.subr.bf16.mxu1 %v7723_v60  ;;  %v6327_v60 = vld [vmem:[%s13326_s6 + $0x17f0] sm:$0xff] }
 0x34c   : > { %v7781_v23 = vpack.c.bf16 %v6331_v1, %v6327_v60  ;;  %v6366_v60 = vld [vmem:[%s13326_s6 + $0x1928] sm:$0xff]  ;;  %v6372_v1 = vld [vmem:[%s13326_s6 + $0x1958] sm:$0xff] }
 0x34d   : > { %7686 = vmatpush1.bf16.msra.mxu0 %v7685_v4  ;;  %v3350_v4 = vrot.slane %v10920_v41, 1 }
 0x34e   : > { %7726 = vmatpush1.bf16.msra.mxu1 %v7725_v5  ;;  %7688 = vmatprep.subr.bf16.mxu0 %v7687_v6  ;;  %v7779_v6 = vpack.c.bf16 %v6332_v55, %v6328_v54  ;;  %v7755_v54 = vpack.c.bf16 %v6362_v47, %v6358_v46  ;;  %v6357_v55 = vld [vmem:[%s13326_s6 + $0x18e0] sm:$0xff]  ;;  %v6391_v47 = vld [vmem:[%s13326_s6 + $0x19f0] sm:$0xff] }
 0x34f   : > { %7728 = vmatprep.subr.bf16.mxu1 %v7727_v18 }
 0x351   : > { %7690 = vmatpush1.bf16.msra.mxu0 %v7689_v14  ;;  %v7783_v14 = vpack.c.bf16 %v6340_v7, %v6336_v34  ;;  %v6367_v34 = vld [vmem:[%s13326_s6 + $0x1930] sm:$0xff] }
 0x352   : > { %7730 = vmatpush1.bf16.msra.mxu1 %v7729_v19  ;;  %7692 = vmatprep.subr.bf16.mxu0 %v7691_v20  ;;  %v6339_v19 = vld [vmem:[%s13326_s6 + $0x1850] sm:$0xff]  ;;  %v6342_v20 = vld [vmem:[%s13326_s6 + $0x1868] sm:$0xff] }
 0x353   : > { %7732 = vmatprep.subr.bf16.mxu1 %v7731_v24  ;;  %v6344_v24 = vld [vmem:[%s13326_s6 + $0x1878] sm:$0xff] }
 0x354   : > { %v7787_v16 = vpack.c.bf16 %v6348_v17, %v6344_v24  ;;  %v6379_v24 = vld [vmem:[%s13326_s6 + $0x1990] sm:$0xff]  ;;  %v6382_v17 = vld [vmem:[%s13326_s6 + $0x19a8] sm:$0xff] }
 0x355   : > { %7694 = vmatpush1.bf16.msra.mxu0 %v7693_v26 }
 0x356   : > { %7734 = vmatpush1.bf16.msra.mxu1 %v7733_v27  ;;  %6311 = vmatprep.subr.msk.mxu0 %vm887_vm3, %v6308_v29  ;;  %v1789_v37 = vpop.f32.mrb[24].mxu0  ;;  %v7785_v27 = vpack.c.bf16 %v6339_v19, %v6335_v13  ;;  %v7747_v29 = vpack.c.bf16 %v6346_v10, %v6342_v20  ;;  %v6373_v19 = vld [vmem:[%s13326_s6 + $0x1960] sm:$0xff]  ;;  %v6375_v10 = vld [vmem:[%s13326_s6 + $0x1970] sm:$0xff] }
 0x357   : > { %6314 = vmatprep.subr.msk.mxu1 %vm887_vm3, %v6310_v30  ;;  %v1860_v43 = vpop.f32.mrb[10].mxu1  ;;  %v1791_v45 = vpop.f32.mrb[25].mxu0  ;;  %v6341_v30 = vld [vmem:[%s13326_s6 + $0x1860] sm:$0xff] }
 0x358   : > { %v1869_v52 = vcombine.low %v1789_v37, %v1791_v45  ;;  %v1862_v53 = vpop.f32.mrb[11].mxu1  ;;  %v6355_v45 = vld [vmem:[%s13326_s6 + $0x18d0] sm:$0xff]  ;;  %v6377_v20 = vld [vmem:[%s13326_s6 + $0x1980] sm:$0xff] }
 0x359   : > { %6312 = vmatpush1.msk.msra.mxu0 %vm887_vm3, %v6307_v36  ;;  %v1870_v57 = vcombine.low %v1860_v43, %v1862_v53  ;;  %v7749_v36 = vpack.c.bf16 %v6345_v31, %v6341_v30  ;;  %v7791_v43 = vpack.c.bf16 %v6356_v28, %v6352_v11  ;;  %v7765_v30 = vpack.c.bf16 %v6377_v20, %v6373_v19  ;;  %v6387_v11 = vld [vmem:[%s13326_s6 + $0x19d0] sm:$0xff]  ;;  %v6390_v28 = vld [vmem:[%s13326_s6 + $0x19e8] sm:$0xff]  ;;  %v6415_v20 = vld [vmem:[%s13326_s6 + $0x1a80] sm:$0xff] }
 0x35a   : > { %6315 = vmatpush1.msk.msra.mxu1 %vm887_vm3, %v6309_v40  ;;  %3156 = vmatmul.mubr.f32.vlgmr.msra.gmra.mrb[34].mxu0 %v11163_v48  ;;  %v1877_v61 = vrot.slane %v1869_v52, %v10317_v51  ;;  %v6353_v40 = vld [vmem:[%s13326_s6 + $0x18c0] sm:$0xff]  ;;  %v7805_v31 = vpack.c.bf16 %v6379_v24, %v6375_v10 }
 0x35b   : > { %3227 = vmatmul.mubr.f32.vlgmr.msra.gmra.mrb[20].mxu1 %v11163_v48  ;;  %7736 = vmatprep.subr.bf16.mxu0 %v7735_v42  ;;  %v1884_v5 = vrot.slane %v1870_v57, %v10317_v51  ;;  %v6351_v42 = vld [vmem:[%s13326_s6 + $0x18b0] sm:$0xff]  ;;  %v7753_v52 = vpack.c.bf16 %v6353_v40, %v6349_v39  ;;  %v7809_v40 = vpack.c.bf16 %v6387_v11, %v6383_v33  ;;  %v6419_v10 = vld [vmem:[%s13326_s6 + $0x1aa0] sm:$0xff] }
 0x35c   : > { %7776 = vmatprep.subr.bf16.mxu1 %v7775_v49  ;;  %7738 = vmatpush1.bf16.msra.mxu0 %v7737_v50  ;;  %v6360_v49 = vld [vmem:[%s13326_s6 + $0x18f8] sm:$0xff]  ;;  %v7793_v53 = vpack.c.bf16 %v6355_v45, %v6351_v42  ;;  %v6359_v57 = vld [vmem:[%s13326_s6 + $0x18f0] sm:$0xff]  ;;  %v6393_v45 = vld [vmem:[%s13326_s6 + $0x1a00] sm:$0xff]  ;;  %v7821_v33 = vpack.c.bf16 %v6419_v10, %v6415_v20 }
 0x35d   : > { %6403 = vmatprep.mubr.msk.f32.mxu0 %vm883_vm4, %v3350_v4  ;;  %7778 = vmatpush1.bf16.msra.mxu1 %v7777_v56  ;;  %v1885_v18 = vcombine.low %v1877_v61, %v1884_v5  ;;  %v6364_v50 = vld [vmem:[%s13326_s6 + $0x1918] sm:$0xff]  ;;  %v6361_v56 = vld [vmem:[%s13326_s6 + $0x1900] sm:$0xff]  ;;  %v6370_v61 = vld [vmem:[%s13326_s6 + $0x1948] sm:$0xff]  ;;  %v7797_v3 = vpack.c.bf16 %v6363_v59, %v6359_v57 }
 0x35e   : > { %6406 = vmatprep.mubr.msk.f32.mxu1 %vm883_vm4, %v3350_v4  ;;  %7740 = vmatprep.subr.bf16.mxu0 %v7739_v62  ;;  %v7795_v58 = vpack.c.bf16 %v6364_v50, %v6360_v49  ;;  %v6368_v62 = vld [vmem:[%s13326_s6 + $0x1938] sm:$0xff]  ;;  %v7757_v2 = vpack.c.bf16 %v6361_v56, %v6357_v55  ;;  %v7759_v4 = vpack.c.bf16 %v6370_v61, %v6366_v60  ;;  %v6365_v5 = vld [vmem:[%s13326_s6 + $0x1920] sm:$0xff]  ;;  %v6395_v49 = vld [vmem:[%s13326_s6 + $0x1a10] sm:$0xff] }
 0x35f   : > { %v1892_v21 = vrot.slane %v1885_v18, %v10317_v51  ;;  %7780 = vmatprep.subr.bf16.mxu1 %v7779_v6  ;;  %v6369_v6 = vld [vmem:[%s13326_s6 + $0x1940] sm:$0xff]  ;;  %v7799_v7 = vpack.c.bf16 %v6372_v1, %v6368_v62  ;;  %v6374_v18 = vld [vmem:[%s13326_s6 + $0x1968] sm:$0xff]  ;;  %v6410_v57 = vld [vmem:[%s13326_s6 + $0x1a58] sm:$0xff] }
 0x360   : > { %7742 = vmatpush1.bf16.msra.mxu0 %v7741_v15  ;;  %v6371_v15 = vld [vmem:[%s13326_s6 + $0x1950] sm:$0xff]  ;;  %v7761_v12 = vpack.c.bf16 %v6369_v6, %v6365_v5  ;;  %v6408_v55 = vld [vmem:[%s13326_s6 + $0x1a48] sm:$0xff]  ;;  %v6407_v59 = vld [vmem:[%s13326_s6 + $0x1a40] sm:$0xff] }
 0x361   : > { %v11230_v26 = vadd.f32 %v1892_v21, %v10959_v63  ;;  %7782 = vmatpush1.bf16.msra.mxu1 %v7781_v23  ;;  %7744 = vmatprep.subr.bf16.mxu0 %v7743_v8  ;;  %v6347_v63 = vld [vmem:[%s13326_s6 + $0x1890] sm:$0xff]  ;;  %v6378_v23 = vld [vmem:[%s13326_s6 + $0x1988] sm:$0xff]  ;;  %v6376_v8 = vld [vmem:[%s13326_s6 + $0x1978] sm:$0xff]  ;;  %v7801_v13 = vpack.c.bf16 %v6371_v15, %v6367_v34  ;;  %v3349_v15 = vrot.slane %v11163_v48, 1 }
 0x362   : > { %7784 = vmatprep.subr.bf16.mxu1 %v7783_v14  ;;  %v7789_v37 = vpack.c.bf16 %v6347_v63, %v6343_v32  ;;  %v7763_v14 = vpack.c.bf16 %v6378_v23, %v6374_v18  ;;  %v7803_v21 = vpack.c.bf16 %v6380_v9, %v6376_v8  ;;  %v6385_v63 = vld [vmem:[%s13326_s6 + $0x19c0] sm:$0xff]  ;;  %v6412_v56 = vld [vmem:[%s13326_s6 + $0x1a68] sm:$0xff]  ;;  %v6409_v1 = vld [vmem:[%s13326_s6 + $0x1a50] sm:$0xff] }
 0x363   : > { %v6411_v60 = vld [vmem:[%s13326_s6 + $0x1a60] sm:$0xff]  ;;  %v6416_v34 = vld [vmem:[%s13326_s6 + $0x1a88] sm:$0xff]  ;;  %v6453_v10 = vld [vmem:[%s13326_s6 + $0x1bb0] sm:$0xff] }
 0x364   : > { %7746 = vmatpush1.bf16.msra.mxu0 %v7745_v25  ;;  %v6386_v25 = vld [vmem:[%s13326_s6 + $0x19c8] sm:$0xff]  ;;  %v6397_v61 = vld [vmem:[%s13326_s6 + $0x1a20] sm:$0x1f]  ;;  %v7817_v23 = vpack.c.bf16 %v6411_v60, %v6407_v59  ;;  %v6442_v60 = vld [vmem:[%s13326_s6 + $0x1b58] sm:$0xff] }
 0x365   : > { %7786 = vmatpush1.bf16.msra.mxu1 %v7785_v27  ;;  %7748 = vmatprep.subr.bf16.mxu0 %v7747_v29  ;;  %v6384_v27 = vld [vmem:[%s13326_s6 + $0x19b8] sm:$0xff]  ;;  %v7767_v32 = vpack.c.bf16 %v6386_v25, %v6382_v17  ;;  %v6421_v25 = vld [vmem:[%s13326_s6 + $0x1ab0] sm:$0xff]  ;;  %v6444_v59 = vld [vmem:[%s13326_s6 + $0x1b68] sm:$0xff] }
 0x366   : > { %7788 = vmatprep.subr.bf16.mxu1 %v7787_v16  ;;  %v6388_v29 = vld [vmem:[%s13326_s6 + $0x19d8] sm:$0xff]  ;;  %v6381_v16 = vld [vmem:[%s13326_s6 + $0x19a0] sm:$0xff] }
 0x367   : > { %v7807_v35 = vpack.c.bf16 %v6388_v29, %v6384_v27  ;;  %v7769_v39 = vpack.c.bf16 %v6385_v63, %v6381_v16  ;;  %v6424_v27 = vld [vmem:[%s13326_s6 + $0x1ac8] sm:$0xff]  ;;  %v6426_v16 = vld [vmem:[%s13326_s6 + $0x1ad8] sm:$0xff] }
 0x368   : > { %7750 = vmatpush1.bf16.msra.mxu0 %v7749_v36  ;;  %v6394_v36 = vld [vmem:[%s13326_s6 + $0x1a08] sm:$0xff]  ;;  %v6430_v63 = vld [vmem:[%s13326_s6 + $0x1af8] sm:$0xff] }
 0x369   : > { %7790 = vmatpush1.bf16.msra.mxu1 %v7789_v37  ;;  %7752 = vmatprep.subr.bf16.mxu0 %v7751_v38  ;;  %v6392_v37 = vld [vmem:[%s13326_s6 + $0x19f8] sm:$0xff]  ;;  %v7771_v42 = vpack.c.bf16 %v6394_v36, %v6390_v28  ;;  %v6428_v29 = vld [vmem:[%s13326_s6 + $0x1ae8] sm:$0xff]  ;;  %v6423_v36 = vld [vmem:[%s13326_s6 + $0x1ac0] sm:$0xff] }
 0x36a   : > { %7792 = vmatprep.subr.bf16.mxu1 %v7791_v43  ;;  %v6396_v38 = vld [vmem:[%s13326_s6 + $0x1a18] sm:$0xff]  ;;  %v6389_v43 = vld [vmem:[%s13326_s6 + $0x19e0] sm:$0xff]  ;;  %v7823_v28 = vpack.c.bf16 %v6428_v29, %v6424_v27 }
 0x36b   : > { %v7811_v46 = vpack.c.bf16 %v6396_v38, %v6392_v37  ;;  %v7773_v50 = vpack.c.bf16 %v6393_v45, %v6389_v43  ;;  %v6427_v37 = vld [vmem:[%s13326_s6 + $0x1ae0] sm:$0xff]  ;;  %v6425_v38 = vld [vmem:[%s13326_s6 + $0x1ad0] sm:$0xff]  ;;  %v6436_v43 = vld [vmem:[%s13326_s6 + $0x1b28] sm:$0xff] }
 0x36c   : > { %7754 = vmatpush1.bf16.msra.mxu0 %v7753_v52  ;;  %v7813_v52 = vpack.c.bf16 %v6395_v49, %v6391_v47  ;;  %v6438_v47 = vld [vmem:[%s13326_s6 + $0x1b38] sm:$0xff]  ;;  %v7825_v49 = vpack.c.bf16 %v6427_v37, %v6423_v36 }
 0x36d   : > { %7794 = vmatpush1.bf16.msra.mxu1 %v7793_v53  ;;  %7756 = vmatprep.subr.bf16.mxu0 %v7755_v54  ;;  %v6398_v53 = vld [vmem:[%s13326_s6 + $0x1a28] sm:$0x1f]  ;;  %v6400_v54 = vld [vmem:[%s13326_s6 + $0x1a38] sm:$0x1f] }
 0x36e   : > { %7796 = vmatprep.subr.bf16.mxu1 %v7795_v58  ;;  %v6414_v58 = vld [vmem:[%s13326_s6 + $0x1a78] sm:$0xff] }
 0x36f   : > { %v7855_v18 = vpack.c.bf16 %v6414_v58, %v6410_v57  ;;  %v6440_v58 = vld [vmem:[%s13326_s6 + $0x1b48] sm:$0xff]  ;;  %v6470_v36 = vld [vmem:[%s13326_s6 + $0x1c38] sm:$0xff] }
 0x370   : > { %7758 = vmatpush1.bf16.msra.mxu0 %v7757_v2  ;;  %v6413_v2 = vld [vmem:[%s13326_s6 + $0x1a70] sm:$0xff] }
 0x371   : > { %7798 = vmatpush1.bf16.msra.mxu1 %v7797_v3  ;;  %7760 = vmatprep.subr.bf16.mxu0 %v7759_v4  ;;  %v6399_v3 = vld [vmem:[%s13326_s6 + $0x1a30] sm:$0x1f]  ;;  %v7815_v4 = vpack.c.bf16 %v6412_v56, %v6408_v55  ;;  %v6435_v55 = vld [vmem:[%s13326_s6 + $0x1b20] sm:$0xff] }
 0x372   : > { %7800 = vmatprep.subr.bf16.mxu1 %v7799_v7  ;;  %v6420_v7 = vld [vmem:[%s13326_s6 + $0x1aa8] sm:$0xff]  ;;  %v6433_v56 = vld [vmem:[%s13326_s6 + $0x1b10] sm:$0xff] }
 0x373   : > { %v7819_v17 = vpack.c.bf16 %v6420_v7, %v6416_v34  ;;  %v6445_v34 = vld [vmem:[%s13326_s6 + $0x1b70] sm:$0xff]  ;;  %v6448_v7 = vld [vmem:[%s13326_s6 + $0x1b88] sm:$0xff] }
 0x374   : > { %7762 = vmatpush1.bf16.msra.mxu0 %v7761_v12  ;;  %v6418_v12 = vld [vmem:[%s13326_s6 + $0x1a98] sm:$0xff] }
 0x375   : > { %7802 = vmatpush1.bf16.msra.mxu1 %v7801_v13  ;;  %7764 = vmatprep.subr.bf16.mxu0 %v7763_v14  ;;  %v6422_v13 = vld [vmem:[%s13326_s6 + $0x1ab8] sm:$0xff]  ;;  %v7857_v14 = vpack.c.bf16 %v6413_v2, %v6409_v1  ;;  %v7831_v2 = vpack.c.bf16 %v6444_v59, %v6440_v58  ;;  %v6473_v58 = vld [vmem:[%s13326_s6 + $0x1c50] sm:$0xff] }
 0x376   : > { %7804 = vmatprep.subr.bf16.mxu1 %v7803_v21  ;;  %v6417_v21 = vld [vmem:[%s13326_s6 + $0x1a90] sm:$0xff] }
 0x377   : > { %v7861_v11 = vpack.c.bf16 %v6421_v25, %v6417_v21  ;;  %v6456_v21 = vld [vmem:[%s13326_s6 + $0x1bc8] sm:$0xff]  ;;  %v6462_v25 = vld [vmem:[%s13326_s6 + $0x1bf8] sm:$0xff] }
 0x378   : > { %7766 = vmatpush1.bf16.msra.mxu0 %v7765_v30  ;;  %v3624_v30 = vrot.slane %v10920_v41, 2 }
 0x379   : > { %7806 = vmatpush1.bf16.msra.mxu1 %v7805_v31  ;;  %7768 = vmatprep.subr.bf16.mxu0 %v7767_v32  ;;  %v7859_v32 = vpack.c.bf16 %v6422_v13, %v6418_v12  ;;  %v6447_v13 = vld [vmem:[%s13326_s6 + $0x1b80] sm:$0xff] }
 0x37a   : > { %7808 = vmatprep.subr.bf16.mxu1 %v7807_v35 }
 0x37c   : > { %7770 = vmatpush1.bf16.msra.mxu0 %v7769_v39  ;;  %v7863_v39 = vpack.c.bf16 %v6430_v63, %v6426_v16  ;;  %v6457_v16 = vld [vmem:[%s13326_s6 + $0x1bd0] sm:$0xff] }
 0x37d   : > { %7810 = vmatpush1.bf16.msra.mxu1 %v7809_v40  ;;  %7772 = vmatprep.subr.bf16.mxu0 %v7771_v42  ;;  %v6429_v40 = vld [vmem:[%s13326_s6 + $0x1af0] sm:$0xff]  ;;  %v6432_v42 = vld [vmem:[%s13326_s6 + $0x1b08] sm:$0xff] }
 0x37e   : > { %7812 = vmatprep.subr.bf16.mxu1 %v7811_v46  ;;  %v6434_v46 = vld [vmem:[%s13326_s6 + $0x1b18] sm:$0xff] }
 0x37f   : > { %v7867_v57 = vpack.c.bf16 %v6438_v47, %v6434_v46  ;;  %v6469_v46 = vld [vmem:[%s13326_s6 + $0x1c30] sm:$0xff]  ;;  %v6472_v47 = vld [vmem:[%s13326_s6 + $0x1c48] sm:$0xff] }
 0x380   : > { %7774 = vmatpush1.bf16.msra.mxu0 %v7773_v50 }
 0x381   : > { %7814 = vmatpush1.bf16.msra.mxu1 %v7813_v52  ;;  %6401 = vmatprep.subr.msk.mxu0 %vm887_vm3, %v6398_v53  ;;  %v2063_v62 = vpop.f32.mrb[26].mxu0  ;;  %v7865_v52 = vpack.c.bf16 %v6429_v40, %v6425_v38  ;;  %v7827_v53 = vpack.c.bf16 %v6436_v43, %v6432_v42  ;;  %v6463_v40 = vld [vmem:[%s13326_s6 + $0x1c00] sm:$0xff]  ;;  %v6465_v43 = vld [vmem:[%s13326_s6 + $0x1c10] sm:$0xff] }
 0x382   : > { %6404 = vmatprep.subr.msk.mxu1 %vm887_vm3, %v6400_v54  ;;  %v2134_v5 = vpop.f32.mrb[12].mxu1  ;;  %v2065_v6 = vpop.f32.mrb[27].mxu0  ;;  %v6431_v54 = vld [vmem:[%s13326_s6 + $0x1b00] sm:$0xff] }
 0x383   : > { %v2143_v8 = vcombine.low %v2063_v62, %v2065_v6  ;;  %v2136_v9 = vpop.f32.mrb[13].mxu1  ;;  %v7829_v62 = vpack.c.bf16 %v6435_v55, %v6431_v54  ;;  %v6467_v42 = vld [vmem:[%s13326_s6 + $0x1c20] sm:$0xff]  ;;  %v7885_v55 = vpack.c.bf16 %v6469_v46, %v6465_v43 }
 0x384   : > { %6402 = vmatpush1.msk.msra.mxu0 %vm887_vm3, %v6397_v61  ;;  %v2144_v19 = vcombine.low %v2134_v5, %v2136_v9  ;;  %v6446_v61 = vld [vmem:[%s13326_s6 + $0x1b78] sm:$0xff]  ;;  %v6441_v5 = vld [vmem:[%s13326_s6 + $0x1b50] sm:$0xff]  ;;  %v7845_v54 = vpack.c.bf16 %v6467_v42, %v6463_v40  ;;  %v6505_v42 = vld [vmem:[%s13326_s6 + $0x1d20] sm:$0xff] }
 0x385   : > { %6405 = vmatpush1.msk.msra.mxu1 %vm887_vm3, %v6399_v3  ;;  %3431 = vmatmul.mubr.f32.vlgmr.msra.gmra.mrb[36].mxu0 %v3349_v15  ;;  %v2151_v24 = vrot.slane %v2143_v8, %v10317_v51  ;;  %v6439_v3 = vld [vmem:[%s13326_s6 + $0x1b40] sm:$0xff]  ;;  %v7871_v6 = vpack.c.bf16 %v6446_v61, %v6442_v60  ;;  %v7873_v9 = vpack.c.bf16 %v6445_v34, %v6441_v5  ;;  %v6477_v60 = vld [vmem:[%s13326_s6 + $0x1c70] sm:$0xff]  ;;  %v6480_v61 = vld [vmem:[%s13326_s6 + $0x1c88] sm:$0xff] }
 0x386   : > { %3502 = vmatmul.mubr.f32.vlgmr.msra.gmra.mrb[22].mxu1 %v3349_v15  ;;  %7816 = vmatprep.subr.bf16.mxu0 %v7815_v4  ;;  %v2158_v31 = vrot.slane %v2144_v19, %v10317_v51  ;;  %v6443_v4 = vld [vmem:[%s13326_s6 + $0x1b60] sm:$0xff]  ;;  %v6452_v15 = vld [vmem:[%s13326_s6 + $0x1ba8] sm:$0xff]  ;;  %v6449_v19 = vld [vmem:[%s13326_s6 + $0x1b90] sm:$0xff] }
 0x387   : > { %7856 = vmatprep.subr.bf16.mxu1 %v7855_v18  ;;  %7818 = vmatpush1.bf16.msra.mxu0 %v7817_v23  ;;  %v6450_v18 = vld [vmem:[%s13326_s6 + $0x1b98] sm:$0xff]  ;;  %v7833_v8 = vpack.c.bf16 %v6443_v4, %v6439_v3  ;;  %v7835_v12 = vpack.c.bf16 %v6452_v15, %v6448_v7  ;;  %v7877_v29 = vpack.c.bf16 %v6453_v10, %v6449_v19  ;;  %v6483_v34 = vld [vmem:[%s13326_s6 + $0x1ca0] sm:$0xff]  ;;  %v6481_v15 = vld [vmem:[%s13326_s6 + $0x1c90] sm:$0xff] }
 0x388   : > { %6493 = vmatprep.mubr.msk.f32.mxu0 %vm883_vm4, %v3624_v30  ;;  %7858 = vmatpush1.bf16.msra.mxu1 %v7857_v14  ;;  %v2159_v35 = vcombine.low %v2151_v24, %v2158_v31  ;;  %v6454_v23 = vld [vmem:[%s13326_s6 + $0x1bb8] sm:$0xff]  ;;  %v6451_v14 = vld [vmem:[%s13326_s6 + $0x1ba0] sm:$0xff]  ;;  %v6460_v24 = vld [vmem:[%s13326_s6 + $0x1be8] sm:$0xff]  ;;  %v7889_v4 = vpack.c.bf16 %v6477_v60, %v6473_v58 }
 0x389   : > { %6496 = vmatprep.mubr.msk.f32.mxu1 %vm883_vm4, %v3624_v30  ;;  %7820 = vmatprep.subr.bf16.mxu0 %v7819_v17  ;;  %v7875_v20 = vpack.c.bf16 %v6454_v23, %v6450_v18  ;;  %v6458_v17 = vld [vmem:[%s13326_s6 + $0x1bd8] sm:$0xff]  ;;  %v7837_v27 = vpack.c.bf16 %v6451_v14, %v6447_v13  ;;  %v7839_v30 = vpack.c.bf16 %v6460_v24, %v6456_v21  ;;  %v6455_v31 = vld [vmem:[%s13326_s6 + $0x1bc0] sm:$0xff]  ;;  %v6485_v18 = vld [vmem:[%s13326_s6 + $0x1cb0] sm:$0xff] }
 0x38a   : > { %v2166_v45 = vrot.slane %v2159_v35, %v10317_v51  ;;  %7860 = vmatprep.subr.bf16.mxu1 %v7859_v32  ;;  %v6459_v32 = vld [vmem:[%s13326_s6 + $0x1be0] sm:$0xff]  ;;  %v7879_v63 = vpack.c.bf16 %v6462_v25, %v6458_v17  ;;  %v6464_v35 = vld [vmem:[%s13326_s6 + $0x1c08] sm:$0xff]  ;;  %v6500_v19 = vld [vmem:[%s13326_s6 + $0x1cf8] sm:$0xff] }
 0x38b   : > { %7822 = vmatpush1.bf16.msra.mxu0 %v7821_v33  ;;  %v6461_v33 = vld [vmem:[%s13326_s6 + $0x1bf0] sm:$0xff]  ;;  %v7841_v37 = vpack.c.bf16 %v6459_v32, %v6455_v31  ;;  %v6498_v13 = vld [vmem:[%s13326_s6 + $0x1ce8] sm:$0xff]  ;;  %v6497_v10 = vld [vmem:[%s13326_s6 + $0x1ce0] sm:$0xff] }
 0x38c   : > { %v11496_v50 = vadd.f32 %v2166_v45, %v11230_v26  ;;  %7862 = vmatpush1.bf16.msra.mxu1 %v7861_v11  ;;  %7824 = vmatprep.subr.bf16.mxu0 %v7823_v28  ;;  %v6437_v26 = vld [vmem:[%s13326_s6 + $0x1b30] sm:$0xff]  ;;  %v6468_v11 = vld [vmem:[%s13326_s6 + $0x1c28] sm:$0xff]  ;;  %v6466_v28 = vld [vmem:[%s13326_s6 + $0x1c18] sm:$0xff]  ;;  %v7881_v38 = vpack.c.bf16 %v6461_v33, %v6457_v16  ;;  %v3623_v33 = vrot.slane %v11163_v48, 2 }
 0x38d   : > { %7864 = vmatprep.subr.bf16.mxu1 %v7863_v39  ;;  %v7869_v1 = vpack.c.bf16 %v6437_v26, %v6433_v56  ;;  %v7843_v39 = vpack.c.bf16 %v6468_v11, %v6464_v35  ;;  %v7883_v45 = vpack.c.bf16 %v6470_v36, %v6466_v28  ;;  %v6475_v26 = vld [vmem:[%s13326_s6 + $0x1c60] sm:$0xff]  ;;  %v6502_v14 = vld [vmem:[%s13326_s6 + $0x1d08] sm:$0xff]  ;;  %v6499_v25 = vld [vmem:[%s13326_s6 + $0x1cf0] sm:$0xff] }
 0x38e   : > { %v6501_v21 = vld [vmem:[%s13326_s6 + $0x1d00] sm:$0xff]  ;;  %v6506_v16 = vld [vmem:[%s13326_s6 + $0x1d28] sm:$0xff] }
 0x38f   : > { %7826 = vmatpush1.bf16.msra.mxu0 %v7825_v49  ;;  %v6476_v49 = vld [vmem:[%s13326_s6 + $0x1c68] sm:$0xff]  ;;  %v6487_v24 = vld [vmem:[%s13326_s6 + $0x1cc0] sm:$0x1f]  ;;  %v7897_v11 = vpack.c.bf16 %v6501_v21, %v6497_v10  ;;  %v6532_v21 = vld [vmem:[%s13326_s6 + $0x1df8] sm:$0xff] }
 0x390   : > { %7866 = vmatpush1.bf16.msra.mxu1 %v7865_v52  ;;  %7828 = vmatprep.subr.bf16.mxu0 %v7827_v53  ;;  %v6474_v52 = vld [vmem:[%s13326_s6 + $0x1c58] sm:$0xff]  ;;  %v7847_v56 = vpack.c.bf16 %v6476_v49, %v6472_v47  ;;  %v6509_v43 = vld [vmem:[%s13326_s6 + $0x1d40] sm:$0xff]  ;;  %v6511_v49 = vld [vmem:[%s13326_s6 + $0x1d50] sm:$0xff] }
 0x391   : > { %7868 = vmatprep.subr.bf16.mxu1 %v7867_v57  ;;  %v6478_v53 = vld [vmem:[%s13326_s6 + $0x1c78] sm:$0xff]  ;;  %v6471_v57 = vld [vmem:[%s13326_s6 + $0x1c40] sm:$0xff]  ;;  %v7901_v58 = vpack.c.bf16 %v6509_v43, %v6505_v42  ;;  %v6534_v10 = vld [vmem:[%s13326_s6 + $0x1e08] sm:$0xff] }
 0x392   : > { %v7887_v59 = vpack.c.bf16 %v6478_v53, %v6474_v52  ;;  %v7849_v3 = vpack.c.bf16 %v6475_v26, %v6471_v57  ;;  %v6514_v52 = vld [vmem:[%s13326_s6 + $0x1d68] sm:$0xff]  ;;  %v6516_v57 = vld [vmem:[%s13326_s6 + $0x1d78] sm:$0xff]  ;;  %v6543_v43 = vld [vmem:[%s13326_s6 + $0x1e50] sm:$0xff] }
 0x393   : > { %7830 = vmatpush1.bf16.msra.mxu0 %v7829_v62  ;;  %v6484_v62 = vld [vmem:[%s13326_s6 + $0x1ca8] sm:$0xff]  ;;  %v6520_v26 = vld [vmem:[%s13326_s6 + $0x1d98] sm:$0xff] }
 0x394   : > { %7870 = vmatpush1.bf16.msra.mxu1 %v7869_v1  ;;  %7832 = vmatprep.subr.bf16.mxu0 %v7831_v2  ;;  %v6482_v1 = vld [vmem:[%s13326_s6 + $0x1c98] sm:$0xff]  ;;  %v7851_v5 = vpack.c.bf16 %v6484_v62, %v6480_v61  ;;  %v6518_v53 = vld [vmem:[%s13326_s6 + $0x1d88] sm:$0xff]  ;;  %v6513_v62 = vld [vmem:[%s13326_s6 + $0x1d60] sm:$0xff] }
 0x395   : > { %7872 = vmatprep.subr.bf16.mxu1 %v7871_v6  ;;  %v6486_v2 = vld [vmem:[%s13326_s6 + $0x1cb8] sm:$0xff]  ;;  %v6479_v6 = vld [vmem:[%s13326_s6 + $0x1c80] sm:$0xff]  ;;  %v7903_v61 = vpack.c.bf16 %v6518_v53, %v6514_v52 }
 0x396   : > { %v7891_v7 = vpack.c.bf16 %v6486_v2, %v6482_v1  ;;  %v7853_v23 = vpack.c.bf16 %v6483_v34, %v6479_v6  ;;  %v6517_v1 = vld [vmem:[%s13326_s6 + $0x1d80] sm:$0xff]  ;;  %v6515_v2 = vld [vmem:[%s13326_s6 + $0x1d70] sm:$0xff]  ;;  %v6526_v6 = vld [vmem:[%s13326_s6 + $0x1dc8] sm:$0xff] }
 0x397   : > { %7834 = vmatpush1.bf16.msra.mxu0 %v7833_v8  ;;  %v7893_v8 = vpack.c.bf16 %v6485_v18, %v6481_v15  ;;  %v6528_v15 = vld [vmem:[%s13326_s6 + $0x1dd8] sm:$0xff]  ;;  %v7905_v18 = vpack.c.bf16 %v6517_v1, %v6513_v62 }
 0x398   : > { %7874 = vmatpush1.bf16.msra.mxu1 %v7873_v9  ;;  %7836 = vmatprep.subr.bf16.mxu0 %v7835_v12  ;;  %v6488_v9 = vld [vmem:[%s13326_s6 + $0x1cc8] sm:$0x1f]  ;;  %v6490_v12 = vld [vmem:[%s13326_s6 + $0x1cd8] sm:$0x1f] }
 0x399   : > { %7876 = vmatprep.subr.bf16.mxu1 %v7875_v20  ;;  %v6504_v20 = vld [vmem:[%s13326_s6 + $0x1d18] sm:$0xff] }
 0x39a   : > { %v7935_v35 = vpack.c.bf16 %v6504_v20, %v6500_v19  ;;  %v6530_v20 = vld [vmem:[%s13326_s6 + $0x1de8] sm:$0xff]  ;;  %v6560_v62 = vld [vmem:[%s13326_s6 + $0x1ed8] sm:$0xff] }
 0x39b   : > { %7838 = vmatpush1.bf16.msra.mxu0 %v7837_v27  ;;  %v6503_v27 = vld [vmem:[%s13326_s6 + $0x1d10] sm:$0xff] }
 0x39c   : > { %7878 = vmatpush1.bf16.msra.mxu1 %v7877_v29  ;;  %7840 = vmatprep.subr.bf16.mxu0 %v7839_v30  ;;  %v6489_v29 = vld [vmem:[%s13326_s6 + $0x1cd0] sm:$0x1f]  ;;  %v7895_v30 = vpack.c.bf16 %v6502_v14, %v6498_v13  ;;  %v6525_v13 = vld [vmem:[%s13326_s6 + $0x1dc0] sm:$0xff] }
 0x39d   : > { %7880 = vmatprep.subr.bf16.mxu1 %v7879_v63  ;;  %v6510_v63 = vld [vmem:[%s13326_s6 + $0x1d48] sm:$0xff]  ;;  %v6523_v14 = vld [vmem:[%s13326_s6 + $0x1db0] sm:$0xff] }
 0x39e   : > { %v7899_v47 = vpack.c.bf16 %v6510_v63, %v6506_v16  ;;  %v6535_v16 = vld [vmem:[%s13326_s6 + $0x1e10] sm:$0xff]  ;;  %v6538_v63 = vld [vmem:[%s13326_s6 + $0x1e28] sm:$0xff] }
 0x39f   : > { %7842 = vmatpush1.bf16.msra.mxu0 %v7841_v37  ;;  %v6508_v37 = vld [vmem:[%s13326_s6 + $0x1d38] sm:$0xff] }
 0x3a0   : > { %7882 = vmatpush1.bf16.msra.mxu1 %v7881_v38  ;;  %7844 = vmatprep.subr.bf16.mxu0 %v7843_v39  ;;  %v6512_v38 = vld [vmem:[%s13326_s6 + $0x1d58] sm:$0xff]  ;;  %v7937_v39 = vpack.c.bf16 %v6503_v27, %v6499_v25  ;;  %v7911_v27 = vpack.c.bf16 %v6534_v10, %v6530_v20  ;;  %v6563_v20 = vld [vmem:[%s13326_s6 + $0x1ef0] sm:$0xff] }
 0x3a1   : > { %7884 = vmatprep.subr.bf16.mxu1 %v7883_v45  ;;  %v6507_v45 = vld [vmem:[%s13326_s6 + $0x1d30] sm:$0xff] }
 0x3a2   : > { %v7941_v60 = vpack.c.bf16 %v6511_v49, %v6507_v45  ;;  %v6546_v45 = vld [vmem:[%s13326_s6 + $0x1e68] sm:$0xff]  ;;  %v6552_v49 = vld [vmem:[%s13326_s6 + $0x1e98] sm:$0xff] }
 0x3a3   : > { %7846 = vmatpush1.bf16.msra.mxu0 %v7845_v54  ;;  %v3898_v54 = vrot.slane %v10920_v41, 3 }
 0x3a4   : > { %7886 = vmatpush1.bf16.msra.mxu1 %v7885_v55  ;;  %7848 = vmatprep.subr.bf16.mxu0 %v7847_v56  ;;  %v7939_v56 = vpack.c.bf16 %v6512_v38, %v6508_v37  ;;  %v6537_v38 = vld [vmem:[%s13326_s6 + $0x1e20] sm:$0xff] }
 0x3a5   : > { %7888 = vmatprep.subr.bf16.mxu1 %v7887_v59 }
 0x3a7   : > { %7850 = vmatpush1.bf16.msra.mxu0 %v7849_v3  ;;  %v7943_v3 = vpack.c.bf16 %v6520_v26, %v6516_v57  ;;  %v6547_v57 = vld [vmem:[%s13326_s6 + $0x1e70] sm:$0xff] }
 0x3a8   : > { %7890 = vmatpush1.bf16.msra.mxu1 %v7889_v4  ;;  %7852 = vmatprep.subr.bf16.mxu0 %v7851_v5  ;;  %v6519_v4 = vld [vmem:[%s13326_s6 + $0x1d90] sm:$0xff]  ;;  %v6522_v5 = vld [vmem:[%s13326_s6 + $0x1da8] sm:$0xff] }
 0x3a9   : > { %7892 = vmatprep.subr.bf16.mxu1 %v7891_v7  ;;  %v6524_v7 = vld [vmem:[%s13326_s6 + $0x1db8] sm:$0xff] }
 0x3aa   : > { %v7947_v19 = vpack.c.bf16 %v6528_v15, %v6524_v7  ;;  %v6559_v7 = vld [vmem:[%s13326_s6 + $0x1ed0] sm:$0xff]  ;;  %v6562_v15 = vld [vmem:[%s13326_s6 + $0x1ee8] sm:$0xff] }
 0x3ab   : > { %7854 = vmatpush1.bf16.msra.mxu0 %v7853_v23 }
 0x3ac   : > { %7894 = vmatpush1.bf16.msra.mxu1 %v7893_v8  ;;  %6491 = vmatprep.subr.msk.mxu0 %vm887_vm3, %v6488_v9  ;;  %v2337_v17 = vpop.f32.mrb[28].mxu0  ;;  %v7945_v8 = vpack.c.bf16 %v6519_v4, %v6515_v2  ;;  %v7907_v9 = vpack.c.bf16 %v6526_v6, %v6522_v5  ;;  %v6553_v4 = vld [vmem:[%s13326_s6 + $0x1ea0] sm:$0xff]  ;;  %v6555_v6 = vld [vmem:[%s13326_s6 + $0x1eb0] sm:$0xff] }
 0x3ad   : > { %6494 = vmatprep.subr.msk.mxu1 %vm887_vm3, %v6490_v12  ;;  %v2408_v31 = vpop.f32.mrb[14].mxu1  ;;  %v2339_v32 = vpop.f32.mrb[29].mxu0  ;;  %v6521_v12 = vld [vmem:[%s13326_s6 + $0x1da0] sm:$0xff] }
 0x3ae   : > { %v2417_v28 = vcombine.low %v2337_v17, %v2339_v32  ;;  %v2410_v36 = vpop.f32.mrb[15].mxu1  ;;  %v7909_v17 = vpack.c.bf16 %v6525_v13, %v6521_v12  ;;  %v6557_v5 = vld [vmem:[%s13326_s6 + $0x1ec0] sm:$0xff]  ;;  %v7965_v13 = vpack.c.bf16 %v6559_v7, %v6555_v6 }
 0x3af   : > { %6492 = vmatpush1.msk.msra.mxu0 %vm887_vm3, %v6487_v24  ;;  %v2418_v40 = vcombine.low %v2408_v31, %v2410_v36  ;;  %v6536_v24 = vld [vmem:[%s13326_s6 + $0x1e18] sm:$0xff]  ;;  %v6531_v31 = vld [vmem:[%s13326_s6 + $0x1df0] sm:$0xff]  ;;  %v7925_v12 = vpack.c.bf16 %v6557_v5, %v6553_v4  ;;  %v6595_v5 = vld [vmem:[%s13326_s6 + $0x1fc0] sm:$0xff] }
 0x3b0   : > { %6495 = vmatpush1.msk.msra.mxu1 %vm887_vm3, %v6489_v29  ;;  %3705 = vmatmul.mubr.f32.vlgmr.msra.gmra.mrb[38].mxu0 %v3623_v33  ;;  %v2425_v46 = vrot.slane %v2417_v28, %v10317_v51  ;;  %v6529_v29 = vld [vmem:[%s13326_s6 + $0x1de0] sm:$0xff]  ;;  %v7951_v32 = vpack.c.bf16 %v6536_v24, %v6532_v21  ;;  %v7953_v36 = vpack.c.bf16 %v6535_v16, %v6531_v31  ;;  %v6567_v21 = vld [vmem:[%s13326_s6 + $0x1f10] sm:$0xff]  ;;  %v6570_v24 = vld [vmem:[%s13326_s6 + $0x1f28] sm:$0xff] }
 0x3b1   : > { %3776 = vmatmul.mubr.f32.vlgmr.msra.gmra.mrb[24].mxu1 %v3623_v33  ;;  %7896 = vmatprep.subr.bf16.mxu0 %v7895_v30  ;;  %v2432_v55 = vrot.slane %v2418_v40, %v10317_v51  ;;  %v6533_v30 = vld [vmem:[%s13326_s6 + $0x1e00] sm:$0xff]  ;;  %v6542_v33 = vld [vmem:[%s13326_s6 + $0x1e48] sm:$0xff]  ;;  %v6539_v40 = vld [vmem:[%s13326_s6 + $0x1e30] sm:$0xff] }
 0x3b2   : > { %7936 = vmatprep.subr.bf16.mxu1 %v7935_v35  ;;  %7898 = vmatpush1.bf16.msra.mxu0 %v7897_v11  ;;  %v6540_v35 = vld [vmem:[%s13326_s6 + $0x1e38] sm:$0xff]  ;;  %v7913_v28 = vpack.c.bf16 %v6533_v30, %v6529_v29  ;;  %v7915_v37 = vpack.c.bf16 %v6542_v33, %v6538_v63  ;;  %v7957_v53 = vpack.c.bf16 %v6543_v43, %v6539_v40  ;;  %v6573_v16 = vld [vmem:[%s13326_s6 + $0x1f40] sm:$0xff]  ;;  %v6571_v33 = vld [vmem:[%s13326_s6 + $0x1f30] sm:$0xff] }
 0x3b3   : > { %6583 = vmatprep.mubr.msk.f32.mxu0 %vm883_vm4, %v3898_v54  ;;  %7938 = vmatpush1.bf16.msra.mxu1 %v7937_v39  ;;  %v2433_v59 = vcombine.low %v2425_v46, %v2432_v55  ;;  %v6544_v11 = vld [vmem:[%s13326_s6 + $0x1e58] sm:$0xff]  ;;  %v6541_v39 = vld [vmem:[%s13326_s6 + $0x1e40] sm:$0xff]  ;;  %v6550_v46 = vld [vmem:[%s13326_s6 + $0x1e88] sm:$0xff]  ;;  %v7969_v30 = vpack.c.bf16 %v6567_v21, %v6563_v20 }
 0x3b4   : > { %6586 = vmatprep.mubr.msk.f32.mxu1 %vm883_vm4, %v3898_v54  ;;  %7900 = vmatprep.subr.bf16.mxu0 %v7899_v47  ;;  %v7955_v42 = vpack.c.bf16 %v6544_v11, %v6540_v35  ;;  %v6548_v47 = vld [vmem:[%s13326_s6 + $0x1e78] sm:$0xff]  ;;  %v7917_v52 = vpack.c.bf16 %v6541_v39, %v6537_v38  ;;  %v7919_v54 = vpack.c.bf16 %v6550_v46, %v6546_v45  ;;  %v6545_v55 = vld [vmem:[%s13326_s6 + $0x1e60] sm:$0xff]  ;;  %v6575_v35 = vld [vmem:[%s13326_s6 + $0x1f50] sm:$0xff] }
 0x3b5   : > { %v2440_v34 = vrot.slane %v2433_v59, %v10317_v51  ;;  %7940 = vmatprep.subr.bf16.mxu1 %v7939_v56  ;;  %v6549_v56 = vld [vmem:[%s13326_s6 + $0x1e80] sm:$0xff]  ;;  %v7959_v26 = vpack.c.bf16 %v6552_v49, %v6548_v47  ;;  %v6554_v59 = vld [vmem:[%s13326_s6 + $0x1ea8] sm:$0xff]  ;;  %v6590_v40 = vld [vmem:[%s13326_s6 + $0x1f98] sm:$0xff] }
 0x3b6   : > { %7902 = vmatpush1.bf16.msra.mxu0 %v7901_v58  ;;  %v6551_v58 = vld [vmem:[%s13326_s6 + $0x1e90] sm:$0xff]  ;;  %v7921_v1 = vpack.c.bf16 %v6549_v56, %v6545_v55  ;;  %v6588_v38 = vld [vmem:[%s13326_s6 + $0x1f88] sm:$0xff]  ;;  %v6587_v43 = vld [vmem:[%s13326_s6 + $0x1f80] sm:$0xff] }
 0x3b7   : > { %v11762_v23 = vadd.f32 %v2440_v34, %v11496_v50  ;;  %7942 = vmatpush1.bf16.msra.mxu1 %v7941_v60  ;;  %7904 = vmatprep.subr.bf16.mxu0 %v7903_v61  ;;  %v6527_v50 = vld [vmem:[%s13326_s6 + $0x1dd0] sm:$0xff]  ;;  %v6558_v60 = vld [vmem:[%s13326_s6 + $0x1ec8] sm:$0xff]  ;;  %v6556_v61 = vld [vmem:[%s13326_s6 + $0x1eb8] sm:$0xff]  ;;  %v7961_v2 = vpack.c.bf16 %v6551_v58, %v6547_v57  ;;  %v3897_v58 = vrot.slane %v11163_v48, 3 }
 0x3b8   : > { %7944 = vmatprep.subr.bf16.mxu1 %v7943_v3  ;;  %v7949_v25 = vpack.c.bf16 %v6527_v50, %v6523_v14  ;;  %v7923_v3 = vpack.c.bf16 %v6558_v60, %v6554_v59  ;;  %v7963_v34 = vpack.c.bf16 %v6560_v62, %v6556_v61  ;;  %v6565_v50 = vld [vmem:[%s13326_s6 + $0x1f00] sm:$0xff]  ;;  %v6592_v39 = vld [vmem:[%s13326_s6 + $0x1fa8] sm:$0xff]  ;;  %v6589_v49 = vld [vmem:[%s13326_s6 + $0x1f90] sm:$0xff] }
 0x3b9   : > { %v6591_v45 = vld [vmem:[%s13326_s6 + $0x1fa0] sm:$0xff]  ;;  %v6596_v57 = vld [vmem:[%s13326_s6 + $0x1fc8] sm:$0xff] }
 0x3ba   : > { %7906 = vmatpush1.bf16.msra.mxu0 %v7905_v18  ;;  %v6566_v18 = vld [vmem:[%s13326_s6 + $0x1f08] sm:$0xff]  ;;  %v6577_v46 = vld [vmem:[%s13326_s6 + $0x1f60] sm:$0x1f]  ;;  %v7977_v60 = vpack.c.bf16 %v6591_v45, %v6587_v43  ;;  %v6622_v45 = vld [vmem:[%s13326_s6 + $0x2098] sm:$0xff] }
 0x3bb   : > { %7946 = vmatpush1.bf16.msra.mxu1 %v7945_v8  ;;  %7908 = vmatprep.subr.bf16.mxu0 %v7907_v9  ;;  %v6564_v8 = vld [vmem:[%s13326_s6 + $0x1ef8] sm:$0xff]  ;;  %v7927_v14 = vpack.c.bf16 %v6566_v18, %v6562_v15  ;;  %v6599_v6 = vld [vmem:[%s13326_s6 + $0x1fe0] sm:$0xff]  ;;  %v6601_v18 = vld [vmem:[%s13326_s6 + $0x1ff0] sm:$0xff] }
 0x3bc   : > { %7948 = vmatprep.subr.bf16.mxu1 %v7947_v19  ;;  %v6568_v9 = vld [vmem:[%s13326_s6 + $0x1f18] sm:$0xff]  ;;  %v6561_v19 = vld [vmem:[%s13326_s6 + $0x1ee0] sm:$0xff]  ;;  %v7981_v20 = vpack.c.bf16 %v6599_v6, %v6595_v5  ;;  %v6624_v43 = vld [vmem:[%s13326_s6 + $0x20a8] sm:$0xff] }
 0x3bd   : > { %v7967_v10 = vpack.c.bf16 %v6568_v9, %v6564_v8  ;;  %v7929_v29 = vpack.c.bf16 %v6565_v50, %v6561_v19  ;;  %v6604_v8 = vld [vmem:[%s13326_s6 + $0x2008] sm:$0xff]  ;;  %v6606_v19 = vld [vmem:[%s13326_s6 + $0x2018] sm:$0xff]  ;;  %v6633_v6 = vld [vmem:[%s13326_s6 + $0x20f0] sm:$0xff] }
 0x3be   : > { %7910 = vmatpush1.bf16.msra.mxu0 %v7909_v17  ;;  %v6574_v17 = vld [vmem:[%s13326_s6 + $0x1f48] sm:$0xff]  ;;  %v6610_v50 = vld [vmem:[%s13326_s6 + $0x2038] sm:$0xff] }
 0x3bf   : > { %7950 = vmatpush1.bf16.msra.mxu1 %v7949_v25  ;;  %7912 = vmatprep.subr.bf16.mxu0 %v7911_v27  ;;  %v6572_v25 = vld [vmem:[%s13326_s6 + $0x1f38] sm:$0xff]  ;;  %v7931_v31 = vpack.c.bf16 %v6574_v17, %v6570_v24  ;;  %v6608_v9 = vld [vmem:[%s13326_s6 + $0x2028] sm:$0xff]  ;;  %v6603_v17 = vld [vmem:[%s13326_s6 + $0x2000] sm:$0xff] }
 0x3c0   : > { %7952 = vmatprep.subr.bf16.mxu1 %v7951_v32  ;;  %v6576_v27 = vld [vmem:[%s13326_s6 + $0x1f58] sm:$0xff]  ;;  %v6569_v32 = vld [vmem:[%s13326_s6 + $0x1f20] sm:$0xff]  ;;  %v7983_v24 = vpack.c.bf16 %v6608_v9, %v6604_v8 }
 0x3c1   : > { %v7971_v63 = vpack.c.bf16 %v6576_v27, %v6572_v25  ;;  %v7933_v11 = vpack.c.bf16 %v6573_v16, %v6569_v32  ;;  %v6607_v25 = vld [vmem:[%s13326_s6 + $0x2020] sm:$0xff]  ;;  %v6605_v27 = vld [vmem:[%s13326_s6 + $0x2010] sm:$0xff]  ;;  %v6616_v32 = vld [vmem:[%s13326_s6 + $0x2068] sm:$0xff] }
 0x3c2   : > { %7914 = vmatpush1.bf16.msra.mxu0 %v7913_v28  ;;  %v7973_v28 = vpack.c.bf16 %v6575_v35, %v6571_v33  ;;  %v6618_v33 = vld [vmem:[%s13326_s6 + $0x2078] sm:$0xff]  ;;  %v7985_v35 = vpack.c.bf16 %v6607_v25, %v6603_v17 }
 0x3c3   : > { %7954 = vmatpush1.bf16.msra.mxu1 %v7953_v36  ;;  %7916 = vmatprep.subr.bf16.mxu0 %v7915_v37  ;;  %v6578_v36 = vld [vmem:[%s13326_s6 + $0x1f68] sm:$0x1f]  ;;  %v6580_v37 = vld [vmem:[%s13326_s6 + $0x1f78] sm:$0x1f] }
 0x3c4   : > { %7956 = vmatprep.subr.bf16.mxu1 %v7955_v42  ;;  %v6594_v42 = vld [vmem:[%s13326_s6 + $0x1fb8] sm:$0xff] }
 0x3c5   : > { %v8015_v59 = vpack.c.bf16 %v6594_v42, %v6590_v40  ;;  %v6620_v42 = vld [vmem:[%s13326_s6 + $0x2088] sm:$0xff]  ;;  %v6650_v17 = vld [vmem:[%s13326_s6 + $0x2178] sm:$0xff] }
 0x3c6   : > { %7918 = vmatpush1.bf16.msra.mxu0 %v7917_v52  ;;  %v6593_v52 = vld [vmem:[%s13326_s6 + $0x1fb0] sm:$0xff] }
 0x3c7   : > { %7958 = vmatpush1.bf16.msra.mxu1 %v7957_v53  ;;  %7920 = vmatprep.subr.bf16.mxu0 %v7919_v54  ;;  %v6579_v53 = vld [vmem:[%s13326_s6 + $0x1f70] sm:$0x1f]  ;;  %v7975_v54 = vpack.c.bf16 %v6592_v39, %v6588_v38  ;;  %v6615_v38 = vld [vmem:[%s13326_s6 + $0x2060] sm:$0xff] }
 0x3c8   : > { %7960 = vmatprep.subr.bf16.mxu1 %v7959_v26  ;;  %v6600_v26 = vld [vmem:[%s13326_s6 + $0x1fe8] sm:$0xff]  ;;  %v6613_v39 = vld [vmem:[%s13326_s6 + $0x2050] sm:$0xff] }
 0x3c9   : > { %v7979_v15 = vpack.c.bf16 %v6600_v26, %v6596_v57  ;;  %v6625_v57 = vld [vmem:[%s13326_s6 + $0x20b0] sm:$0xff]  ;;  %v6628_v26 = vld [vmem:[%s13326_s6 + $0x20c8] sm:$0xff] }
 0x3ca   : > { %7922 = vmatpush1.bf16.msra.mxu0 %v7921_v1  ;;  %v6598_v1 = vld [vmem:[%s13326_s6 + $0x1fd8] sm:$0xff] }
 0x3cb   : > { %7962 = vmatpush1.bf16.msra.mxu1 %v7961_v2  ;;  %7924 = vmatprep.subr.bf16.mxu0 %v7923_v3  ;;  %v6602_v2 = vld [vmem:[%s13326_s6 + $0x1ff8] sm:$0xff]  ;;  %v8017_v3 = vpack.c.bf16 %v6593_v52, %v6589_v49  ;;  %v7991_v52 = vpack.c.bf16 %v6624_v43, %v6620_v42  ;;  %v6653_v42 = vld [vmem:[%s13326_s6 + $0x2190] sm:$0xff] }
 0x3cc   : > { %7964 = vmatprep.subr.bf16.mxu1 %v7963_v34  ;;  %v6597_v34 = vld [vmem:[%s13326_s6 + $0x1fd0] sm:$0xff] }
 0x3cd   : > { %v8021_v21 = vpack.c.bf16 %v6601_v18, %v6597_v34  ;;  %v6636_v34 = vld [vmem:[%s13326_s6 + $0x2108] sm:$0xff]  ;;  %v6642_v18 = vld [vmem:[%s13326_s6 + $0x2138] sm:$0xff] }
 0x3ce   : > { %7926 = vmatpush1.bf16.msra.mxu0 %v7925_v12  ;;  %v4172_v12 = vrot.slane %v10920_v41, 4 }
 0x3cf   : > { %7966 = vmatpush1.bf16.msra.mxu1 %v7965_v13  ;;  %7928 = vmatprep.subr.bf16.mxu0 %v7927_v14  ;;  %v8019_v14 = vpack.c.bf16 %v6602_v2, %v6598_v1  ;;  %v6627_v2 = vld [vmem:[%s13326_s6 + $0x20c0] sm:$0xff] }
 0x3d0   : > { %7968 = vmatprep.subr.bf16.mxu1 %v7967_v10 }
 0x3d2   : > { %7930 = vmatpush1.bf16.msra.mxu0 %v7929_v29  ;;  %v8023_v29 = vpack.c.bf16 %v6610_v50, %v6606_v19  ;;  %v6637_v19 = vld [vmem:[%s13326_s6 + $0x2110] sm:$0xff] }
 0x3d3   : > { %7970 = vmatpush1.bf16.msra.mxu1 %v7969_v30  ;;  %7932 = vmatprep.subr.bf16.mxu0 %v7931_v31  ;;  %v6609_v30 = vld [vmem:[%s13326_s6 + $0x2030] sm:$0xff]  ;;  %v6612_v31 = vld [vmem:[%s13326_s6 + $0x2048] sm:$0xff] }
 0x3d4   : > { %7972 = vmatprep.subr.bf16.mxu1 %v7971_v63  ;;  %v6614_v63 = vld [vmem:[%s13326_s6 + $0x2058] sm:$0xff] }
 0x3d5   : > { %v8027_v40 = vpack.c.bf16 %v6618_v33, %v6614_v63  ;;  %v6649_v63 = vld [vmem:[%s13326_s6 + $0x2170] sm:$0xff]  ;;  %v6652_v33 = vld [vmem:[%s13326_s6 + $0x2188] sm:$0xff] }
 0x3d6   : > { %7934 = vmatpush1.bf16.msra.mxu0 %v7933_v11 }
 0x3d7   : > { %7974 = vmatpush1.bf16.msra.mxu1 %v7973_v28  ;;  %6581 = vmatprep.subr.msk.mxu0 %vm887_vm3, %v6578_v36  ;;  %v2611_v47 = vpop.f32.mrb[30].mxu0  ;;  %v8025_v28 = vpack.c.bf16 %v6609_v30, %v6605_v27  ;;  %v7987_v36 = vpack.c.bf16 %v6616_v32, %v6612_v31  ;;  %v6643_v30 = vld [vmem:[%s13326_s6 + $0x2140] sm:$0xff]  ;;  %v6645_v32 = vld [vmem:[%s13326_s6 + $0x2150] sm:$0xff] }
 0x3d8   : > { %6584 = vmatprep.subr.msk.mxu1 %vm887_vm3, %v6580_v37  ;;  %v2682_v55 = vpop.f32.mrb[16].mxu1  ;;  %v2613_v56 = vpop.f32.mrb[31].mxu0  ;;  %v6611_v37 = vld [vmem:[%s13326_s6 + $0x2040] sm:$0xff] }
 0x3d9   : > { %v2691_v61 = vcombine.low %v2611_v47, %v2613_v56  ;;  %v2684_v62 = vpop.f32.mrb[17].mxu1  ;;  %v7989_v47 = vpack.c.bf16 %v6615_v38, %v6611_v37  ;;  %v6647_v31 = vld [vmem:[%s13326_s6 + $0x2160] sm:$0xff]  ;;  %v8045_v38 = vpack.c.bf16 %v6649_v63, %v6645_v32 }
 0x3da   : > { %6582 = vmatpush1.msk.msra.mxu0 %vm887_vm3, %v6577_v46  ;;  %v2692_v4 = vcombine.low %v2682_v55, %v2684_v62  ;;  %v6626_v46 = vld [vmem:[%s13326_s6 + $0x20b8] sm:$0xff]  ;;  %v6621_v55 = vld [vmem:[%s13326_s6 + $0x2090] sm:$0xff]  ;;  %v8005_v37 = vpack.c.bf16 %v6647_v31, %v6643_v30  ;;  %v6685_v31 = vld [vmem:[%s13326_s6 + $0x2260] sm:$0xff] }
 0x3db   : > { %6585 = vmatpush1.msk.msra.mxu1 %vm887_vm3, %v6579_v53  ;;  %3979 = vmatmul.mubr.f32.vlgmr.msra.gmra.mrb[40].mxu0 %v3897_v58  ;;  %v2699_v7 = vrot.slane %v2691_v61, %v10317_v51  ;;  %v6619_v53 = vld [vmem:[%s13326_s6 + $0x2080] sm:$0xff]  ;;  %v8031_v56 = vpack.c.bf16 %v6626_v46, %v6622_v45  ;;  %v8033_v62 = vpack.c.bf16 %v6625_v57, %v6621_v55  ;;  %v6657_v45 = vld [vmem:[%s13326_s6 + $0x21b0] sm:$0xff]  ;;  %v6660_v46 = vld [vmem:[%s13326_s6 + $0x21c8] sm:$0xff] }
 0x3dc   : > { %4050 = vmatmul.mubr.f32.vlgmr.msra.gmra.mrb[26].mxu1 %v3897_v58  ;;  %7976 = vmatprep.subr.bf16.mxu0 %v7975_v54  ;;  %v2706_v13 = vrot.slane %v2692_v4, %v10317_v51  ;;  %v6623_v54 = vld [vmem:[%s13326_s6 + $0x20a0] sm:$0xff]  ;;  %v6632_v58 = vld [vmem:[%s13326_s6 + $0x20e8] sm:$0xff]  ;;  %v6629_v4 = vld [vmem:[%s13326_s6 + $0x20d0] sm:$0xff] }
 0x3dd   : > { %8016 = vmatprep.subr.bf16.mxu1 %v8015_v59  ;;  %7978 = vmatpush1.bf16.msra.mxu0 %v7977_v60  ;;  %v6630_v59 = vld [vmem:[%s13326_s6 + $0x20d8] sm:$0xff]  ;;  %v7993_v61 = vpack.c.bf16 %v6623_v54, %v6619_v53  ;;  %v7995_v1 = vpack.c.bf16 %v6632_v58, %v6628_v26  ;;  %v8037_v9 = vpack.c.bf16 %v6633_v6, %v6629_v4  ;;  %v6663_v57 = vld [vmem:[%s13326_s6 + $0x21e0] sm:$0xff]  ;;  %v6661_v58 = vld [vmem:[%s13326_s6 + $0x21d0] sm:$0xff] }
 0x3de   : > { %6673 = vmatprep.mubr.msk.f32.mxu0 %vm883_vm4, %v4172_v12  ;;  %8018 = vmatpush1.bf16.msra.mxu1 %v8017_v3  ;;  %v2707_v10 = vcombine.low %v2699_v7, %v2706_v13  ;;  %v6634_v60 = vld [vmem:[%s13326_s6 + $0x20f8] sm:$0xff]  ;;  %v6631_v3 = vld [vmem:[%s13326_s6 + $0x20e0] sm:$0xff]  ;;  %v6640_v7 = vld [vmem:[%s13326_s6 + $0x2128] sm:$0xff]  ;;  %v8049_v54 = vpack.c.bf16 %v6657_v45, %v6653_v42 }
 0x3df   : > { %6676 = vmatprep.mubr.msk.f32.mxu1 %vm883_vm4, %v4172_v12  ;;  %7980 = vmatprep.subr.bf16.mxu0 %v7979_v15  ;;  %v8035_v5 = vpack.c.bf16 %v6634_v60, %v6630_v59  ;;  %v6638_v15 = vld [vmem:[%s13326_s6 + $0x2118] sm:$0xff]  ;;  %v7997_v8 = vpack.c.bf16 %v6631_v3, %v6627_v2  ;;  %v7999_v12 = vpack.c.bf16 %v6640_v7, %v6636_v34  ;;  %v6635_v13 = vld [vmem:[%s13326_s6 + $0x2100] sm:$0xff]  ;;  %v6665_v59 = vld [vmem:[%s13326_s6 + $0x21f0] sm:$0xff] }
 0x3e0   : > { %v2714_v16 = vrot.slane %v2707_v10, %v10317_v51  ;;  %8020 = vmatprep.subr.bf16.mxu1 %v8019_v14  ;;  %v6639_v14 = vld [vmem:[%s13326_s6 + $0x2120] sm:$0xff]  ;;  %v8039_v50 = vpack.c.bf16 %v6642_v18, %v6638_v15  ;;  %v6644_v10 = vld [vmem:[%s13326_s6 + $0x2148] sm:$0xff]  ;;  %v6680_v4 = vld [vmem:[%s13326_s6 + $0x2238] sm:$0xff] }
 0x3e1   : > { %7982 = vmatpush1.bf16.msra.mxu0 %v7981_v20  ;;  %v6641_v20 = vld [vmem:[%s13326_s6 + $0x2130] sm:$0xff]  ;;  %v8001_v25 = vpack.c.bf16 %v6639_v14, %v6635_v13  ;;  %v6678_v2 = vld [vmem:[%s13326_s6 + $0x2228] sm:$0xff]  ;;  %v6677_v6 = vld [vmem:[%s13326_s6 + $0x2220] sm:$0xff] }
 0x3e2   : > { %v12028_v11 = vadd.f32 %v2714_v16, %v11762_v23  ;;  %8022 = vmatpush1.bf16.msra.mxu1 %v8021_v21  ;;  %7984 = vmatprep.subr.bf16.mxu0 %v7983_v24  ;;  %v6617_v23 = vld [vmem:[%s13326_s6 + $0x2070] sm:$0xff]  ;;  %v6648_v21 = vld [vmem:[%s13326_s6 + $0x2168] sm:$0xff]  ;;  %v6646_v24 = vld [vmem:[%s13326_s6 + $0x2158] sm:$0xff]  ;;  %v8041_v27 = vpack.c.bf16 %v6641_v20, %v6637_v19  ;;  %v4171_v20 = vrot.slane %v11163_v48, 4 }
 0x3e3   : > { %8024 = vmatprep.subr.bf16.mxu1 %v8023_v29  ;;  %v8029_v49 = vpack.c.bf16 %v6617_v23, %v6613_v39  ;;  %v8003_v29 = vpack.c.bf16 %v6648_v21, %v6644_v10  ;;  %v8043_v16 = vpack.c.bf16 %v6650_v17, %v6646_v24  ;;  %v6655_v23 = vld [vmem:[%s13326_s6 + $0x21a0] sm:$0xff]  ;;  %v6682_v3 = vld [vmem:[%s13326_s6 + $0x2248] sm:$0xff]  ;;  %v6679_v18 = vld [vmem:[%s13326_s6 + $0x2230] sm:$0xff] }
 0x3e4   : > { %v6681_v34 = vld [vmem:[%s13326_s6 + $0x2240] sm:$0xff]  ;;  %v6686_v19 = vld [vmem:[%s13326_s6 + $0x2268] sm:$0xff] }
 0x3e5   : > { %7986 = vmatpush1.bf16.msra.mxu0 %v7985_v35  ;;  %v6656_v35 = vld [vmem:[%s13326_s6 + $0x21a8] sm:$0xff]  ;;  %v6667_v7 = vld [vmem:[%s13326_s6 + $0x2200] sm:$0x1f]  ;;  %v8057_v21 = vpack.c.bf16 %v6681_v34, %v6677_v6  ;;  %v6712_v34 = vld [vmem:[%s13326_s6 + $0x2338] sm:$0xff] }
 0x3e6   : > { %8026 = vmatpush1.bf16.msra.mxu1 %v8025_v28  ;;  %7988 = vmatprep.subr.bf16.mxu0 %v7987_v36  ;;  %v6654_v28 = vld [vmem:[%s13326_s6 + $0x2198] sm:$0xff]  ;;  %v8007_v39 = vpack.c.bf16 %v6656_v35, %v6652_v33  ;;  %v6689_v32 = vld [vmem:[%s13326_s6 + $0x2280] sm:$0xff]  ;;  %v6691_v35 = vld [vmem:[%s13326_s6 + $0x2290] sm:$0xff] }
 0x3e7   : > { %8028 = vmatprep.subr.bf16.mxu1 %v8027_v40  ;;  %v6658_v36 = vld [vmem:[%s13326_s6 + $0x21b8] sm:$0xff]  ;;  %v6651_v40 = vld [vmem:[%s13326_s6 + $0x2180] sm:$0xff]  ;;  %v8061_v42 = vpack.c.bf16 %v6689_v32, %v6685_v31  ;;  %v6714_v6 = vld [vmem:[%s13326_s6 + $0x2348] sm:$0xff] }
 0x3e8   : > { %v8047_v43 = vpack.c.bf16 %v6658_v36, %v6654_v28  ;;  %v8009_v53 = vpack.c.bf16 %v6655_v23, %v6651_v40  ;;  %v6694_v28 = vld [vmem:[%s13326_s6 + $0x22a8] sm:$0xff]  ;;  %v6696_v40 = vld [vmem:[%s13326_s6 + $0x22b8] sm:$0xff]  ;;  %v6723_v32 = vld [vmem:[%s13326_s6 + $0x2390] sm:$0xff] }
 0x3e9   : > { %7990 = vmatpush1.bf16.msra.mxu0 %v7989_v47  ;;  %v6664_v47 = vld [vmem:[%s13326_s6 + $0x21e8] sm:$0xff]  ;;  %v6700_v23 = vld [vmem:[%s13326_s6 + $0x22d8] sm:$0xff] }
 0x3ea   : > { %8030 = vmatpush1.bf16.msra.mxu1 %v8029_v49  ;;  %7992 = vmatprep.subr.bf16.mxu0 %v7991_v52  ;;  %v6662_v49 = vld [vmem:[%s13326_s6 + $0x21d8] sm:$0xff]  ;;  %v8011_v55 = vpack.c.bf16 %v6664_v47, %v6660_v46  ;;  %v6698_v36 = vld [vmem:[%s13326_s6 + $0x22c8] sm:$0xff]  ;;  %v6693_v47 = vld [vmem:[%s13326_s6 + $0x22a0] sm:$0xff] }
 0x3eb   : > { %8032 = vmatprep.subr.bf16.mxu1 %v8031_v56  ;;  %v6666_v52 = vld [vmem:[%s13326_s6 + $0x21f8] sm:$0xff]  ;;  %v6659_v56 = vld [vmem:[%s13326_s6 + $0x21c0] sm:$0xff]  ;;  %v8063_v46 = vpack.c.bf16 %v6698_v36, %v6694_v28 }
 0x3ec   : > { %v8051_v26 = vpack.c.bf16 %v6666_v52, %v6662_v49  ;;  %v8013_v60 = vpack.c.bf16 %v6663_v57, %v6659_v56  ;;  %v6697_v49 = vld [vmem:[%s13326_s6 + $0x22c0] sm:$0xff]  ;;  %v6695_v52 = vld [vmem:[%s13326_s6 + $0x22b0] sm:$0xff]  ;;  %v6706_v56 = vld [vmem:[%s13326_s6 + $0x2308] sm:$0xff] }
 0x3ed   : > { %7994 = vmatpush1.bf16.msra.mxu0 %v7993_v61  ;;  %v8053_v61 = vpack.c.bf16 %v6665_v59, %v6661_v58  ;;  %v6708_v58 = vld [vmem:[%s13326_s6 + $0x2318] sm:$0xff]  ;;  %v8065_v59 = vpack.c.bf16 %v6697_v49, %v6693_v47 }
 0x3ee   : > { %8034 = vmatpush1.bf16.msra.mxu1 %v8033_v62  ;;  %7996 = vmatprep.subr.bf16.mxu0 %v7995_v1  ;;  %v6668_v62 = vld [vmem:[%s13326_s6 + $0x2208] sm:$0x1f]  ;;  %v6670_v1 = vld [vmem:[%s13326_s6 + $0x2218] sm:$0x1f] }
 0x3ef   : > { %8036 = vmatprep.subr.bf16.mxu1 %v8035_v5  ;;  %v6684_v5 = vld [vmem:[%s13326_s6 + $0x2258] sm:$0xff] }
 0x3f0   : > { %v8095_v10 = vpack.c.bf16 %v6684_v5, %v6680_v4  ;;  %v6710_v5 = vld [vmem:[%s13326_s6 + $0x2328] sm:$0xff]  ;;  %v6740_v47 = vld [vmem:[%s13326_s6 + $0x2418] sm:$0xff] }
 0x3f1   : > { %7998 = vmatpush1.bf16.msra.mxu0 %v7997_v8  ;;  %v6683_v8 = vld [vmem:[%s13326_s6 + $0x2250] sm:$0xff] }
 0x3f2   : > { %8038 = vmatpush1.bf16.msra.mxu1 %v8037_v9  ;;  %8000 = vmatprep.subr.bf16.mxu0 %v7999_v12  ;;  %v6669_v9 = vld [vmem:[%s13326_s6 + $0x2210] sm:$0x1f]  ;;  %v8055_v12 = vpack.c.bf16 %v6682_v3, %v6678_v2  ;;  %v6705_v2 = vld [vmem:[%s13326_s6 + $0x2300] sm:$0xff] }
 0x3f3   : > { %8040 = vmatprep.subr.bf16.mxu1 %v8039_v50  ;;  %v6690_v50 = vld [vmem:[%s13326_s6 + $0x2288] sm:$0xff]  ;;  %v6703_v3 = vld [vmem:[%s13326_s6 + $0x22f0] sm:$0xff] }
 0x3f4   : > { %v8059_v33 = vpack.c.bf16 %v6690_v50, %v6686_v19  ;;  %v6715_v19 = vld [vmem:[%s13326_s6 + $0x2350] sm:$0xff]  ;;  %v6718_v50 = vld [vmem:[%s13326_s6 + $0x2368] sm:$0xff] }
 0x3f5   : > { %8002 = vmatpush1.bf16.msra.mxu0 %v8001_v25  ;;  %v6688_v25 = vld [vmem:[%s13326_s6 + $0x2278] sm:$0xff] }
 0x3f6   : > { %8042 = vmatpush1.bf16.msra.mxu1 %v8041_v27  ;;  %8004 = vmatprep.subr.bf16.mxu0 %v8003_v29  ;;  %v6692_v27 = vld [vmem:[%s13326_s6 + $0x2298] sm:$0xff]  ;;  %v8097_v29 = vpack.c.bf16 %v6683_v8, %v6679_v18  ;;  %v8071_v8 = vpack.c.bf16 %v6714_v6, %v6710_v5  ;;  %v6743_v5 = vld [vmem:[%s13326_s6 + $0x2430] sm:$0xff] }
 0x3f7   : > { %8044 = vmatprep.subr.bf16.mxu1 %v8043_v16  ;;  %v6687_v16 = vld [vmem:[%s13326_s6 + $0x2270] sm:$0xff] }
 0x3f8   : > { %v8101_v45 = vpack.c.bf16 %v6691_v35, %v6687_v16  ;;  %v6726_v16 = vld [vmem:[%s13326_s6 + $0x23a8] sm:$0xff]  ;;  %v6732_v35 = vld [vmem:[%s13326_s6 + $0x23d8] sm:$0xff] }
 0x3f9   : > { %8006 = vmatpush1.bf16.msra.mxu0 %v8005_v37  ;;  %v4446_v37 = vrot.slane %v10920_v41, 5 }
 0x3fa   : > { %8046 = vmatpush1.bf16.msra.mxu1 %v8045_v38  ;;  %8008 = vmatprep.subr.bf16.mxu0 %v8007_v39  ;;  %v8099_v39 = vpack.c.bf16 %v6692_v27, %v6688_v25  ;;  %v6717_v27 = vld [vmem:[%s13326_s6 + $0x2360] sm:$0xff] }
 0x3fb   : > { %8048 = vmatprep.subr.bf16.mxu1 %v8047_v43 }
 0x3fd   : > { %8010 = vmatpush1.bf16.msra.mxu0 %v8009_v53  ;;  %v8103_v53 = vpack.c.bf16 %v6700_v23, %v6696_v40  ;;  %v6727_v40 = vld [vmem:[%s13326_s6 + $0x23b0] sm:$0xff] }
 0x3fe   : > { %8050 = vmatpush1.bf16.msra.mxu1 %v8049_v54  ;;  %8012 = vmatprep.subr.bf16.mxu0 %v8011_v55  ;;  %v6699_v54 = vld [vmem:[%s13326_s6 + $0x22d0] sm:$0xff]  ;;  %v6702_v55 = vld [vmem:[%s13326_s6 + $0x22e8] sm:$0xff] }
 0x3ff   : > { %8052 = vmatprep.subr.bf16.mxu1 %v8051_v26  ;;  %v6704_v26 = vld [vmem:[%s13326_s6 + $0x22f8] sm:$0xff] }
 0x400   : > { %v8107_v4 = vpack.c.bf16 %v6708_v58, %v6704_v26  ;;  %v6739_v26 = vld [vmem:[%s13326_s6 + $0x2410] sm:$0xff]  ;;  %v6742_v58 = vld [vmem:[%s13326_s6 + $0x2428] sm:$0xff] }
 0x401   : > { %8014 = vmatpush1.bf16.msra.mxu0 %v8013_v60 }
 0x402   : > { %8054 = vmatpush1.bf16.msra.mxu1 %v8053_v61  ;;  %6671 = vmatprep.subr.msk.mxu0 %vm887_vm3, %v6668_v62  ;;  %v2885_v15 = vpop.f32.mrb[32].mxu0  ;;  %v8105_v61 = vpack.c.bf16 %v6699_v54, %v6695_v52  ;;  %v8067_v62 = vpack.c.bf16 %v6706_v56, %v6702_v55  ;;  %v6733_v54 = vld [vmem:[%s13326_s6 + $0x23e0] sm:$0xff]  ;;  %v6735_v56 = vld [vmem:[%s13326_s6 + $0x23f0] sm:$0xff] }
 0x403   : > { %6674 = vmatprep.subr.msk.mxu1 %vm887_vm3, %v6670_v1  ;;  %v2956_v13 = vpop.f32.mrb[18].mxu1  ;;  %v2887_v14 = vpop.f32.mrb[33].mxu0  ;;  %v6701_v1 = vld [vmem:[%s13326_s6 + $0x22e0] sm:$0xff] }
 0x404   : > { %v2965_v24 = vcombine.low %v2885_v15, %v2887_v14  ;;  %v2958_v17 = vpop.f32.mrb[19].mxu1  ;;  %v8069_v15 = vpack.c.bf16 %v6705_v2, %v6701_v1  ;;  %v6737_v55 = vld [vmem:[%s13326_s6 + $0x2400] sm:$0xff]  ;;  %v8125_v2 = vpack.c.bf16 %v6739_v26, %v6735_v56 }
 0x405   : > { %6672 = vmatpush1.msk.msra.mxu0 %vm887_vm3, %v6667_v7  ;;  %v2966_v30 = vcombine.low %v2956_v13, %v2958_v17  ;;  %v6716_v7 = vld [vmem:[%s13326_s6 + $0x2358] sm:$0xff]  ;;  %v6711_v13 = vld [vmem:[%s13326_s6 + $0x2330] sm:$0xff]  ;;  %v8085_v1 = vpack.c.bf16 %v6737_v55, %v6733_v54  ;;  %v6775_v55 = vld [vmem:[%s13326_s6 + $0x2500] sm:$0xff] }
 0x406   : > { %6675 = vmatpush1.msk.msra.mxu1 %vm887_vm3, %v6669_v9  ;;  %4253 = vmatmul.mubr.f32.vlgmr.msra.gmra.mrb[42].mxu0 %v4171_v20  ;;  %v2973_v63 = vrot.slane %v2965_v24, %v10317_v51  ;;  %v6709_v9 = vld [vmem:[%s13326_s6 + $0x2320] sm:$0xff]  ;;  %v8111_v14 = vpack.c.bf16 %v6716_v7, %v6712_v34  ;;  %v8113_v17 = vpack.c.bf16 %v6715_v19, %v6711_v13  ;;  %v6747_v34 = vld [vmem:[%s13326_s6 + $0x2450] sm:$0xff]  ;;  %v6750_v7 = vld [vmem:[%s13326_s6 + $0x2468] sm:$0xff] }
 0x407   : > { %4324 = vmatmul.mubr.f32.vlgmr.msra.gmra.mrb[28].mxu1 %v4171_v20  ;;  %8056 = vmatprep.subr.bf16.mxu0 %v8055_v12  ;;  %v2980_v38 = vrot.slane %v2966_v30, %v10317_v51  ;;  %v6713_v12 = vld [vmem:[%s13326_s6 + $0x2340] sm:$0xff]  ;;  %v6722_v20 = vld [vmem:[%s13326_s6 + $0x2388] sm:$0xff]  ;;  %v6719_v30 = vld [vmem:[%s13326_s6 + $0x2370] sm:$0xff] }
 0x408   : > { %8096 = vmatprep.subr.bf16.mxu1 %v8095_v10  ;;  %8058 = vmatpush1.bf16.msra.mxu0 %v8057_v21  ;;  %v6720_v10 = vld [vmem:[%s13326_s6 + $0x2378] sm:$0xff]  ;;  %v8073_v24 = vpack.c.bf16 %v6713_v12, %v6709_v9  ;;  %v8075_v25 = vpack.c.bf16 %v6722_v20, %v6718_v50  ;;  %v8117_v36 = vpack.c.bf16 %v6723_v32, %v6719_v30  ;;  %v6753_v19 = vld [vmem:[%s13326_s6 + $0x2480] sm:$0xff]  ;;  %v6751_v20 = vld [vmem:[%s13326_s6 + $0x2470] sm:$0xff] }
 0x409   : > { %6763 = vmatprep.mubr.msk.f32.mxu0 %vm883_vm4, %v4446_v37  ;;  %8098 = vmatpush1.bf16.msra.mxu1 %v8097_v29  ;;  %v2981_v43 = vcombine.low %v2973_v63, %v2980_v38  ;;  %v6724_v21 = vld [vmem:[%s13326_s6 + $0x2398] sm:$0xff]  ;;  %v6721_v29 = vld [vmem:[%s13326_s6 + $0x2380] sm:$0xff]  ;;  %v6730_v63 = vld [vmem:[%s13326_s6 + $0x23c8] sm:$0xff]  ;;  %v8129_v12 = vpack.c.bf16 %v6747_v34, %v6743_v5 }
 0x40a   : > { %6766 = vmatprep.mubr.msk.f32.mxu1 %vm883_vm4, %v4446_v37  ;;  %8060 = vmatprep.subr.bf16.mxu0 %v8059_v33  ;;  %v8115_v31 = vpack.c.bf16 %v6724_v21, %v6720_v10  ;;  %v6728_v33 = vld [vmem:[%s13326_s6 + $0x23b8] sm:$0xff]  ;;  %v8077_v28 = vpack.c.bf16 %v6721_v29, %v6717_v27  ;;  %v8079_v37 = vpack.c.bf16 %v6730_v63, %v6726_v16  ;;  %v6725_v38 = vld [vmem:[%s13326_s6 + $0x23a0] sm:$0xff]  ;;  %v6755_v10 = vld [vmem:[%s13326_s6 + $0x2490] sm:$0xff] }
 0x40b   : > { %v2988_v57 = vrot.slane %v2981_v43, %v10317_v51  ;;  %8100 = vmatprep.subr.bf16.mxu1 %v8099_v39  ;;  %v6729_v39 = vld [vmem:[%s13326_s6 + $0x23c0] sm:$0xff]  ;;  %v8119_v23 = vpack.c.bf16 %v6732_v35, %v6728_v33  ;;  %v6734_v43 = vld [vmem:[%s13326_s6 + $0x23e8] sm:$0xff]  ;;  %v6770_v30 = vld [vmem:[%s13326_s6 + $0x24d8] sm:$0xff] }
 0x40c   : > { %8062 = vmatpush1.bf16.msra.mxu0 %v8061_v42  ;;  %v6731_v42 = vld [vmem:[%s13326_s6 + $0x23d0] sm:$0xff]  ;;  %v8081_v49 = vpack.c.bf16 %v6729_v39, %v6725_v38  ;;  %v6768_v27 = vld [vmem:[%s13326_s6 + $0x24c8] sm:$0xff]  ;;  %v6767_v32 = vld [vmem:[%s13326_s6 + $0x24c0] sm:$0xff] }
 0x40d   : > { %v12294_v60 = vadd.f32 %v2988_v57, %v12028_v11  ;;  %8102 = vmatpush1.bf16.msra.mxu1 %v8101_v45  ;;  %8064 = vmatprep.subr.bf16.mxu0 %v8063_v46  ;;  %v6707_v11 = vld [vmem:[%s13326_s6 + $0x2310] sm:$0xff]  ;;  %v6738_v45 = vld [vmem:[%s13326_s6 + $0x2408] sm:$0xff]  ;;  %v6736_v46 = vld [vmem:[%s13326_s6 + $0x23f8] sm:$0xff]  ;;  %v8121_v52 = vpack.c.bf16 %v6731_v42, %v6727_v40  ;;  %v4445_v42 = vrot.slane %v11163_v48, 5 }
 0x40e   : > { %8104 = vmatprep.subr.bf16.mxu1 %v8103_v53  ;;  %v8109_v18 = vpack.c.bf16 %v6707_v11, %v6703_v3  ;;  %v8083_v53 = vpack.c.bf16 %v6738_v45, %v6734_v43  ;;  %v8123_v57 = vpack.c.bf16 %v6740_v47, %v6736_v46  ;;  %v6745_v11 = vld [vmem:[%s13326_s6 + $0x2440] sm:$0xff]  ;;  %v6772_v29 = vld [vmem:[%s13326_s6 + $0x24e8] sm:$0xff]  ;;  %v6769_v35 = vld [vmem:[%s13326_s6 + $0x24d0] sm:$0xff] }
 0x40f   : > { %v6771_v16 = vld [vmem:[%s13326_s6 + $0x24e0] sm:$0xff]  ;;  %v6776_v40 = vld [vmem:[%s13326_s6 + $0x2508] sm:$0xff] }
 0x410   : > { %8066 = vmatpush1.bf16.msra.mxu0 %v8065_v59  ;;  %v6746_v59 = vld [vmem:[%s13326_s6 + $0x2448] sm:$0xff]  ;;  %v6757_v63 = vld [vmem:[%s13326_s6 + $0x24a0] sm:$0x1f]  ;;  %v8137_v45 = vpack.c.bf16 %v6771_v16, %v6767_v32  ;;  %v6802_v16 = vld [vmem:[%s13326_s6 + $0x25d8] sm:$0xff] }
 0x411   : > { %8106 = vmatpush1.bf16.msra.mxu1 %v8105_v61  ;;  %8068 = vmatprep.subr.bf16.mxu0 %v8067_v62  ;;  %v6744_v61 = vld [vmem:[%s13326_s6 + $0x2438] sm:$0xff]  ;;  %v8087_v3 = vpack.c.bf16 %v6746_v59, %v6742_v58  ;;  %v6779_v56 = vld [vmem:[%s13326_s6 + $0x2520] sm:$0xff]  ;;  %v6781_v59 = vld [vmem:[%s13326_s6 + $0x2530] sm:$0xff] }
 0x412   : > { %8108 = vmatprep.subr.bf16.mxu1 %v8107_v4  ;;  %v6748_v62 = vld [vmem:[%s13326_s6 + $0x2458] sm:$0xff]  ;;  %v6741_v4 = vld [vmem:[%s13326_s6 + $0x2420] sm:$0xff]  ;;  %v8141_v5 = vpack.c.bf16 %v6779_v56, %v6775_v55  ;;  %v6804_v32 = vld [vmem:[%s13326_s6 + $0x25e8] sm:$0xff] }
 0x413   : > { %v8127_v6 = vpack.c.bf16 %v6748_v62, %v6744_v61  ;;  %v8089_v9 = vpack.c.bf16 %v6745_v11, %v6741_v4  ;;  %v6784_v61 = vld [vmem:[%s13326_s6 + $0x2548] sm:$0xff]  ;;  %v6786_v4 = vld [vmem:[%s13326_s6 + $0x2558] sm:$0xff]  ;;  %v6813_v56 = vld [vmem:[%s13326_s6 + $0x2630] sm:$0xff] }
 0x414   : > { %8070 = vmatpush1.bf16.msra.mxu0 %v8069_v15  ;;  %v6754_v15 = vld [vmem:[%s13326_s6 + $0x2488] sm:$0xff]  ;;  %v6790_v11 = vld [vmem:[%s13326_s6 + $0x2578] sm:$0xff] }
 0x415   : > { %8110 = vmatpush1.bf16.msra.mxu1 %v8109_v18  ;;  %8072 = vmatprep.subr.bf16.mxu0 %v8071_v8  ;;  %v6752_v18 = vld [vmem:[%s13326_s6 + $0x2478] sm:$0xff]  ;;  %v8091_v13 = vpack.c.bf16 %v6754_v15, %v6750_v7  ;;  %v6788_v62 = vld [vmem:[%s13326_s6 + $0x2568] sm:$0xff]  ;;  %v6783_v15 = vld [vmem:[%s13326_s6 + $0x2540] sm:$0xff] }
 0x416   : > { %8112 = vmatprep.subr.bf16.mxu1 %v8111_v14  ;;  %v6756_v8 = vld [vmem:[%s13326_s6 + $0x2498] sm:$0xff]  ;;  %v6749_v14 = vld [vmem:[%s13326_s6 + $0x2460] sm:$0xff]  ;;  %v8143_v7 = vpack.c.bf16 %v6788_v62, %v6784_v61 }
 0x417   : > { %v8131_v50 = vpack.c.bf16 %v6756_v8, %v6752_v18  ;;  %v8093_v21 = vpack.c.bf16 %v6753_v19, %v6749_v14  ;;  %v6787_v18 = vld [vmem:[%s13326_s6 + $0x2560] sm:$0xff]  ;;  %v6785_v8 = vld [vmem:[%s13326_s6 + $0x2550] sm:$0xff]  ;;  %v6796_v14 = vld [vmem:[%s13326_s6 + $0x25a8] sm:$0xff] }
 0x418   : > { %8074 = vmatpush1.bf16.msra.mxu0 %v8073_v24  ;;  %v8133_v24 = vpack.c.bf16 %v6755_v10, %v6751_v20  ;;  %v6798_v20 = vld [vmem:[%s13326_s6 + $0x25b8] sm:$0xff]  ;;  %v8145_v10 = vpack.c.bf16 %v6787_v18, %v6783_v15 }
 0x419   : > { %8114 = vmatpush1.bf16.msra.mxu1 %v8113_v17  ;;  %8076 = vmatprep.subr.bf16.mxu0 %v8075_v25  ;;  %v6758_v17 = vld [vmem:[%s13326_s6 + $0x24a8] sm:$0x1f]  ;;  %v6760_v25 = vld [vmem:[%s13326_s6 + $0x24b8] sm:$0x1f] }
 0x41a   : > { %8116 = vmatprep.subr.bf16.mxu1 %v8115_v31  ;;  %v6774_v31 = vld [vmem:[%s13326_s6 + $0x24f8] sm:$0xff] }
 0x41b   : > { %v8175_v43 = vpack.c.bf16 %v6774_v31, %v6770_v30  ;;  %v6800_v31 = vld [vmem:[%s13326_s6 + $0x25c8] sm:$0xff]  ;;  %v6830_v15 = vld [vmem:[%s13326_s6 + $0x26b8] sm:$0xff] }
 0x41c   : > { %8078 = vmatpush1.bf16.msra.mxu0 %v8077_v28  ;;  %v6773_v28 = vld [vmem:[%s13326_s6 + $0x24f0] sm:$0xff] }
 0x41d   : > { %8118 = vmatpush1.bf16.msra.mxu1 %v8117_v36  ;;  %8080 = vmatprep.subr.bf16.mxu0 %v8079_v37  ;;  %v6759_v36 = vld [vmem:[%s13326_s6 + $0x24b0] sm:$0x1f]  ;;  %v8135_v37 = vpack.c.bf16 %v6772_v29, %v6768_v27  ;;  %v6795_v27 = vld [vmem:[%s13326_s6 + $0x25a0] sm:$0xff] }
 0x41e   : > { %8120 = vmatprep.subr.bf16.mxu1 %v8119_v23  ;;  %v6780_v23 = vld [vmem:[%s13326_s6 + $0x2528] sm:$0xff]  ;;  %v6793_v29 = vld [vmem:[%s13326_s6 + $0x2590] sm:$0xff] }
 0x41f   : > { %v8139_v58 = vpack.c.bf16 %v6780_v23, %v6776_v40  ;;  %v6805_v40 = vld [vmem:[%s13326_s6 + $0x25f0] sm:$0xff]  ;;  %v6808_v23 = vld [vmem:[%s13326_s6 + $0x2608] sm:$0xff] }
 0x420   : > { %8082 = vmatpush1.bf16.msra.mxu0 %v8081_v49  ;;  %v6778_v49 = vld [vmem:[%s13326_s6 + $0x2518] sm:$0xff] }
 0x421   : > { %8122 = vmatpush1.bf16.msra.mxu1 %v8121_v52  ;;  %8084 = vmatprep.subr.bf16.mxu0 %v8083_v53  ;;  %v6782_v52 = vld [vmem:[%s13326_s6 + $0x2538] sm:$0xff]  ;;  %v8177_v53 = vpack.c.bf16 %v6773_v28, %v6769_v35  ;;  %v8151_v28 = vpack.c.bf16 %v6804_v32, %v6800_v31  ;;  %v6833_v31 = vld [vmem:[%s13326_s6 + $0x26d0] sm:$0xff] }
 0x422   : > { %8124 = vmatprep.subr.bf16.mxu1 %v8123_v57  ;;  %v6777_v57 = vld [vmem:[%s13326_s6 + $0x2510] sm:$0xff] }
 0x423   : > { %v8181_v34 = vpack.c.bf16 %v6781_v59, %v6777_v57  ;;  %v6816_v57 = vld [vmem:[%s13326_s6 + $0x2648] sm:$0xff]  ;;  %v6822_v59 = vld [vmem:[%s13326_s6 + $0x2678] sm:$0xff] }
 0x424   : > { %8086 = vmatpush1.bf16.msra.mxu0 %v8085_v1  ;;  %v4720_v1 = vrot.slane %v10920_v41, 6 }
 0x425   : > { %8126 = vmatpush1.bf16.msra.mxu1 %v8125_v2  ;;  %8088 = vmatprep.subr.bf16.mxu0 %v8087_v3  ;;  %v8179_v3 = vpack.c.bf16 %v6782_v52, %v6778_v49  ;;  %v6807_v52 = vld [vmem:[%s13326_s6 + $0x2600] sm:$0xff] }
 0x426   : > { %8128 = vmatprep.subr.bf16.mxu1 %v8127_v6 }
 0x428   : > { %8090 = vmatpush1.bf16.msra.mxu0 %v8089_v9  ;;  %v8183_v9 = vpack.c.bf16 %v6790_v11, %v6786_v4  ;;  %v6817_v4 = vld [vmem:[%s13326_s6 + $0x2650] sm:$0xff] }
 0x429   : > { %8130 = vmatpush1.bf16.msra.mxu1 %v8129_v12  ;;  %8092 = vmatprep.subr.bf16.mxu0 %v8091_v13  ;;  %v6789_v12 = vld [vmem:[%s13326_s6 + $0x2570] sm:$0xff]  ;;  %v6792_v13 = vld [vmem:[%s13326_s6 + $0x2588] sm:$0xff] }
 0x42a   : > { %8132 = vmatprep.subr.bf16.mxu1 %v8131_v50  ;;  %v6794_v50 = vld [vmem:[%s13326_s6 + $0x2598] sm:$0xff] }
 0x42b   : > { %v8187_v30 = vpack.c.bf16 %v6798_v20, %v6794_v50  ;;  %v6829_v50 = vld [vmem:[%s13326_s6 + $0x26b0] sm:$0xff]  ;;  %v6832_v20 = vld [vmem:[%s13326_s6 + $0x26c8] sm:$0xff] }
 0x42c   : > { %8094 = vmatpush1.bf16.msra.mxu0 %v8093_v21 }
 0x42d   : > { %8134 = vmatpush1.bf16.msra.mxu1 %v8133_v24  ;;  %6761 = vmatprep.subr.msk.mxu0 %vm887_vm3, %v6758_v17  ;;  %v3157_v33 = vpop.f32.mrb[34].mxu0  ;;  %v8185_v24 = vpack.c.bf16 %v6789_v12, %v6785_v8  ;;  %v8147_v17 = vpack.c.bf16 %v6796_v14, %v6792_v13  ;;  %v6823_v12 = vld [vmem:[%s13326_s6 + $0x2680] sm:$0xff]  ;;  %v6825_v14 = vld [vmem:[%s13326_s6 + $0x2690] sm:$0xff] }
 0x42e   : > { %6764 = vmatprep.subr.msk.mxu1 %vm887_vm3, %v6760_v25  ;;  %v3228_v38 = vpop.f32.mrb[20].mxu1  ;;  %v3159_v39 = vpop.f32.mrb[35].mxu0  ;;  %v6791_v25 = vld [vmem:[%s13326_s6 + $0x2580] sm:$0xff] }
 0x42f   : > { %v3237_v46 = vcombine.low %v3157_v33, %v3159_v39  ;;  %v3230_v47 = vpop.f32.mrb[21].mxu1  ;;  %v8149_v33 = vpack.c.bf16 %v6795_v27, %v6791_v25  ;;  %v6827_v13 = vld [vmem:[%s13326_s6 + $0x26a0] sm:$0xff]  ;;  %v8205_v27 = vpack.c.bf16 %v6829_v50, %v6825_v14 }
 0x430   : > { %6762 = vmatpush1.msk.msra.mxu0 %vm887_vm3, %v6757_v63  ;;  %v3238_v54 = vcombine.low %v3228_v38, %v3230_v47  ;;  %v6806_v63 = vld [vmem:[%s13326_s6 + $0x25f8] sm:$0xff]  ;;  %v6801_v38 = vld [vmem:[%s13326_s6 + $0x25d0] sm:$0xff]  ;;  %v8165_v25 = vpack.c.bf16 %v6827_v13, %v6823_v12  ;;  %v6865_v13 = vld [vmem:[%s13326_s6 + $0x27a0] sm:$0xff] }
 0x431   : > { %6765 = vmatpush1.msk.msra.mxu1 %vm887_vm3, %v6759_v36  ;;  %4527 = vmatmul.mubr.f32.vlgmr.msra.gmra.mrb[44].mxu0 %v4445_v42  ;;  %v3245_v26 = vrot.slane %v3237_v46, %v10317_v51  ;;  %v6799_v36 = vld [vmem:[%s13326_s6 + $0x25c0] sm:$0xff]  ;;  %v8191_v39 = vpack.c.bf16 %v6806_v63, %v6802_v16  ;;  %v8193_v47 = vpack.c.bf16 %v6805_v40, %v6801_v38  ;;  %v6837_v16 = vld [vmem:[%s13326_s6 + $0x26f0] sm:$0xff]  ;;  %v6840_v63 = vld [vmem:[%s13326_s6 + $0x2708] sm:$0xff] }
 0x432   : > { %4598 = vmatmul.mubr.f32.vlgmr.msra.gmra.mrb[30].mxu1 %v4445_v42  ;;  %8136 = vmatprep.subr.bf16.mxu0 %v8135_v37  ;;  %v3252_v2 = vrot.slane %v3238_v54, %v10317_v51  ;;  %v6803_v37 = vld [vmem:[%s13326_s6 + $0x25e0] sm:$0xff]  ;;  %v6812_v42 = vld [vmem:[%s13326_s6 + $0x2628] sm:$0xff]  ;;  %v6809_v54 = vld [vmem:[%s13326_s6 + $0x2610] sm:$0xff] }
 0x433   : > { %8176 = vmatprep.subr.bf16.mxu1 %v8175_v43  ;;  %8138 = vmatpush1.bf16.msra.mxu0 %v8137_v45  ;;  %v6810_v43 = vld [vmem:[%s13326_s6 + $0x2618] sm:$0xff]  ;;  %v8153_v46 = vpack.c.bf16 %v6803_v37, %v6799_v36  ;;  %v8155_v49 = vpack.c.bf16 %v6812_v42, %v6808_v23  ;;  %v8197_v62 = vpack.c.bf16 %v6813_v56, %v6809_v54  ;;  %v6843_v40 = vld [vmem:[%s13326_s6 + $0x2720] sm:$0xff]  ;;  %v6841_v42 = vld [vmem:[%s13326_s6 + $0x2710] sm:$0xff] }
 0x434   : > { %6853 = vmatprep.mubr.msk.f32.mxu0 %vm883_vm4, %v4720_v1  ;;  %8178 = vmatpush1.bf16.msra.mxu1 %v8177_v53  ;;  %v3253_v6 = vcombine.low %v3245_v26, %v3252_v2  ;;  %v6814_v45 = vld [vmem:[%s13326_s6 + $0x2638] sm:$0xff]  ;;  %v6811_v53 = vld [vmem:[%s13326_s6 + $0x2620] sm:$0xff]  ;;  %v6820_v26 = vld [vmem:[%s13326_s6 + $0x2668] sm:$0xff]  ;;  %v8209_v37 = vpack.c.bf16 %v6837_v16, %v6833_v31 }
 0x435   : > { %6856 = vmatprep.mubr.msk.f32.mxu1 %vm883_vm4, %v4720_v1  ;;  %8140 = vmatprep.subr.bf16.mxu0 %v8139_v58  ;;  %v8195_v55 = vpack.c.bf16 %v6814_v45, %v6810_v43  ;;  %v6818_v58 = vld [vmem:[%s13326_s6 + $0x2658] sm:$0xff]  ;;  %v8157_v61 = vpack.c.bf16 %v6811_v53, %v6807_v52  ;;  %v8159_v1 = vpack.c.bf16 %v6820_v26, %v6816_v57  ;;  %v6815_v2 = vld [vmem:[%s13326_s6 + $0x2640] sm:$0xff]  ;;  %v6845_v43 = vld [vmem:[%s13326_s6 + $0x2730] sm:$0xff] }
 0x436   : > { %v3260_v19 = vrot.slane %v3253_v6, %v10317_v51  ;;  %8180 = vmatprep.subr.bf16.mxu1 %v8179_v3  ;;  %v6819_v3 = vld [vmem:[%s13326_s6 + $0x2660] sm:$0xff]  ;;  %v8199_v11 = vpack.c.bf16 %v6822_v59, %v6818_v58  ;;  %v6824_v6 = vld [vmem:[%s13326_s6 + $0x2688] sm:$0xff]  ;;  %v6860_v54 = vld [vmem:[%s13326_s6 + $0x2778] sm:$0xff] }
 0x437   : > { %8142 = vmatpush1.bf16.msra.mxu0 %v8141_v5  ;;  %v6821_v5 = vld [vmem:[%s13326_s6 + $0x2670] sm:$0xff]  ;;  %v8161_v18 = vpack.c.bf16 %v6819_v3, %v6815_v2  ;;  %v6858_v52 = vld [vmem:[%s13326_s6 + $0x2768] sm:$0xff]  ;;  %v6857_v56 = vld [vmem:[%s13326_s6 + $0x2760] sm:$0xff] }
 0x438   : > { %v12560_v21 = vadd.f32 %v3260_v19, %v12294_v60  ;;  %8182 = vmatpush1.bf16.msra.mxu1 %v8181_v34  ;;  %8144 = vmatprep.subr.bf16.mxu0 %v8143_v7  ;;  %v6797_v60 = vld [vmem:[%s13326_s6 + $0x25b0] sm:$0xff]  ;;  %v6828_v34 = vld [vmem:[%s13326_s6 + $0x26a8] sm:$0xff]  ;;  %v6826_v7 = vld [vmem:[%s13326_s6 + $0x2698] sm:$0xff]  ;;  %v8201_v8 = vpack.c.bf16 %v6821_v5, %v6817_v4  ;;  %v4719_v5 = vrot.slane %v11163_v48, 6 }
 0x439   : > { %8184 = vmatprep.subr.bf16.mxu1 %v8183_v9  ;;  %v8189_v35 = vpack.c.bf16 %v6797_v60, %v6793_v29  ;;  %v8163_v9 = vpack.c.bf16 %v6828_v34, %v6824_v6  ;;  %v8203_v19 = vpack.c.bf16 %v6830_v15, %v6826_v7  ;;  %v6835_v60 = vld [vmem:[%s13326_s6 + $0x26e0] sm:$0xff]  ;;  %v6862_v53 = vld [vmem:[%s13326_s6 + $0x2788] sm:$0xff]  ;;  %v6859_v59 = vld [vmem:[%s13326_s6 + $0x2770] sm:$0xff] }
 0x43a   : > { %v6861_v57 = vld [vmem:[%s13326_s6 + $0x2780] sm:$0xff]  ;;  %v6866_v4 = vld [vmem:[%s13326_s6 + $0x27a8] sm:$0xff] }
 0x43b   : > { %8146 = vmatpush1.bf16.msra.mxu0 %v8145_v10  ;;  %v6836_v10 = vld [vmem:[%s13326_s6 + $0x26e8] sm:$0xff]  ;;  %v6847_v26 = vld [vmem:[%s13326_s6 + $0x2740] sm:$0x1f]  ;;  %v8217_v34 = vpack.c.bf16 %v6861_v57, %v6857_v56  ;;  %v6892_v56 = vld [vmem:[%s13326_s6 + $0x2878] sm:$0xff] }
 0x43c   : > { %8186 = vmatpush1.bf16.msra.mxu1 %v8185_v24  ;;  %8148 = vmatprep.subr.bf16.mxu0 %v8147_v17  ;;  %v6834_v24 = vld [vmem:[%s13326_s6 + $0x26d8] sm:$0xff]  ;;  %v8167_v29 = vpack.c.bf16 %v6836_v10, %v6832_v20  ;;  %v6869_v14 = vld [vmem:[%s13326_s6 + $0x27c0] sm:$0xff]  ;;  %v6871_v10 = vld [vmem:[%s13326_s6 + $0x27d0] sm:$0xff] }
 0x43d   : > { %8188 = vmatprep.subr.bf16.mxu1 %v8187_v30  ;;  %v6838_v17 = vld [vmem:[%s13326_s6 + $0x26f8] sm:$0xff]  ;;  %v6831_v30 = vld [vmem:[%s13326_s6 + $0x26c0] sm:$0xff]  ;;  %v8221_v31 = vpack.c.bf16 %v6869_v14, %v6865_v13  ;;  %v6903_v13 = vld [vmem:[%s13326_s6 + $0x28d0] sm:$0xff] }
 0x43e   : > { %v8207_v32 = vpack.c.bf16 %v6838_v17, %v6834_v24  ;;  %v8169_v36 = vpack.c.bf16 %v6835_v60, %v6831_v30  ;;  %v6874_v24 = vld [vmem:[%s13326_s6 + $0x27e8] sm:$0xff]  ;;  %v6876_v30 = vld [vmem:[%s13326_s6 + $0x27f8] sm:$0xff] }
 0x43f   : > { %8150 = vmatpush1.bf16.msra.mxu0 %v8149_v33  ;;  %v6844_v33 = vld [vmem:[%s13326_s6 + $0x2728] sm:$0xff]  ;;  %v6880_v60 = vld [vmem:[%s13326_s6 + $0x2818] sm:$0xff] }
 0x440   : > { %8190 = vmatpush1.bf16.msra.mxu1 %v8189_v35  ;;  %8152 = vmatprep.subr.bf16.mxu0 %v8151_v28  ;;  %v6842_v35 = vld [vmem:[%s13326_s6 + $0x2718] sm:$0xff]  ;;  %v8171_v38 = vpack.c.bf16 %v6844_v33, %v6840_v63  ;;  %v6878_v17 = vld [vmem:[%s13326_s6 + $0x2808] sm:$0xff]  ;;  %v6873_v63 = vld [vmem:[%s13326_s6 + $0x27e0] sm:$0xff] }
 0x441   : > { %8192 = vmatprep.subr.bf16.mxu1 %v8191_v39  ;;  %v6846_v28 = vld [vmem:[%s13326_s6 + $0x2738] sm:$0xff]  ;;  %v6839_v39 = vld [vmem:[%s13326_s6 + $0x2700] sm:$0xff]  ;;  %v6906_v14 = vld [vmem:[%s13326_s6 + $0x28e8] sm:$0xff] }
 0x442   : > { %v8211_v23 = vpack.c.bf16 %v6846_v28, %v6842_v35  ;;  %v8173_v45 = vpack.c.bf16 %v6843_v40, %v6839_v39  ;;  %v6877_v33 = vld [vmem:[%s13326_s6 + $0x2800] sm:$0xff]  ;;  %v6875_v35 = vld [vmem:[%s13326_s6 + $0x27f0] sm:$0xff]  ;;  %v8263_v28 = vpack.c.bf16 %v6880_v60, %v6876_v30  ;;  %v6884_v40 = vld [vmem:[%s13326_s6 + $0x2838] sm:$0xff] }
 0x443   : > { %8154 = vmatpush1.bf16.msra.mxu0 %v8153_v46  ;;  %v8213_v46 = vpack.c.bf16 %v6845_v43, %v6841_v42  ;;  %v8225_v42 = vpack.c.bf16 %v6877_v33, %v6873_v63  ;;  %v6896_v57 = vld [vmem:[%s13326_s6 + $0x2898] sm:$0xff]  ;;  %v6911_v60 = vld [vmem:[%s13326_s6 + $0x2910] sm:$0xff] }
 0x444   : > { %8194 = vmatpush1.bf16.msra.mxu1 %v8193_v47  ;;  %8156 = vmatprep.subr.bf16.mxu0 %v8155_v49  ;;  %v6848_v47 = vld [vmem:[%s13326_s6 + $0x2748] sm:$0x1f]  ;;  %v6850_v49 = vld [vmem:[%s13326_s6 + $0x2758] sm:$0x1f] }
 0x445   : > { %8196 = vmatprep.subr.bf16.mxu1 %v8195_v55  ;;  %v6864_v55 = vld [vmem:[%s13326_s6 + $0x2798] sm:$0xff] }
 0x446   : > { %v8255_v6 = vpack.c.bf16 %v6864_v55, %v6860_v54  ;;  %v6890_v54 = vld [vmem:[%s13326_s6 + $0x2868] sm:$0xff] }
 0x447   : > { %8158 = vmatpush1.bf16.msra.mxu0 %v8157_v61  ;;  %v6863_v61 = vld [vmem:[%s13326_s6 + $0x2790] sm:$0xff]  ;;  %v6894_v55 = vld [vmem:[%s13326_s6 + $0x2888] sm:$0xff] }
 0x448   : > { %8198 = vmatpush1.bf16.msra.mxu1 %v8197_v62  ;;  %8160 = vmatprep.subr.bf16.mxu0 %v8159_v1  ;;  %v6849_v62 = vld [vmem:[%s13326_s6 + $0x2750] sm:$0x1f]  ;;  %v8215_v1 = vpack.c.bf16 %v6862_v53, %v6858_v52 }
 0x449   : > { %8200 = vmatprep.subr.bf16.mxu1 %v8199_v11  ;;  %v6870_v11 = vld [vmem:[%s13326_s6 + $0x27c8] sm:$0xff]  ;;  %v6883_v52 = vld [vmem:[%s13326_s6 + $0x2830] sm:$0xff] }
 0x44a   : > { %v8219_v20 = vpack.c.bf16 %v6870_v11, %v6866_v4  ;;  %v6898_v4 = vld [vmem:[%s13326_s6 + $0x28a8] sm:$0xff] }
 0x44b   : > { %8162 = vmatpush1.bf16.msra.mxu0 %v8161_v18  ;;  %v6868_v18 = vld [vmem:[%s13326_s6 + $0x27b8] sm:$0xff]  ;;  %v6902_v11 = vld [vmem:[%s13326_s6 + $0x28c8] sm:$0xff] }
 0x44c   : > { %8202 = vmatpush1.bf16.msra.mxu1 %v8201_v8  ;;  %8164 = vmatprep.subr.bf16.mxu0 %v8163_v9  ;;  %v6872_v8 = vld [vmem:[%s13326_s6 + $0x27d8] sm:$0xff]  ;;  %v8257_v9 = vpack.c.bf16 %v6863_v61, %v6859_v59  ;;  %v8231_v59 = vpack.c.bf16 %v6894_v55, %v6890_v54  ;;  %v6889_v61 = vld [vmem:[%s13326_s6 + $0x2860] sm:$0xff]  ;;  %v6927_v55 = vld [vmem:[%s13326_s6 + $0x2990] sm:$0xff] }
 0x44d   : > { %8204 = vmatprep.subr.bf16.mxu1 %v8203_v19  ;;  %v6867_v19 = vld [vmem:[%s13326_s6 + $0x27b0] sm:$0xff] }
 0x44e   : > { %v8261_v16 = vpack.c.bf16 %v6871_v10, %v6867_v19  ;;  %v6910_v19 = vld [vmem:[%s13326_s6 + $0x2908] sm:$0xff] }
 0x44f   : > { %8166 = vmatpush1.bf16.msra.mxu0 %v8165_v25  ;;  %v4994_v25 = vrot.slane %v10920_v41, 7  ;;  %v8223_v41 = vpack.c.bf16 %v6878_v17, %v6874_v24  ;;  %v8239_v17 = vpack.c.bf16 %v6910_v19, %v6906_v14 }
 0x450   : > { %8206 = vmatpush1.bf16.msra.mxu1 %v8205_v27  ;;  %8168 = vmatprep.subr.bf16.mxu0 %v8167_v29  ;;  %v8259_v29 = vpack.c.bf16 %v6872_v8, %v6868_v18  ;;  %v6897_v18 = vld [vmem:[%s13326_s6 + $0x28a0] sm:$0xff] }
 0x451   : > { %8208 = vmatprep.subr.bf16.mxu1 %v8207_v32  ;;  %v6901_v8 = vld [vmem:[%s13326_s6 + $0x28c0] sm:$0xff] }
 0x452   : > { %v8237_v10 = vpack.c.bf16 %v6901_v8, %v6897_v18  ;;  %v6939_v8 = vld [vmem:[%s13326_s6 + $0x29f0] sm:$0x1f] }
 0x453   : > { %8170 = vmatpush1.bf16.msra.mxu0 %v8169_v36  ;;  %v6879_v36 = vld [vmem:[%s13326_s6 + $0x2810] sm:$0xff] }
 0x454   : > { %8210 = vmatpush1.bf16.msra.mxu1 %v8209_v37  ;;  %8172 = vmatprep.subr.bf16.mxu0 %v8171_v38  ;;  %v6882_v37 = vld [vmem:[%s13326_s6 + $0x2828] sm:$0xff] }
 0x455   : > { %8212 = vmatprep.subr.bf16.mxu1 %v8211_v23  ;;  %v6886_v38 = vld [vmem:[%s13326_s6 + $0x2848] sm:$0xff]  ;;  %v6888_v23 = vld [vmem:[%s13326_s6 + $0x2858] sm:$0xff] }
 0x456   : > { %v8267_v53 = vpack.c.bf16 %v6888_v23, %v6884_v40  ;;  %v6922_v40 = vld [vmem:[%s13326_s6 + $0x2968] sm:$0xff] }
 0x457   : > { %8174 = vmatpush1.bf16.msra.mxu0 %v8173_v45  ;;  %v8265_v45 = vpack.c.bf16 %v6879_v36, %v6875_v35  ;;  %v6917_v36 = vld [vmem:[%s13326_s6 + $0x2940] sm:$0xff]  ;;  %v6926_v23 = vld [vmem:[%s13326_s6 + $0x2988] sm:$0xff] }
 0x458   : > { %8214 = vmatpush1.bf16.msra.mxu1 %v8213_v46  ;;  %6851 = vmatprep.subr.msk.mxu0 %vm887_vm3, %v6848_v47  ;;  %v3432_v58 = vpop.f32.mrb[36].mxu0  ;;  %v8227_v46 = vpack.c.bf16 %v6886_v38, %v6882_v37  ;;  %v6881_v47 = vld [vmem:[%s13326_s6 + $0x2820] sm:$0xff]  ;;  %v6915_v37 = vld [vmem:[%s13326_s6 + $0x2930] sm:$0xff] }
 0x459   : > { %6854 = vmatprep.subr.msk.mxu1 %vm887_vm3, %v6850_v49  ;;  %v3503_v2 = vpop.f32.mrb[22].mxu1  ;;  %v3434_v3 = vpop.f32.mrb[37].mxu0  ;;  %v6885_v49 = vld [vmem:[%s13326_s6 + $0x2840] sm:$0xff] }
 0x45a   : > { %v3512_v7 = vcombine.low %v3432_v58, %v3434_v3  ;;  %v3505_v15 = vpop.f32.mrb[23].mxu1  ;;  %v6895_v3 = vld [vmem:[%s13326_s6 + $0x2890] sm:$0xff] }
 0x45b   : > { %6852 = vmatpush1.msk.msra.mxu0 %vm887_vm3, %v6847_v26  ;;  %v3513_v12 = vcombine.low %v3503_v2, %v3505_v15  ;;  %v8229_v26 = vpack.c.bf16 %v6885_v49, %v6881_v47  ;;  %v8271_v2 = vpack.c.bf16 %v6896_v57, %v6892_v56  ;;  %v8235_v15 = vpack.c.bf16 %v6902_v11, %v6898_v4  ;;  %v6930_v56 = vld [vmem:[%s13326_s6 + $0x29a8] sm:$0xff]  ;;  %v6931_v4 = vld [vmem:[%s13326_s6 + $0x29b0] sm:$0xff] }
 0x45c   : > { %6855 = vmatpush1.msk.msra.mxu1 %vm887_vm3, %v6849_v62  ;;  %4801 = vmatmul.mubr.f32.vlgmr.msra.gmra.mrb[46].mxu0 %v4719_v5  ;;  %v3520_v50 = vrot.slane %v3512_v7, %v10317_v51  ;;  %v6893_v62 = vld [vmem:[%s13326_s6 + $0x2880] sm:$0xff]  ;;  %v8247_v49 = vpack.c.bf16 %v6926_v23, %v6922_v40  ;;  %v6934_v57 = vld [vmem:[%s13326_s6 + $0x29c8] sm:$0xff]  ;;  %v6935_v11 = vld [vmem:[%s13326_s6 + $0x29d0] sm:$0xff] }
 0x45d   : > { %4872 = vmatmul.mubr.f32.vlgmr.msra.gmra.mrb[32].mxu1 %v4719_v5  ;;  %8216 = vmatprep.subr.bf16.mxu0 %v8215_v1  ;;  %v3527_v27 = vrot.slane %v3513_v12, %v10317_v51  ;;  %v6891_v1 = vld [vmem:[%s13326_s6 + $0x2870] sm:$0xff]  ;;  %v6900_v5 = vld [vmem:[%s13326_s6 + $0x28b8] sm:$0xff] }
 0x45e   : > { %8256 = vmatprep.subr.bf16.mxu1 %v8255_v6  ;;  %8218 = vmatpush1.bf16.msra.mxu0 %v8217_v34  ;;  %v6904_v6 = vld [vmem:[%s13326_s6 + $0x28d8] sm:$0xff]  ;;  %v8233_v34 = vpack.c.bf16 %v6893_v62, %v6889_v61  ;;  %v8273_v7 = vpack.c.bf16 %v6895_v3, %v6891_v1  ;;  %v8251_v62 = vpack.c.bf16 %v6934_v57, %v6930_v56  ;;  %v6929_v1 = vld [vmem:[%s13326_s6 + $0x29a0] sm:$0xff] }
 0x45f   : > { %6943 = vmatprep.mubr.msk.f32.mxu0 %vm883_vm4, %v4994_v25  ;;  %8258 = vmatpush1.bf16.msra.mxu1 %v8257_v9  ;;  %v3528_v32 = vcombine.low %v3520_v50, %v3527_v27  ;;  %v6899_v9 = vld [vmem:[%s13326_s6 + $0x28b0] sm:$0xff]  ;;  %v8275_v12 = vpack.c.bf16 %v6904_v6, %v6900_v5  ;;  %v6908_v50 = vld [vmem:[%s13326_s6 + $0x28f8] sm:$0xff]  ;;  %v6909_v27 = vld [vmem:[%s13326_s6 + $0x2900] sm:$0xff]  ;;  %v8293_v6 = vpack.c.bf16 %v6935_v11, %v6931_v4 }
 0x460   : > { %6946 = vmatprep.mubr.msk.f32.mxu1 %vm883_vm4, %v4994_v25  ;;  %8220 = vmatprep.subr.bf16.mxu0 %v8219_v20  ;;  %v6912_v20 = vld [vmem:[%s13326_s6 + $0x2918] sm:$0xff]  ;;  %v8277_v24 = vpack.c.bf16 %v6903_v13, %v6899_v9  ;;  %v6905_v25 = vld [vmem:[%s13326_s6 + $0x28e0] sm:$0xff]  ;;  %v4993_v13 = vrot.slane %v11163_v48, 7 }
 0x461   : > { %v3535_v39 = vrot.slane %v3528_v32, %v10317_v51  ;;  %8260 = vmatprep.subr.bf16.mxu1 %v8259_v29  ;;  %v6907_v29 = vld [vmem:[%s13326_s6 + $0x28f0] sm:$0xff]  ;;  %v8279_v30 = vpack.c.bf16 %v6912_v20, %v6908_v50  ;;  %v6918_v32 = vld [vmem:[%s13326_s6 + $0x2948] sm:$0xff]  ;;  %v8241_v63 = vpack.c.bf16 %v6909_v27, %v6905_v25 }
 0x462   : > { %8222 = vmatpush1.bf16.msra.mxu0 %v8221_v31  ;;  %v6914_v31 = vld [vmem:[%s13326_s6 + $0x2928] sm:$0xff]  ;;  %v8281_v33 = vpack.c.bf16 %v6911_v60, %v6907_v29 }
 0x463   : > { %v12826_v43 = vadd.f32 %v3535_v39, %v12560_v21  ;;  %8262 = vmatpush1.bf16.msra.mxu1 %v8261_v16  ;;  %8224 = vmatprep.subr.bf16.mxu0 %v8223_v41  ;;  %v6887_v21 = vld [vmem:[%s13326_s6 + $0x2850] sm:$0xff]  ;;  %v6916_v16 = vld [vmem:[%s13326_s6 + $0x2938] sm:$0xff]  ;;  %v8243_v35 = vpack.c.bf16 %v6918_v32, %v6914_v31 }
 0x464   : > { %8264 = vmatprep.subr.bf16.mxu1 %v8263_v28  ;;  %v8269_v58 = vpack.c.bf16 %v6887_v21, %v6883_v52  ;;  %v6920_v41 = vld [vmem:[%s13326_s6 + $0x2958] sm:$0xff]  ;;  %v6913_v28 = vld [vmem:[%s13326_s6 + $0x2920] sm:$0xff]  ;;  %v6919_v39 = vld [vmem:[%s13326_s6 + $0x2950] sm:$0xff] }
 0x465   : > { %v8283_v38 = vpack.c.bf16 %v6920_v41, %v6916_v16  ;;  %v8285_v47 = vpack.c.bf16 %v6919_v39, %v6915_v37  ;;  %v6921_v52 = vld [vmem:[%s13326_s6 + $0x2960] sm:$0xff]  ;;  %v6923_v21 = vld [vmem:[%s13326_s6 + $0x2970] sm:$0xff] }
 0x466   : > { %8226 = vmatpush1.bf16.msra.mxu0 %v8225_v42  ;;  %v6924_v42 = vld [vmem:[%s13326_s6 + $0x2978] sm:$0xff]  ;;  %v8289_v61 = vpack.c.bf16 %v6927_v55, %v6923_v21 }
 0x467   : > { %8266 = vmatpush1.bf16.msra.mxu1 %v8265_v45  ;;  %8228 = vmatprep.subr.bf16.mxu0 %v8227_v46  ;;  %v6928_v45 = vld [vmem:[%s13326_s6 + $0x2998] sm:$0xff]  ;;  %v8245_v46 = vpack.c.bf16 %v6917_v36, %v6913_v28 }
 0x468   : > { %8268 = vmatprep.subr.bf16.mxu1 %v8267_v53  ;;  %v6925_v53 = vld [vmem:[%s13326_s6 + $0x2980] sm:$0xff]  ;;  %v8287_v54 = vpack.c.bf16 %v6928_v45, %v6924_v42 }
 0x46a   : > { %8230 = vmatpush1.bf16.msra.mxu0 %v8229_v26  ;;  %v6932_v26 = vld [vmem:[%s13326_s6 + $0x29b8] sm:$0xff] }
 0x46b   : > { %8270 = vmatpush1.bf16.msra.mxu1 %v8269_v58  ;;  %8232 = vmatprep.subr.bf16.mxu0 %v8231_v59  ;;  %v6936_v58 = vld [vmem:[%s13326_s6 + $0x29d8] sm:$0xff]  ;;  %v8249_v59 = vpack.c.bf16 %v6925_v53, %v6921_v52 }
 0x46c   : > { %8272 = vmatprep.subr.bf16.mxu1 %v8271_v2  ;;  %v6933_v2 = vld [vmem:[%s13326_s6 + $0x29c0] sm:$0xff]  ;;  %v8291_v3 = vpack.c.bf16 %v6936_v58, %v6932_v26 }
 0x46d   : > { %v8253_v5 = vpack.c.bf16 %v6933_v2, %v6929_v1 }
 0x46e   : > { %8234 = vmatpush1.bf16.msra.mxu0 %v8233_v34  ;;  %v6938_v34 = vld [vmem:[%s13326_s6 + $0x29e8] sm:$0x1f] }
 0x46f   : > { %8274 = vmatpush1.bf16.msra.mxu1 %v8273_v7  ;;  %8236 = vmatprep.subr.bf16.mxu0 %v8235_v15  ;;  %v6940_v7 = vld [vmem:[%s13326_s6 + $0x29f8] sm:$0x1f]  ;;  %v6937_v15 = vld [vmem:[%s13326_s6 + $0x29e0] sm:$0x1f] }
 0x470   : > { %8276 = vmatprep.subr.bf16.mxu1 %v8275_v12 }
 0x472   : > { %8238 = vmatpush1.bf16.msra.mxu0 %v8237_v10 }
 0x473   : > { %8278 = vmatpush1.bf16.msra.mxu1 %v8277_v24  ;;  %8240 = vmatprep.subr.bf16.mxu0 %v8239_v17 }
 0x474   : > { %8280 = vmatprep.subr.bf16.mxu1 %v8279_v30 }
 0x476   : > { %8242 = vmatpush1.bf16.msra.mxu0 %v8241_v63 }
 0x477   : > { %8282 = vmatpush1.bf16.msra.mxu1 %v8281_v33  ;;  %8244 = vmatprep.subr.bf16.mxu0 %v8243_v35 }
 0x478   : > { %8284 = vmatprep.subr.bf16.mxu1 %v8283_v38 }
 0x47a   : > { %8246 = vmatpush1.bf16.msra.mxu0 %v8245_v46 }
 0x47b   : > { %8286 = vmatpush1.bf16.msra.mxu1 %v8285_v47  ;;  %8248 = vmatprep.subr.bf16.mxu0 %v8247_v49 }
 0x47c   : > { %8288 = vmatprep.subr.bf16.mxu1 %v8287_v54 }
 0x47e   : > { %8250 = vmatpush1.bf16.msra.mxu0 %v8249_v59 }
 0x47f   : > { %8290 = vmatpush1.bf16.msra.mxu1 %v8289_v61  ;;  %8252 = vmatprep.subr.bf16.mxu0 %v8251_v62 }
 0x480   : > { %8292 = vmatprep.subr.bf16.mxu1 %v8291_v3 }
 0x482   : > { %8254 = vmatpush1.bf16.msra.mxu0 %v8253_v5 }
 0x483   : > { %8294 = vmatpush1.bf16.msra.mxu1 %v8293_v6  ;;  %6941 = vmatprep.subr.msk.mxu0 %vm887_vm3, %v6938_v34  ;;  %v3706_v18 = vpop.f32.mrb[38].mxu0 }
 0x484   : > { %6944 = vmatprep.subr.msk.mxu1 %vm887_vm3, %v6940_v7  ;;  %v3777_v9 = vpop.f32.mrb[24].mxu1  ;;  %v3708_v12 = vpop.f32.mrb[39].mxu0 }
 0x485   : > { %v3786_v14 = vcombine.low %v3706_v18, %v3708_v12  ;;  %v3779_v19 = vpop.f32.mrb[25].mxu1 }
 0x486   : > { %6942 = vmatpush1.msk.msra.mxu0 %vm887_vm3, %v6937_v15  ;;  %v3787_v50 = vcombine.low %v3777_v9, %v3779_v19 }
 0x487   : > { %6945 = vmatpush1.msk.msra.mxu1 %vm887_vm3, %v6939_v8  ;;  %5075 = vmatmul.mubr.f32.vlgmr.msra.gmra.mrb[48].mxu0 %v4993_v13  ;;  %v3794_v20 = vrot.slane %v3786_v14, %v10317_v51 }
 0x488   : > { %5146 = vmatmul.mubr.f32.vlgmr.msra.gmra.mrb[34].mxu1 %v4993_v13  ;;  %v3801_v10 = vrot.slane %v3787_v50, %v10317_v51  ;;  %v13021_v50 = vsub.s32 1, %v10295_v44 }
 0x48a   : > { %v3802_v24 = vcombine.low %v3794_v20, %v3801_v10  ;;  %v13024_v20 = vsub.s32 2, %v10295_v44  ;;  %v13027_v10 = vsub.s32 3, %v10295_v44 }
 0x48c   : > { %v3809_v17 = vrot.slane %v3802_v24, %v10317_v51 }
 0x48e   : > { %v3811_v25 = vadd.f32 %v3809_v17, %v12826_v43 }
 0x4ae   : > { %v3980_v27 = vpop.f32.mrb[40].mxu0 }
 0x4af   : > { %v4051_v48 = vpop.f32.mrb[26].mxu1  ;;  %v3982_v29 = vpop.f32.mrb[41].mxu0 }
 0x4b0   : > { %v4060_v30 = vcombine.low %v3980_v27, %v3982_v29  ;;  %v4053_v60 = vpop.f32.mrb[27].mxu1 }
 0x4b1   : > { %v4061_v31 = vcombine.low %v4051_v48, %v4053_v60 }
 0x4b2   : > { %v4068_v32 = vrot.slane %v4060_v30, %v10317_v51 }
 0x4b3   : > { %v4075_v16 = vrot.slane %v4061_v31, %v10317_v51 }
 0x4b5   : > { %v4076_v41 = vcombine.low %v4068_v32, %v4075_v16  ;;  %v5292_v16 = vld [vmem:[%s13329_s9 + $0x100] sm:$0xff] }
 0x4b7   : > { %v4083_v63 = vrot.slane %v4076_v41, %v10317_v51  ;;  %v5293_v41 = vld [vmem:[%s13329_s9 + $0x108] sm:$0xff] }
 0x4b9   : > { %v4085_v33 = vadd.f32 %v4083_v63, %v3811_v25  ;;  %v5294_v63 = vld [vmem:[%s13329_s9 + $0x110] sm:$0xff] }
 0x4d9   : > { %v4254_v35 = vpop.f32.mrb[42].mxu0 }
 0x4da   : > { %v4325_v28 = vpop.f32.mrb[28].mxu1  ;;  %v4256_v36 = vpop.f32.mrb[43].mxu0 }
 0x4db   : > { %v4334_v37 = vcombine.low %v4254_v35, %v4256_v36  ;;  %v4327_v38 = vpop.f32.mrb[29].mxu1  ;;  %v8328_v35 = vpack.c.bf16 %v5293_v41, %v5292_v16 }
 0x4dc   : > { %v4335_v43 = vcombine.low %v4325_v28, %v4327_v38  ;;  %v5295_v28 = vld [vmem:[%s13329_s9 + $0x118] sm:$0xff]  ;;  %v5297_v38 = vld [vmem:[%s13329_s9 + $0x128] sm:$0xff] }
 0x4dd   : > { %v4342_v39 = vrot.slane %v4334_v37, %v10317_v51  ;;  %v8331_v36 = vpack.c.bf16 %v5295_v28, %v5294_v63  ;;  %v5296_v37 = vld [vmem:[%s13329_s9 + $0x120] sm:$0xff] }
 0x4de   : > { %v4349_v40 = vrot.slane %v4335_v43, %v10317_v51  ;;  %v5276_v43 = vld [vmem:[%s13329_s9 + $0x80] sm:$0xff] }
 0x4e0   : > { %v4350_v23 = vcombine.low %v4342_v39, %v4349_v40  ;;  %v5277_v39 = vld [vmem:[%s13329_s9 + $0x88] sm:$0xff] }
 0x4e1   : > { %v8295_v40 = vpack.c.bf16 %v5277_v39, %v5276_v43 }
 0x4e2   : > { %v4357_v42 = vrot.slane %v4350_v23, %v10317_v51  ;;  %v5260_v23 = vld [vmem:[%s13329_s9] sm:$0xff] }
 0x4e3   : > { %8296 = vmatprep.subr.bf16.mxu0 %v8295_v40 }
 0x4e4   : > { %v4359_v45 = vadd.f32 %v4357_v42, %v4085_v33  ;;  %v8499_v33 = vmov 0.0|0.0   ;;  %v5261_v42 = vld [vmem:[%s13329_s9 + $0x8] sm:$0xff] }
 0x4e5   : > { %8327 = vmatprep.subr.bf16.mxu1 %v8499_v33 }
 0x4e6   : > { %8329 = vmatpush1.bf16.msra.mxu1 %v8328_v35 }
 0x4e7   : > { %8330 = vmatprep.subr.bf16.mxu1 %v8499_v33 }
 0x4ea   : > { %8332 = vmatpush1.bf16.msra.mxu1 %v8331_v36 }
 0x4eb   : > { %8333 = vmatprep.subr.bf16.mxu1 %v8499_v33 }
 0x504   : > { %v4528_v46 = vpop.f32.mrb[44].mxu0 }
 0x505   : > { %v4599_v47 = vpop.f32.mrb[30].mxu1  ;;  %v4530_v49 = vpop.f32.mrb[45].mxu0 }
 0x506   : > { %v4608_v52 = vcombine.low %v4528_v46, %v4530_v49  ;;  %v4601_v53 = vpop.f32.mrb[31].mxu1  ;;  %v5298_v46 = vld [vmem:[%s13329_s9 + $0x130] sm:$0xff] }
 0x507   : > { %v4609_v21 = vcombine.low %v4599_v47, %v4601_v53  ;;  %v8297_v47 = vpack.c.bf16 %v5261_v42, %v5260_v23  ;;  %v5278_v49 = vld [vmem:[%s13329_s9 + $0x90] sm:$0xff]  ;;  %v5299_v53 = vld [vmem:[%s13329_s9 + $0x138] sm:$0xff] }
 0x508   : > { %v4616_v54 = vrot.slane %v4608_v52, %v10317_v51  ;;  %v5279_v52 = vld [vmem:[%s13329_s9 + $0x98] sm:$0xff] }
 0x509   : > { %v4623_v55 = vrot.slane %v4609_v21, %v10317_v51  ;;  %v8299_v21 = vpack.c.bf16 %v5279_v52, %v5278_v49  ;;  %8298 = vmatpush3.bf16.msra.mxu0 %v8297_v47  ;;  %v5314_v47 = vld [vmem:[%s13329_s9 + $0x1b0] sm:$0xff]  ;;  %v5315_v49 = vld [vmem:[%s13329_s9 + $0x1b8] sm:$0xff] }
 0x50a   : > { %v8361_v52 = vpack.c.bf16 %v5315_v49, %v5314_v47 }
 0x50b   : > { %v4624_v56 = vcombine.low %v4616_v54, %v4623_v55  ;;  %v5262_v54 = vld [vmem:[%s13329_s9 + $0x10] sm:$0xff]  ;;  %v5263_v55 = vld [vmem:[%s13329_s9 + $0x18] sm:$0xff]  ;;  %8300 = vmatprep.subr.bf16.mxu0 %v8299_v21  ;;  %v5285_v21 = vld [vmem:[%s13329_s9 + $0xc8] sm:$0xff] }
 0x50d   : > { %v4631_v57 = vrot.slane %v4624_v56, %v10317_v51  ;;  %v8301_v56 = vpack.c.bf16 %v5263_v55, %v5262_v54  ;;  %v5268_v55 = vld [vmem:[%s13329_s9 + $0x40] sm:$0xff] }
 0x50f   : > { %v4633_v26 = vadd.f32 %v4631_v57, %v4359_v45  ;;  %v8334_v45 = vpack.c.bf16 %v5297_v38, %v5296_v37  ;;  %v5280_v57 = vld [vmem:[%s13329_s9 + $0xa0] sm:$0xff]  ;;  %8302 = vmatpush3.bf16.msra.mxu0 %v8301_v56  ;;  %v5269_v56 = vld [vmem:[%s13329_s9 + $0x48] sm:$0xff] }
 0x511   : > { %8335 = vmatpush1.bf16.msra.mxu1 %v8334_v45 }
 0x512   : > { %8336 = vmatprep.subr.bf16.mxu1 %v8499_v33 }
 0x52f   : > { %v4802_v58 = vpop.f32.mrb[46].mxu0 }
 0x530   : > { %v4873_v59 = vpop.f32.mrb[32].mxu1  ;;  %v4804_v61 = vpop.f32.mrb[47].mxu0 }
 0x531   : > { %v4882_v62 = vcombine.low %v4802_v58, %v4804_v61  ;;  %v4875_v1 = vpop.f32.mrb[33].mxu1  ;;  %v5265_v61 = vld [vmem:[%s13329_s9 + $0x28] sm:$0xff] }
 0x532   : > { %v4883_v2 = vcombine.low %v4873_v59, %v4875_v1  ;;  %v5264_v59 = vld [vmem:[%s13329_s9 + $0x20] sm:$0xff]  ;;  %v5282_v1 = vld [vmem:[%s13329_s9 + $0xb0] sm:$0xff] }
 0x533   : > { %v4890_v3 = vrot.slane %v4882_v62, %v10317_v51  ;;  %v8337_v62 = vpack.c.bf16 %v5299_v53, %v5298_v46  ;;  %v5284_v53 = vld [vmem:[%s13329_s9 + $0xc0] sm:$0xff] }
 0x534   : > { %v4897_v4 = vrot.slane %v4883_v2, %v10317_v51  ;;  %v5283_v2 = vld [vmem:[%s13329_s9 + $0xb8] sm:$0xff]  ;;  %v8311_v54 = vpack.c.bf16 %v5285_v21, %v5284_v53 }
 0x535   : > { %8338 = vmatpush1.bf16.msra.mxu1 %v8337_v62  ;;  %v5287_v62 = vld [vmem:[%s13329_s9 + $0xd8] sm:$0xff] }
 0x536   : > { %v4898_v11 = vcombine.low %v4890_v3, %v4897_v4  ;;  %v5300_v3 = vld [vmem:[%s13329_s9 + $0x140] sm:$0xff]  ;;  %v5301_v4 = vld [vmem:[%s13329_s9 + $0x148] sm:$0xff]  ;;  %8339 = vmatprep.subr.bf16.mxu1 %v8499_v33 }
 0x538   : > { %v4905_v5 = vrot.slane %v4898_v11, %v10317_v51  ;;  %v8305_v11 = vpack.c.bf16 %v5265_v61, %v5264_v59  ;;  %v5286_v61 = vld [vmem:[%s13329_s9 + $0xd0] sm:$0xff] }
 0x53a   : > { %v4907_v6 = vadd.f32 %v4905_v5, %v4633_v26  ;;  %v5281_v26 = vld [vmem:[%s13329_s9 + $0xa8] sm:$0xff]  ;;  %v8307_v5 = vpack.c.bf16 %v5283_v2, %v5282_v1  ;;  %v8315_v1 = vpack.c.bf16 %v5287_v62, %v5286_v61  ;;  %v5270_v2 = vld [vmem:[%s13329_s9 + $0x50] sm:$0xff] }
 0x53b   : > { %v8303_v58 = vpack.c.bf16 %v5281_v26, %v5280_v57  ;;  %v8313_v57 = vpack.c.bf16 %v5269_v56, %v5268_v55  ;;  %v5316_v26 = vld [vmem:[%s13329_s9 + $0x1c0] sm:$0xff] }
 0x53d   : > { %8304 = vmatprep.subr.bf16.mxu0 %v8303_v58  ;;  %v5317_v58 = vld [vmem:[%s13329_s9 + $0x1c8] sm:$0xff] }
 0x53e   : > { %8306 = vmatpush3.bf16.msra.mxu0 %v8305_v11  ;;  %v8364_v59 = vpack.c.bf16 %v5317_v58, %v5316_v26  ;;  %v5318_v11 = vld [vmem:[%s13329_s9 + $0x1d0] sm:$0xff] }
 0x53f   : > { %8308 = vmatprep.subr.bf16.mxu0 %v8307_v5  ;;  %v5319_v5 = vld [vmem:[%s13329_s9 + $0x1d8] sm:$0xff] }
 0x55a   : > { %v5076_v34 = vpop.f32.mrb[48].mxu0 }
 0x55b   : > { %v5147_v7 = vpop.f32.mrb[34].mxu1  ;;  %v5078_v15 = vpop.f32.mrb[49].mxu0 }
 0x55c   : > { %v5156_v18 = vcombine.low %v5076_v34, %v5078_v15  ;;  %v5149_v8 = vpop.f32.mrb[35].mxu1  ;;  %v5267_v34 = vld [vmem:[%s13329_s9 + $0x38] sm:$0xff]  ;;  %v5302_v15 = vld [vmem:[%s13329_s9 + $0x150] sm:$0xff] }
 0x55d   : > { %v5157_v9 = vcombine.low %v5147_v7, %v5149_v8  ;;  %v8340_v7 = vpack.c.bf16 %v5301_v4, %v5300_v3  ;;  %v5271_v3 = vld [vmem:[%s13329_s9 + $0x58] sm:$0xff] }
 0x55e   : > { %v5164_v12 = vrot.slane %v5156_v18, %v10317_v51  ;;  %v5303_v18 = vld [vmem:[%s13329_s9 + $0x158] sm:$0xff]  ;;  %v8317_v4 = vpack.c.bf16 %v5271_v3, %v5270_v2 }
 0x55f   : > { %v5171_v13 = vrot.slane %v5157_v9, %v10317_v51  ;;  %8341 = vmatpush1.bf16.msra.mxu1 %v8340_v7  ;;  %v8343_v9 = vpack.c.bf16 %v5303_v18, %v5302_v15  ;;  %v5289_v7 = vld [vmem:[%s13329_s9 + $0xe8] sm:$0xff]  ;;  %v5272_v18 = vld [vmem:[%s13329_s9 + $0x60] sm:$0xff] }
 0x560   : > { %8342 = vmatprep.subr.bf16.mxu1 %v8499_v33 }
 0x561   : > { %v5172_v14 = vcombine.low %v5164_v12, %v5171_v13  ;;  %v5304_v12 = vld [vmem:[%s13329_s9 + $0x160] sm:$0xff]  ;;  %v5305_v13 = vld [vmem:[%s13329_s9 + $0x168] sm:$0xff] }
 0x563   : > { %v5179_v19 = vrot.slane %v5172_v14, %v10317_v51  ;;  %8344 = vmatpush1.bf16.msra.mxu1 %v8343_v9  ;;  %v8346_v14 = vpack.c.bf16 %v5305_v13, %v5304_v12  ;;  %v5320_v12 = vld [vmem:[%s13329_s9 + $0x1e0] sm:$0xff]  ;;  %v5321_v13 = vld [vmem:[%s13329_s9 + $0x1e8] sm:$0xff] }
 0x564   : > { %8345 = vmatprep.subr.bf16.mxu1 %v8499_v33 }
 0x565   : > { %v13029_v24 = vadd.f32 %v5179_v19, %v4907_v6  ;;  %v5266_v6 = vld [vmem:[%s13329_s9 + $0x30] sm:$0xff] }
 0x566   : > { %v8309_v8 = vpack.c.bf16 %v5267_v34, %v5266_v6  ;;  %v5306_v19 = vld [vmem:[%s13329_s9 + $0x170] sm:$0xff]  ;;  %v8367_v6 = vpack.c.bf16 %v5319_v5, %v5318_v11  ;;  %v5288_v34 = vld [vmem:[%s13329_s9 + $0xe0] sm:$0xff] }
 0x567   : > { %v5186_v17 = vrot.slane %v13029_v24, %v10479_v22  ;;  %v5190_v25 = vrot.slane %v13029_v24, %v13021_v50  ;;  %v5194_v51 = vrot.slane %v13029_v24, %v13024_v20  ;;  %v5198_v27 = vrot.slane %v13029_v24, %v13027_v10  ;;  %8347 = vmatpush1.bf16.msra.mxu1 %v8346_v14  ;;  %v5290_v14 = vld [vmem:[%s13329_s9 + $0xf0] sm:$0xff] }
 0x568   : > { %8310 = vmatpush3.bf16.msra.mxu0 %v8309_v8  ;;  %8348 = vmatprep.subr.bf16.mxu1 %v8499_v33  ;;  %v8319_v15 = vpack.c.bf16 %v5289_v7, %v5288_v34  ;;  %v5273_v8 = vld [vmem:[%s13329_s9 + $0x68] sm:$0xff] }
 0x569   : > { %v5203_v48 = vsel %vm503_vm0, %v5186_v17, -inf  ;;  %v5204_v44 = vsel %vm503_vm0, %v5190_v25, -inf  ;;  %v5205_v29 = vsel %vm503_vm0, %v5194_v51, -inf  ;;  %v5207_v30 = vsel %vm5206_vm5, %v5198_v27, -inf  ;;  %v5307_v17 = vld [vmem:[%s13329_s9 + $0x178] sm:$0xff]  ;;  %v5308_v51 = vld [vmem:[%s13329_s9 + $0x180] sm:$0xff]  ;;  %8312 = vmatprep.subr.bf16.mxu0 %v8311_v54 }
 0x56a   : > { %v5208_v60 = vmax.f32 %v5203_v48, %v5204_v44  ;;  %v5209_v31 = vmax.f32 %v5205_v29, %v5207_v30  ;;  %v8349_v25 = vpack.c.bf16 %v5307_v17, %v5306_v19  ;;  %v5309_v27 = vld [vmem:[%s13329_s9 + $0x188] sm:$0xff]  ;;  %v5310_v44 = vld [vmem:[%s13329_s9 + $0x190] sm:$0xff]  ;;  %v5311_v29 = vld [vmem:[%s13329_s9 + $0x198] sm:$0xff]  ;;  %v8321_v9 = vpack.c.bf16 %v5273_v8, %v5272_v18 }
 0x56b   : > { %v8352_v48 = vpack.c.bf16 %v5309_v27, %v5308_v51  ;;  %v8355_v30 = vpack.c.bf16 %v5311_v29, %v5310_v44  ;;  %v8370_v19 = vpack.c.bf16 %v5321_v13, %v5320_v12  ;;  %v5291_v17 = vld [vmem:[%s13329_s9 + $0xf8] sm:$0xff] }
 0x56c   : > { %v5210_v32 = vmax.f32 %v5208_v60, %v5209_v31  ;;  %8350 = vmatpush1.bf16.msra.mxu1 %v8349_v25  ;;  %v5312_v60 = vld [vmem:[%s13329_s9 + $0x1a0] sm:$0xff]  ;;  %v5313_v31 = vld [vmem:[%s13329_s9 + $0x1a8] sm:$0xff]  ;;  %8314 = vmatpush3.bf16.msra.mxu0 %v8313_v57  ;;  %v5275_v25 = vld [vmem:[%s13329_s9 + $0x78] sm:$0xff]  ;;  %v8323_v51 = vpack.c.bf16 %v5291_v17, %v5290_v14 }
 0x56d   : > { %8351 = vmatprep.subr.bf16.mxu1 %v8499_v33  ;;  %8316 = vmatprep.subr.bf16.mxu0 %v8315_v1 }
 0x56e   : > { %5211 = vmax.xlane.f32.xlu0 %v5210_v32  ;;  %v8358_v32 = vpack.c.bf16 %v5313_v31, %v5312_v60 }
 0x570   : > { %8353 = vmatpush1.bf16.msra.mxu1 %v8352_v48  ;;  %8318 = vmatpush3.bf16.msra.mxu0 %v8317_v4  ;;  %v5322_v48 = vld [vmem:[%s13329_s9 + $0x1f0] sm:$0xf] }
 0x571   : > { %8354 = vmatprep.subr.bf16.mxu1 %v8499_v33  ;;  %8320 = vmatprep.subr.bf16.mxu0 %v8319_v15 }
 0x574   : > { %8356 = vmatpush1.bf16.msra.mxu1 %v8355_v30  ;;  %8322 = vmatpush3.bf16.msra.mxu0 %v8321_v9 }
 0x575   : > { %8357 = vmatprep.subr.bf16.mxu1 %v8499_v33  ;;  %8324 = vmatprep.subr.bf16.mxu0 %v8323_v51 }
 0x578   : > { %8359 = vmatpush1.bf16.msra.mxu1 %v8358_v32 }
 0x579   : > { %8360 = vmatprep.subr.bf16.mxu1 %v8499_v33 }
 0x57c   : > { %8362 = vmatpush1.bf16.msra.mxu1 %v8361_v52 }
 0x57d   : > { %8363 = vmatprep.subr.bf16.mxu1 %v8499_v33 }
 0x580   : > { %8365 = vmatpush1.bf16.msra.mxu1 %v8364_v59 }
 0x581   : > { %8366 = vmatprep.subr.bf16.mxu1 %v8499_v33 }
 0x584   : > { %8368 = vmatpush1.bf16.msra.mxu1 %v8367_v6 }
 0x585   : > { %8369 = vmatprep.subr.bf16.mxu1 %v8499_v33  ;;  %v5274_v33 = vld [vmem:[%s13329_s9 + $0x70] sm:$0xff] }
 0x586   : > { %v8325_v27 = vpack.c.bf16 %v5275_v25, %v5274_v33 }
 0x588   : > { %8371 = vmatpush1.bf16.msra.mxu1 %v8370_v19  ;;  %8326 = vmatpush3.bf16.msra.mxu0 %v8325_v27 }
 0x589   : > { %5481 = vmatprep.subr.mxu1 %v8493_v0 }
 0x58c   : > { %6947 = vmatpush1.msk.msra.mxu1 %vm5347_vm6, %v5322_v48 }
 0x5fb   : > { %v5212_v16 = vpop.xlane.xlu0 %5211 }
 0x5fc   : > { %v5217_v41 = vrot.slane %v5212_v16, %v10479_v22 }
 0x5fe   : > { %v5219_v63 = vsub.f32 %v13029_v24, %v5217_v41 }
 0x600   : > { %v5220_v35 = vmul.f32 1.442695, %v5219_v63 }
 0x602   : > { %8425 = vpow2.f32 %v5220_v35  ;;  %v5323_v35 = vld [vmem:[%s13330_s10] sm:$0x1] }
 0x60c   : > { %v13171_v28 = vpop.eup %8425 }
 0x60d   : > { %v5226_v36 = vrot.slane %v13171_v28, %v10479_v22  ;;  %v5230_v37 = vrot.slane %v13171_v28, %v13021_v50  ;;  %v5234_v38 = vrot.slane %v13171_v28, %v13024_v20  ;;  %v5238_v43 = vrot.slane %v13171_v28, %v13027_v10 }
 0x60f   : > { %v5243_v39 = vsel %vm503_vm0, %v5226_v36, 0.0  ;;  %v5244_v24 = vsel %vm503_vm0, %v5230_v37, 0.0  ;;  %v5246_v23 = vsel %vm503_vm0, %v5234_v38, 0.0  ;;  %v5248_v45 = vsel %vm5206_vm5, %v5238_v43, 0.0 }
 0x610   : > { %v5245_v40 = vadd.f32 %v5244_v24, %v5243_v39 }
 0x612   : > { %v5247_v42 = vadd.f32 %v5246_v23, %v5245_v40 }
 0x614   : > { %v5249_v46 = vadd.f32 %v5248_v45, %v5247_v42 }
 0x616   : > { %5250 = vadd.xlane.f32.xlu1 %v5249_v46 }
 0x6a3   : > { %v5251_v44 = vpop.xlane.xlu1 %5250 }
 0x6a4   : > { %8427 = vrcp.f32 %v5251_v44 }
 0x6ae   : > { %v8428_v29 = vpop.eup %8427 }
 0x6af   : > { %v5257_v30 = vrot.slane %v8428_v29, %v10479_v22 }
 0x6b1   : > { %v5259_v60 = vmul.f32 %v13171_v28, %v5257_v30 }
 0x6b3   : > { %v5332_v31 = vrot.slane %v5259_v60, %v13021_v50  ;;  %v5340_v0 = vrot.slane %v5259_v60, %v13027_v10  ;;  %v5328_v32 = vrot.slane %v5259_v60, %v10479_v22  ;;  %v5336_v16 = vrot.slane %v5259_v60, %v13024_v20 }
 0x6b5   : > { %5415 = vmatprep.mubr.f32.mxu0 %v5332_v31  ;;  %6948 = vmatprep.mubr.msk.f32.mxu1 %vm5344_vm7, %v5340_v0 }
 0x6b6   : > { %5416 = vmatmul.mubr.f32.vlgmr.msra.gmra.mrb[50].mxu0 %v5328_v32  ;;  %5486 = vmatmul.mubr.f32.vlgmr.msra.gmra.mrb[36].mxu1 %v5336_v16 }
 0x789   : > { %v6984_v41 = vpop.f32.mrb[50].mxu0  ;;  %v5487_v63 = vpop.f32.mrb[36].mxu1 }
 0x78a   : > { %v6985_v28 = vpop.f32.mrb[51].mxu0  ;;  %v5489_v50 = vpop.f32.mrb[37].mxu1 }
 0x78b   : > { %v6986_v36 = vadd.f32 %v6985_v28, %v6984_v41 }
 0x78d   : > { %v5418_v22 = vadd.f32 %v6986_v36, %v5323_v35 }
 0x78f   : > { %v5488_v20 = vadd.f32 %v5487_v63, %v5418_v22 }
 0x791   : > { %5492 = vst.msk [vmem:[%s389_s13] sm:$0x1] %vm5491_vm8, %v5488_v20 }
 0x792   : > { %8442 = shalt.err (!%p8439_p3)
}
 0x793   : > { %s8443_s29 = scalar_lea.hbm %s13278_s15, 16  ;;  %s8447_s13 = scalar_lea.hbm %s13331_s11, 32 }
 0x794   : > { %p8444_p4 = scmp.ne.s32.totalorder %s13278_s15, %s8443_s29  ;;  %p8448_p9 = scmp.lt.u32.totalorder %s13278_s15, %s13331_s11 }
 0x795   : > { %p8449_p10 = scmp.lt.u32.totalorder %s8447_s13, %s8443_s29  ;;  %p8451_p12 = scmp.lt.u32.totalorder %s8443_s29, %s13278_s15 }
 0x796   : > { %p8445_p7 = pnand %p8444_p4, %p8599_p5 }
 0x797   : > { %p8450_p11 = por %p8449_p10, %p8448_p9 }
 0x798   : > { %p8446_p8 = pneg %p8445_p7 }
 0x799   : > { %p8452_p13 = por %p8451_p12, %p8450_p11 }
 0x79b   : > { %p8453_p0 = pnand %p8452_p13, %p8446_p8 }
 0x79d   : > { %8456 = shalt.err (!%p8453_p0)
}
 0x79e   : > { %8373 = dma.vmem_to_hbm [thread:$0]  (%p8599_p5), %s13280_s19, 16, %s13278_s15, %s5494_s16  }
 0x79f PF: > { %p8379_p1 = scmp.ge.s32.totalorder %s8491_s20, 2  ;;  %s5518_s22 = sand.u32 1, %s8479_s17  }
 0x7a0   : > { %s5519_s21 = scalar_lea.sflag [#allocation3], %s5518_s22 }
 0x7a1   : > { %p8376_p2 = pnand %p8379_p1, %p8603_p6 }
 0x7a3   : > { %8474 = dma.done.wait (!%p8376_p2), %s5519_s21, 16  }
 0x7a4   : > { %8476 = vsyncadd (!%p8376_p2), %s5519_s21, 4294967280  ;;  %s13337_s24 = sld [smem:[#allocation5_spill]]  ;;  %s13338_s19 = sld [smem:[#allocation6_spill]] }
 0x7a5   : > { %p21_p3 = scmp.ge.s32.totalorder %s8586_s23, 4   ;;  %s13339_s17 = smov %s8483_s18 }
 0x7a6   : > { %s13341_s20 = smov %s8586_s23 }
 0x7a7   :  { %23 = sbr.rel (!%p21_p3) target bundleno = 3 (0x3), region = 120 }
 0x7aa   : > { %s13340_s18 = smov %s13337_s24 }
 0x7ae   :  { %5523 = vsyncpa [#allocation3], 1 }
 0x7af   :  { %5525 = vsyncpa [#allocation3 + $0x1], 1 }

</bundles_post_ra>
